<compile_context>
chip_gen: v7x
topology: tpu7x:2x2x1
jax: 0.10.0
libtpu: 0.0.40
codegen_flags: <defaults>
</compile_context>

<pallas_src>
import functools

import jax
import jax.numpy as jnp
from jax import lax
from jax.experimental import pallas as pl
from jax.experimental.pallas import tpu as pltpu


# Per-x-block budget. With input + output each double-buffered this is ~4x in
# VMEM, which stays inside v7x's 64 MiB (and trivially inside v5e/v6e's 128 MiB).
_BLOCK_BUDGET_BYTES = 8 * 1024 * 1024
# Budget for the constant pool/expand matrices of the lane-dense path.
_AUX_BUDGET_BYTES = 2 * 1024 * 1024


def _choose_bt(B, per_batch_bytes, want_mult8):
    """Largest divisor of B fitting the block budget; prefer >=2 grid steps.

    want_mult8: the batch dim is the second-minor dim of the block, so it must
    be a multiple of 8 or cover the full array dim to stay (8,128)-legal.
    """
    cands = [d for d in range(1, B + 1)
             if B % d == 0 and d * per_batch_bytes <= _BLOCK_BUDGET_BYTES]
    if not cands:
        cands = [1]
    if want_mult8:
        cands = [d for d in cands if d % 8 == 0 or d == B]
        if not cands:
            return None
    multi = [d for d in cands if B // d >= 2]   # keep both v7x TCs busy if possible
    return max(multi) if multi else max(cands)


def _vmem_limit(est_bytes):
    return int(min(64 * 1024 * 1024, max(est_bytes, 16 * 1024 * 1024)))


# ----------------------------------------------------------------------------
# Lane-dense kernel: x presented as (Bt, N) with N = C*H*W (multiple of 128).
# Pool / broadcast-scale are matmuls against constant binary (N,C)/(C,N)
# matrices, so every VMEM load/store of x is a full-lane (unmasked) access.
# ----------------------------------------------------------------------------
def _se_kernel_lane_dense(x_ref, w1_ref, w2_ref, pool_ref, expand_ref, o_ref,
                          *, inv_hw):
    # x_ref: (Bt, N); w1_ref: (Cr, C); w2_ref: (C, Cr);
    # pool_ref: (N, C) binary; expand_ref: (C, N) binary.
    # Squeeze: per-channel sum via MXU, mean scaling applied in f32.
    y = jnp.dot(x_ref[...], pool_ref[...],
                preferred_element_type=jnp.float32) * inv_hw              # (Bt, C)
    # Excitation: Linear(C -> Cr, no bias) + ReLU  (contract over C).
    h = lax.dot_general(y, w1_ref[...],
                        dimension_numbers=(((1,), (1,)), ((), ())),
                        preferred_element_type=jnp.float32)
    h = jnp.maximum(h, 0.0)                                               # (Bt, Cr)
    # Linear(Cr -> C, no bias) + ReLU  (contract over Cr).
    s = lax.dot_general(h, w2_ref[...],
                        dimension_numbers=(((1,), (1,)), ((), ())),
                        preferred_element_type=jnp.float32)
    s = jnp.maximum(s, 0.0)                                               # (Bt, C)
    # Broadcast each channel gate across its HW elements via MXU.
    scale = jnp.dot(s, expand_ref[...],
                    preferred_element_type=jnp.float32)                   # (Bt, N)
    # Re-read x from VMEM for the scale; multiply in the x dtype.
    o_ref[...] = (x_ref[...] * scale.astype(o_ref.dtype)).astype(o_ref.dtype)


def _se_lane_dense(x, w1, w2, bt):
    B, C, H, W = x.shape
    Cr = w1.shape[0]
    HW = H * W
    N = C * HW
    itemsize = jnp.dtype(x.dtype).itemsize

    x2 = x.reshape(B, N)
    # Binary channel-membership matrices: pool_mat[n, c] = 1 iff n // HW == c.
    row_c = lax.broadcasted_iota(jnp.int32, (N, C), 0) // HW
    col_c = lax.broadcasted_iota(jnp.int32, (N, C), 1)
    pool_mat = (row_c == col_c).astype(x.dtype)                           # (N, C)
    expand_mat = pool_mat.T                                               # (C, N)

    est = (4 * bt * N + 4 * N * C + 8 * C * Cr) * itemsize + (2 << 20)
    grid = (B // bt,)

    kernel = functools.partial(_se_kernel_lane_dense, inv_hw=1.0 / HW)
    out = pl.pallas_call(
        kernel,
        out_shape=jax.ShapeDtypeStruct((B, N), x.dtype),
        grid_spec=pltpu.PrefetchScalarGridSpec(
            num_scalar_prefetch=0,
            grid=grid,
            in_specs=[
                pl.BlockSpec((bt, N), lambda b: (b, 0)),
                pl.BlockSpec((Cr, C), lambda b: (0, 0)),
                pl.BlockSpec((C, Cr), lambda b: (0, 0)),
                pl.BlockSpec((N, C), lambda b: (0, 0)),
                pl.BlockSpec((C, N), lambda b: (0, 0)),
            ],
            out_specs=pl.BlockSpec((bt, N), lambda b: (b, 0)),
        ),
        compiler_params=pltpu.CompilerParams(
            dimension_semantics=("parallel",),
            vmem_limit_bytes=_vmem_limit(est),
        ),
    )(x2, w1, w2, pool_mat, expand_mat)
    return out.reshape(B, C, H, W)


# ----------------------------------------------------------------------------
# General NCHW kernel: x presented as (Bt, C, HW) (HW on lanes).
# ----------------------------------------------------------------------------
def _se_kernel_nchw(x_ref, w1_ref, w2_ref, o_ref):
    # x_ref: (Bt, C, HW); w1_ref: (Cr, C); w2_ref: (C, Cr)
    inv_hw = 1.0 / x_ref.shape[-1]
    # Squeeze: per-channel mean (accumulate in f32).
    y = jnp.sum(x_ref[...].astype(jnp.float32), axis=-1) * inv_hw         # (Bt, C)
    h = lax.dot_general(y, w1_ref[...],
                        dimension_numbers=(((1,), (1,)), ((), ())),
                        preferred_element_type=jnp.float32)
    h = jnp.maximum(h, 0.0)                                               # (Bt, Cr)
    s = lax.dot_general(h, w2_ref[...],
                        dimension_numbers=(((1,), (1,)), ((), ())),
                        preferred_element_type=jnp.float32)
    s = jnp.maximum(s, 0.0)                                               # (Bt, C)
    # Re-read x from VMEM for the elementwise rescale; multiply in the x dtype.
    gate = s[:, :, None].astype(o_ref.dtype)
    o_ref[...] = (x_ref[...] * gate).astype(o_ref.dtype)


def _se_nchw(x, w1, w2, bt):
    B, C, H, W = x.shape
    Cr = w1.shape[0]
    HW = H * W
    itemsize = jnp.dtype(x.dtype).itemsize

    x3 = x.reshape(B, C, HW)
    est = 4 * bt * C * HW * itemsize + 8 * C * Cr * itemsize + (2 << 20)
    grid = (B // bt,)

    out = pl.pallas_call(
        _se_kernel_nchw,
        out_shape=jax.ShapeDtypeStruct((B, C, HW), x.dtype),
        grid_spec=pltpu.PrefetchScalarGridSpec(
            num_scalar_prefetch=0,
            grid=grid,
            in_specs=[
                pl.BlockSpec((bt, C, HW), lambda b: (b, 0, 0)),
                pl.BlockSpec((Cr, C), lambda b: (0, 0)),
                pl.BlockSpec((C, Cr), lambda b: (0, 0)),
            ],
            out_specs=pl.BlockSpec((bt, C, HW), lambda b: (b, 0, 0)),
        ),
        compiler_params=pltpu.CompilerParams(
            dimension_semantics=("parallel",),
            vmem_limit_bytes=_vmem_limit(est),
        ),
    )(x3, w1, w2)
    return out.reshape(B, C, H, W)


def se_block(x, w1, w2):
    """x: (B, C, H, W) NCHW. w1: (C//r, C), w2: (C, C//r) (torch Linear layout)."""
    B, C, H, W = x.shape
    HW = H * W
    N = C * HW
    itemsize = jnp.dtype(x.dtype).itemsize
    per_batch_bytes = N * itemsize

    # Lane-dense path only pays off when the natural HW lane axis would be
    # masked (< 128 / not a multiple of 128) and the constant matrices are cheap.
    aux_bytes = N * C * itemsize
    if (HW % 128 != 0) and (N % 128 == 0) and (aux_bytes <= _AUX_BUDGET_BYTES):
        bt = _choose_bt(B, per_batch_bytes, want_mult8=True)
        if bt is not None:
            return _se_lane_dense(x, w1, w2, bt)

    bt = _choose_bt(B, per_batch_bytes, want_mult8=False)
    return _se_nchw(x, w1, w2, bt)


def se_block_ref(x, w1, w2):
    """Pure-JAX reference matching the PyTorch forward."""
    y = jnp.mean(x, axis=(2, 3))                 # (B, C)
    y = jnp.maximum(y @ w1.T, 0.0)               # (B, C//r)
    y = jnp.maximum(y @ w2.T, 0.0)               # (B, C)
    return x * y[:, :, None, None]


if __name__ == "__main__":
    key = jax.random.PRNGKey(0)

    def run_case(case_key, B, C, H, W, reduction=16):
        Cr = C // reduction
        kx, k1, k2 = jax.random.split(case_key, 3)
        x = jax.random.normal(kx, (B, C, H, W), dtype=jnp.float32)
        w1 = jax.random.normal(k1, (Cr, C), dtype=jnp.float32) * 0.1   # Linear(C, C//r)
        w2 = jax.random.normal(k2, (C, Cr), dtype=jnp.float32) * 0.1   # Linear(C//r, C)

        out = jax.block_until_ready(se_block(x, w1, w2))
        ref = se_block_ref(x, w1, w2)
        assert out.shape == (B, C, H, W)
        err = float(jnp.max(jnp.abs(out - ref)))
        assert jnp.allclose(out, ref, atol=5e-5, rtol=5e-5), (
            f"mismatch B={B} C={C} H={H} W={W} max_abs_err={err}")

    keys = jax.random.split(key, 4)
    # Primary small case: lane-dense 2D path, whole-array block (B fits one block).
    run_case(keys[0], B=2, C=64, H=8, W=8)
    # Lane-dense path with batching: Bt=8, grid=(2,) -> parallel axis >= 2.
    run_case(keys[1], B=16, C=64, H=8, W=8)
    # General NCHW fallback (C*H*W not a multiple of 128): Bt=2, grid=(2,).
    run_case(keys[2], B=4, C=64, H=13, W=13)
    # NCHW path with a naturally lane-dense HW (256 = 2*128): Bt=2, grid=(2,).
    run_case(keys[3], B=4, C=64, H=16, W=16)

    print("KERNEL_OK")
</pallas_src>

<mosaic_0001>
module attributes {stable_mosaic.version = 11 : i64} {
  func.func @_se_kernel_lane_dense(%arg0: i32, %arg1: memref<2x4096xf32, #tpu.memory_space<vmem>>, %arg2: memref<4x64xf32, #tpu.memory_space<vmem>>, %arg3: memref<64x4xf32, #tpu.memory_space<vmem>>, %arg4: memref<4096x64xf32, #tpu.memory_space<vmem>>, %arg5: memref<64x4096xf32, #tpu.memory_space<vmem>>, %arg6: memref<2x4096xf32, #tpu.memory_space<vmem>>) attributes {dimension_semantics = [#tpu.dimension_semantics<parallel>], iteration_bounds = array<i64: 1>, scalar_prefetch = 0 : i64, scratch_operands = 0 : i64, tpu.core_type = #tpu.core_type<tc>, window_params = [{transform_indices = @transform_0, window_bounds = array<i64: 2, 4096>}, {pipeline_mode = #tpu.pipeline_mode<synchronous>, transform_indices = @transform_1, window_bounds = array<i64: 4, 64>}, {pipeline_mode = #tpu.pipeline_mode<synchronous>, transform_indices = @transform_2, window_bounds = array<i64: 64, 4>}, {pipeline_mode = #tpu.pipeline_mode<synchronous>, transform_indices = @transform_3, window_bounds = array<i64: 4096, 64>}, {pipeline_mode = #tpu.pipeline_mode<synchronous>, transform_indices = @transform_4, window_bounds = array<i64: 64, 4096>}, {transform_indices = @transform_5, window_bounds = array<i64: 2, 4096>}]} {
    %c0 = arith.constant 0 : index
    %c0_0 = arith.constant 0 : index
    %0 = vector.load %arg1[%c0, %c0_0] : memref<2x4096xf32, #tpu.memory_space<vmem>>, vector<2x4096xf32>
    %c0_1 = arith.constant 0 : index
    %c0_2 = arith.constant 0 : index
    %1 = vector.load %arg4[%c0_1, %c0_2] : memref<4096x64xf32, #tpu.memory_space<vmem>>, vector<4096x64xf32>
    %cst = arith.constant dense<0.000000e+00> : vector<2x64xf32>
    %2 = tpu.matmul %0, %1, %cst {dimension_numbers = #tpu.dot_dimension_numbers<[1], [0], [0], [1], [0, 0, 1, 1], [], []>} : vector<2x4096xf32>, vector<4096x64xf32>, vector<2x64xf32> -> vector<2x64xf32>
    %cst_3 = arith.constant 1.562500e-02 : f32
    %3 = vector.broadcast %cst_3 : f32 to vector<2x64xf32>
    %4 = arith.mulf %2, %3 : vector<2x64xf32>
    %c0_4 = arith.constant 0 : index
    %c0_5 = arith.constant 0 : index
    %5 = vector.load %arg2[%c0_4, %c0_5] : memref<4x64xf32, #tpu.memory_space<vmem>>, vector<4x64xf32>
    %cst_6 = arith.constant dense<0.000000e+00> : vector<2x4xf32>
    %6 = tpu.matmul %4, %5, %cst_6 {dimension_numbers = #tpu.dot_dimension_numbers<[1], [1], [0], [0], [0, 0, 1, 0], [], []>} : vector<2x64xf32>, vector<4x64xf32>, vector<2x4xf32> -> vector<2x4xf32>
    %cst_7 = arith.constant 0.000000e+00 : f32
    %7 = vector.broadcast %cst_7 : f32 to vector<2x4xf32>
    %8 = arith.maximumf %6, %7 : vector<2x4xf32>
    %c0_8 = arith.constant 0 : index
    %c0_9 = arith.constant 0 : index
    %9 = vector.load %arg3[%c0_8, %c0_9] : memref<64x4xf32, #tpu.memory_space<vmem>>, vector<64x4xf32>
    %cst_10 = arith.constant dense<0.000000e+00> : vector<2x64xf32>
    %10 = tpu.matmul %8, %9, %cst_10 {dimension_numbers = #tpu.dot_dimension_numbers<[1], [1], [0], [0], [0, 0, 1, 0], [], []>} : vector<2x4xf32>, vector<64x4xf32>, vector<2x64xf32> -> vector<2x64xf32>
    %cst_11 = arith.constant 0.000000e+00 : f32
    %11 = vector.broadcast %cst_11 : f32 to vector<2x64xf32>
    %12 = arith.maximumf %10, %11 : vector<2x64xf32>
    %c0_12 = arith.constant 0 : index
    %c0_13 = arith.constant 0 : index
    %13 = vector.load %arg5[%c0_12, %c0_13] : memref<64x4096xf32, #tpu.memory_space<vmem>>, vector<64x4096xf32>
    %cst_14 = arith.constant dense<0.000000e+00> : vector<2x4096xf32>
    %14 = tpu.matmul %12, %13, %cst_14 {dimension_numbers = #tpu.dot_dimension_numbers<[1], [0], [0], [1], [0, 0, 1, 1], [], []>} : vector<2x64xf32>, vector<64x4096xf32>, vector<2x4096xf32> -> vector<2x4096xf32>
    %c0_15 = arith.constant 0 : index
    %c0_16 = arith.constant 0 : index
    %15 = vector.load %arg1[%c0_15, %c0_16] : memref<2x4096xf32, #tpu.memory_space<vmem>>, vector<2x4096xf32>
    %16 = arith.mulf %15, %14 : vector<2x4096xf32>
    %c0_17 = arith.constant 0 : index
    %c0_18 = arith.constant 0 : index
    %17 = vector.load %arg6[%c0_17, %c0_18] : memref<2x4096xf32, #tpu.memory_space<vmem>>, vector<2x4096xf32>
    tpu.vector_store %arg6[%c0_17, %c0_18], %16 {strides = array<i32>} : memref<2x4096xf32, #tpu.memory_space<vmem>>, vector<2x4096xf32>,
    return
  }
  func.func @transform_0(%arg0: i32) -> (i32, i32) {
    %c0_i32 = arith.constant 0 : i32
    %c0_i32_0 = arith.constant 0 : i32
    return %arg0, %c0_i32 : i32, i32
  }
  func.func @transform_1(%arg0: i32) -> (i32, i32) {
    %c0_i32 = arith.constant 0 : i32
    %c0_i32_0 = arith.constant 0 : i32
    %c0_i32_1 = arith.constant 0 : i32
    return %c0_i32, %c0_i32_0 : i32, i32
  }
  func.func @transform_2(%arg0: i32) -> (i32, i32) {
    %c0_i32 = arith.constant 0 : i32
    %c0_i32_0 = arith.constant 0 : i32
    %c0_i32_1 = arith.constant 0 : i32
    return %c0_i32, %c0_i32_0 : i32, i32
  }
  func.func @transform_3(%arg0: i32) -> (i32, i32) {
    %c0_i32 = arith.constant 0 : i32
    %c0_i32_0 = arith.constant 0 : i32
    %c0_i32_1 = arith.constant 0 : i32
    return %c0_i32, %c0_i32_0 : i32, i32
  }
  func.func @transform_4(%arg0: i32) -> (i32, i32) {
    %c0_i32 = arith.constant 0 : i32
    %c0_i32_0 = arith.constant 0 : i32
    %c0_i32_1 = arith.constant 0 : i32
    return %c0_i32, %c0_i32_0 : i32, i32
  }
  func.func @transform_5(%arg0: i32) -> (i32, i32) {
    %c0_i32 = arith.constant 0 : i32
    %c0_i32_0 = arith.constant 0 : i32
    return %arg0, %c0_i32 : i32, i32
  }
}

</mosaic_0001>

<bundles_post_ra>
// kernel: tpu_custom_call.1
= control target key start
LH: loop header
LB: loop body
LE: loop exit
PB: predicated region body
PF: predicated region fallthrough
CT: control target
= control target key end

     0   :  { %v5076_v47 = vmov 1983009808   ;;  %v553_v49 = vlaneseq  ;;  %s7676_s0 = inlined_call_operand.vmem [shape: f32[2,4096], index: 0, kind: input, shape index: {}]   ;;  %s7677_s1 = inlined_call_operand.vmem [shape: f32[4,64], index: 1, kind: input, shape index: {}]   ;;  %s7678_s2 = inlined_call_operand.vmem [shape: f32[64,4], index: 2, kind: input, shape index: {}]   ;;  %s7679_s3 = inlined_call_operand.vmem [shape: f32[4096,64], index: 3, kind: input, shape index: {}]   ;;  %s7680_s4 = inlined_call_operand.vmem [shape: f32[64,4096], index: 4, kind: input, shape index: {}]   ;;  %s7681_s5 = inlined_call_operand.hbm [shape: f32[2,4096], index: 5, kind: output, shape index: {}]  }
   0x1   :  { %v45_v0 = vld [vmem:[%s7679_s3 + $0x80] sm:$0xff]  ;;  %v46_v1 = vld [vmem:[%s7679_s3 + $0x88] sm:$0xff]  ;;  %v47_v11 = vld [vmem:[%s7679_s3 + $0x90] sm:$0xff]  ;;  %v551_v48 = vunpack.c.l.s4 %v5076_v47 }
   0x2   :  { %v77_v2 = vld [vmem:[%s7679_s3 + $0x180] sm:$0xff]  ;;  %v4247_v3 = vpack.c.bf16 %v46_v1, %v45_v0  ;;  %v78_v4 = vld [vmem:[%s7679_s3 + $0x188] sm:$0xff]  ;;  %v48_v13 = vld [vmem:[%s7679_s3 + $0x98] sm:$0xff]  ;;  %v554_v0 = vshrl.u32 %v553_v49, 7 }
   0x3   :  { %v29_v5 = vld [vmem:[%s7679_s3] sm:$0xff]  ;;  %v30_v6 = vld [vmem:[%s7679_s3 + $0x8] sm:$0xff]  ;;  %v4279_v7 = vpack.c.bf16 %v78_v4, %v77_v2  ;;  %v79_v14 = vld [vmem:[%s7679_s3 + $0x190] sm:$0xff]  ;;  %v4251_v16 = vpack.c.bf16 %v48_v13, %v47_v11  ;;  %v552_v63 = vunpack.c.0.s8 %v551_v48 }
   0x4   :  { %v4249_v8 = vpack.c.bf16 %v30_v6, %v29_v5  ;;  %v61_v9 = vld [vmem:[%s7679_s3 + $0x100] sm:$0xff]  ;;  %v62_v10 = vld [vmem:[%s7679_s3 + $0x108] sm:$0xff]  ;;  %4248 = vmatprep.subr.bf16.mxu0 %v4247_v3  ;;  %v80_v15 = vld [vmem:[%s7679_s3 + $0x198] sm:$0xff] }
   0x5   :  { %v4281_v12 = vpack.c.bf16 %v62_v10, %v61_v9  ;;  %4280 = vmatprep.subr.bf16.mxu1 %v4279_v7  ;;  %v4283_v17 = vpack.c.bf16 %v80_v15, %v79_v14  ;;  %v31_v18 = vld [vmem:[%s7679_s3 + $0x10] sm:$0xff]  ;;  %v32_v19 = vld [vmem:[%s7679_s3 + $0x18] sm:$0xff]  ;;  %v49_v23 = vld [vmem:[%s7679_s3 + $0xa0] sm:$0xff]  ;;  %v5261_v13 = vsub.s32 %v552_v63, %v554_v0 }
   0x6   :  { %4250 = vmatpush3.bf16.msra.mxu0 %v4249_v8  ;;  %v63_v20 = vld [vmem:[%s7679_s3 + $0x110] sm:$0xff]  ;;  %v4253_v21 = vpack.c.bf16 %v32_v19, %v31_v18  ;;  %v64_v22 = vld [vmem:[%s7679_s3 + $0x118] sm:$0xff]  ;;  %v50_v24 = vld [vmem:[%s7679_s3 + $0xa8] sm:$0xff] }
   0x7   :  { %4282 = vmatpush3.bf16.msra.mxu1 %v4281_v12  ;;  %4252 = vmatprep.subr.bf16.mxu0 %v4251_v16  ;;  %v4285_v25 = vpack.c.bf16 %v64_v22, %v63_v20  ;;  %v4255_v26 = vpack.c.bf16 %v50_v24, %v49_v23  ;;  %v81_v27 = vld [vmem:[%s7679_s3 + $0x1a0] sm:$0xff]  ;;  %v82_v28 = vld [vmem:[%s7679_s3 + $0x1a8] sm:$0xff]  ;;  %v51_v35 = vld [vmem:[%s7679_s3 + $0xb0] sm:$0xff] }
   0x8   :  { %4284 = vmatprep.subr.bf16.mxu1 %v4283_v17  ;;  %v33_v29 = vld [vmem:[%s7679_s3 + $0x20] sm:$0xff]  ;;  %v4287_v30 = vpack.c.bf16 %v82_v28, %v81_v27  ;;  %v34_v31 = vld [vmem:[%s7679_s3 + $0x28] sm:$0xff]  ;;  %v52_v36 = vld [vmem:[%s7679_s3 + $0xb8] sm:$0xff] }
   0x9   :  { %v65_v32 = vld [vmem:[%s7679_s3 + $0x120] sm:$0xff]  ;;  %v66_v33 = vld [vmem:[%s7679_s3 + $0x128] sm:$0xff]  ;;  %v4257_v34 = vpack.c.bf16 %v34_v31, %v33_v29  ;;  %v83_v37 = vld [vmem:[%s7679_s3 + $0x1b0] sm:$0xff]  ;;  %v4259_v39 = vpack.c.bf16 %v52_v36, %v51_v35 }
   0xa   :  { %4254 = vmatpush3.bf16.msra.mxu0 %v4253_v21  ;;  %v4289_v38 = vpack.c.bf16 %v66_v33, %v65_v32  ;;  %v84_v40 = vld [vmem:[%s7679_s3 + $0x1b8] sm:$0xff]  ;;  %v35_v41 = vld [vmem:[%s7679_s3 + $0x30] sm:$0xff]  ;;  %v53_v46 = vld [vmem:[%s7679_s3 + $0xc0] sm:$0xff] }
   0xb   :  { %4286 = vmatpush3.bf16.msra.mxu1 %v4285_v25  ;;  %4256 = vmatprep.subr.bf16.mxu0 %v4255_v26  ;;  %v36_v42 = vld [vmem:[%s7679_s3 + $0x38] sm:$0xff]  ;;  %v4291_v43 = vpack.c.bf16 %v84_v40, %v83_v37  ;;  %v67_v44 = vld [vmem:[%s7679_s3 + $0x130] sm:$0xff]  ;;  %v54_v50 = vld [vmem:[%s7679_s3 + $0xc8] sm:$0xff] }
   0xc   :  { %4288 = vmatprep.subr.bf16.mxu1 %v4287_v30  ;;  %v68_v45 = vld [vmem:[%s7679_s3 + $0x138] sm:$0xff]  ;;  %v85_v51 = vld [vmem:[%s7679_s3 + $0x1c0] sm:$0xff]  ;;  %v86_v52 = vld [vmem:[%s7679_s3 + $0x1c8] sm:$0xff]  ;;  %v4261_v53 = vpack.c.bf16 %v36_v42, %v35_v41  ;;  %v4263_v55 = vpack.c.bf16 %v54_v50, %v53_v46 }
   0xd   :  { %v4293_v54 = vpack.c.bf16 %v68_v45, %v67_v44  ;;  %v37_v56 = vld [vmem:[%s7679_s3 + $0x40] sm:$0xff]  ;;  %v38_v57 = vld [vmem:[%s7679_s3 + $0x48] sm:$0xff]  ;;  %v4295_v59 = vpack.c.bf16 %v86_v52, %v85_v51  ;;  %v55_v61 = vld [vmem:[%s7679_s3 + $0xd0] sm:$0xff] }
   0xe   :  { %4258 = vmatpush3.bf16.msra.mxu0 %v4257_v34  ;;  %v69_v58 = vld [vmem:[%s7679_s3 + $0x140] sm:$0xff]  ;;  %v70_v60 = vld [vmem:[%s7679_s3 + $0x148] sm:$0xff]  ;;  %v56_v62 = vld [vmem:[%s7679_s3 + $0xd8] sm:$0xff]  ;;  %v4265_v3 = vpack.c.bf16 %v38_v57, %v37_v56 }
   0xf   :  { %4290 = vmatpush3.bf16.msra.mxu1 %v4289_v38  ;;  %4260 = vmatprep.subr.bf16.mxu0 %v4259_v39  ;;  %v87_v1 = vld [vmem:[%s7679_s3 + $0x1d0] sm:$0xff]  ;;  %v88_v2 = vld [vmem:[%s7679_s3 + $0x1d8] sm:$0xff]  ;;  %v4297_v4 = vpack.c.bf16 %v70_v60, %v69_v58  ;;  %v4267_v5 = vpack.c.bf16 %v56_v62, %v55_v61  ;;  %v57_v11 = vld [vmem:[%s7679_s3 + $0xe0] sm:$0xff] }
  0x10   :  { %4292 = vmatprep.subr.bf16.mxu1 %v4291_v43  ;;  %v39_v6 = vld [vmem:[%s7679_s3 + $0x50] sm:$0xff]  ;;  %v40_v7 = vld [vmem:[%s7679_s3 + $0x58] sm:$0xff]  ;;  %v4299_v9 = vpack.c.bf16 %v88_v2, %v87_v1  ;;  %v58_v12 = vld [vmem:[%s7679_s3 + $0xe8] sm:$0xff] }
  0x11   :  { %v71_v8 = vld [vmem:[%s7679_s3 + $0x150] sm:$0xff]  ;;  %v72_v10 = vld [vmem:[%s7679_s3 + $0x158] sm:$0xff]  ;;  %v89_v14 = vld [vmem:[%s7679_s3 + $0x1e0] sm:$0xff]  ;;  %v4269_v16 = vpack.c.bf16 %v40_v7, %v39_v6  ;;  %v4271_v19 = vpack.c.bf16 %v58_v12, %v57_v11 }
  0x12   :  { %4262 = vmatpush3.bf16.msra.mxu0 %v4261_v53  ;;  %v90_v15 = vld [vmem:[%s7679_s3 + $0x1e8] sm:$0xff]  ;;  %v41_v17 = vld [vmem:[%s7679_s3 + $0x60] sm:$0xff]  ;;  %v4301_v18 = vpack.c.bf16 %v72_v10, %v71_v8  ;;  %v59_v25 = vld [vmem:[%s7679_s3 + $0xf0] sm:$0xff] }
  0x13   :  { %4294 = vmatpush3.bf16.msra.mxu1 %v4293_v54  ;;  %4264 = vmatprep.subr.bf16.mxu0 %v4263_v55  ;;  %v42_v20 = vld [vmem:[%s7679_s3 + $0x68] sm:$0xff]  ;;  %v73_v21 = vld [vmem:[%s7679_s3 + $0x160] sm:$0xff]  ;;  %v4303_v23 = vpack.c.bf16 %v90_v15, %v89_v14  ;;  %v60_v26 = vld [vmem:[%s7679_s3 + $0xf8] sm:$0xff] }
  0x14   :  { %4296 = vmatprep.subr.bf16.mxu1 %v4295_v59  ;;  %v21_v22 = vld [vmem:[%s7676_s0] sm:$0xff]  ;;  %v74_v24 = vld [vmem:[%s7679_s3 + $0x168] sm:$0xff]  ;;  %v91_v29 = vld [vmem:[%s7679_s3 + $0x1f0] sm:$0xff]  ;;  %v4273_v31 = vpack.c.bf16 %v42_v20, %v41_v17  ;;  %v4275_v35 = vpack.c.bf16 %v60_v26, %v59_v25 }
  0x15   :  { %v556_v27 = vrot.slane %v21_v22, %v5261_v13  ;;  %v549_v28 = vcombine.high %v21_v22, %v21_v22  ;;  %v92_v30 = vld [vmem:[%s7679_s3 + $0x1f8] sm:$0xff]  ;;  %v4305_v34 = vpack.c.bf16 %v74_v24, %v73_v21  ;;  %v43_v36 = vld [vmem:[%s7679_s3 + $0x70] sm:$0xff]  ;;  %v109_v42 = vld [vmem:[%s7679_s3 + $0x280] sm:$0xff] }
  0x16   :  { %4266 = vmatpush3.bf16.msra.mxu0 %v4265_v3  ;;  %v44_v37 = vld [vmem:[%s7679_s3 + $0x78] sm:$0xff]  ;;  %v75_v38 = vld [vmem:[%s7679_s3 + $0x170] sm:$0xff]  ;;  %v4307_v39 = vpack.c.bf16 %v92_v30, %v91_v29  ;;  %v110_v43 = vld [vmem:[%s7679_s3 + $0x288] sm:$0xff] }
  0x17   :  { %4298 = vmatpush3.bf16.msra.mxu1 %v4297_v4  ;;  %4268 = vmatprep.subr.bf16.mxu0 %v4267_v5  ;;  %v564_v32 = vcombine.high %v556_v27, %v556_v27  ;;  %v563_v33 = vrot.slane %v549_v28, %v5261_v13  ;;  %v76_v40 = vld [vmem:[%s7679_s3 + $0x178] sm:$0xff]  ;;  %v141_v44 = vld [vmem:[%s7679_s3 + $0x380] sm:$0xff]  ;;  %v142_v45 = vld [vmem:[%s7679_s3 + $0x388] sm:$0xff]  ;;  %v4277_v46 = vpack.c.bf16 %v44_v37, %v43_v36 }
  0x18   :  { %4300 = vmatprep.subr.bf16.mxu1 %v4299_v9  ;;  %v4309_v47 = vpack.c.bf16 %v76_v40, %v75_v38  ;;  %v4311_v48 = vpack.c.bf16 %v110_v43, %v109_v42  ;;  %v93_v49 = vld [vmem:[%s7679_s3 + $0x200] sm:$0xff]  ;;  %v94_v50 = vld [vmem:[%s7679_s3 + $0x208] sm:$0xff]  ;;  %v4343_v52 = vpack.c.bf16 %v142_v45, %v141_v44  ;;  %v111_v54 = vld [vmem:[%s7679_s3 + $0x290] sm:$0xff] }
  0x19   :  { %781 = vmatprep.mubr.f32.mxu0 %v564_v32  ;;  %v565_v41 = vcombine.high %v563_v33, %v563_v33  ;;  %v125_v51 = vld [vmem:[%s7679_s3 + $0x300] sm:$0xff]  ;;  %v126_v53 = vld [vmem:[%s7679_s3 + $0x308] sm:$0xff]  ;;  %v112_v55 = vld [vmem:[%s7679_s3 + $0x298] sm:$0xff]  ;;  %v4313_v58 = vpack.c.bf16 %v94_v50, %v93_v49 }
  0x1a   :  { %4270 = vmatpush3.bf16.msra.mxu0 %v4269_v16  ;;  %v143_v56 = vld [vmem:[%s7679_s3 + $0x390] sm:$0xff]  ;;  %v144_v57 = vld [vmem:[%s7679_s3 + $0x398] sm:$0xff]  ;;  %v4345_v59 = vpack.c.bf16 %v126_v53, %v125_v51  ;;  %v4315_v60 = vpack.c.bf16 %v112_v55, %v111_v54  ;;  %v113_v2 = vld [vmem:[%s7679_s3 + $0x2a0] sm:$0xff] }
  0x1b   :  { %4302 = vmatpush3.bf16.msra.mxu1 %v4301_v18  ;;  %4272 = vmatprep.subr.bf16.mxu0 %v4271_v19  ;;  %v95_v61 = vld [vmem:[%s7679_s3 + $0x210] sm:$0xff]  ;;  %v96_v62 = vld [vmem:[%s7679_s3 + $0x218] sm:$0xff]  ;;  %v4347_v0 = vpack.c.bf16 %v144_v57, %v143_v56  ;;  %v114_v3 = vld [vmem:[%s7679_s3 + $0x2a8] sm:$0xff] }
  0x1c   :  { %4304 = vmatprep.subr.bf16.mxu1 %v4303_v23  ;;  %851 = vmatprep.mubr.f32.mxu1 %v565_v41  ;;  %v127_v63 = vld [vmem:[%s7679_s3 + $0x310] sm:$0xff]  ;;  %v128_v1 = vld [vmem:[%s7679_s3 + $0x318] sm:$0xff]  ;;  %v145_v4 = vld [vmem:[%s7679_s3 + $0x3a0] sm:$0xff]  ;;  %v4317_v6 = vpack.c.bf16 %v96_v62, %v95_v61  ;;  %v4319_v8 = vpack.c.bf16 %v114_v3, %v113_v2 }
  0x1d   :  { %v146_v5 = vld [vmem:[%s7679_s3 + $0x3a8] sm:$0xff]  ;;  %v4349_v7 = vpack.c.bf16 %v128_v1, %v127_v63  ;;  %v97_v9 = vld [vmem:[%s7679_s3 + $0x220] sm:$0xff]  ;;  %v115_v15 = vld [vmem:[%s7679_s3 + $0x2b0] sm:$0xff] }
  0x1e   :  { %4274 = vmatpush3.bf16.msra.mxu0 %v4273_v31  ;;  %v98_v10 = vld [vmem:[%s7679_s3 + $0x228] sm:$0xff]  ;;  %v129_v11 = vld [vmem:[%s7679_s3 + $0x320] sm:$0xff]  ;;  %v4351_v12 = vpack.c.bf16 %v146_v5, %v145_v4  ;;  %v116_v16 = vld [vmem:[%s7679_s3 + $0x2b8] sm:$0xff] }
  0x1f   :  { %4306 = vmatpush3.bf16.msra.mxu1 %v4305_v34  ;;  %4276 = vmatprep.subr.bf16.mxu0 %v4275_v35  ;;  %v130_v14 = vld [vmem:[%s7679_s3 + $0x328] sm:$0xff]  ;;  %v147_v17 = vld [vmem:[%s7679_s3 + $0x3b0] sm:$0xff]  ;;  %v148_v18 = vld [vmem:[%s7679_s3 + $0x3b8] sm:$0xff]  ;;  %v4321_v19 = vpack.c.bf16 %v98_v10, %v97_v9  ;;  %v4323_v21 = vpack.c.bf16 %v116_v16, %v115_v15 }
  0x20   :  { %4308 = vmatprep.subr.bf16.mxu1 %v4307_v39  ;;  %v4353_v20 = vpack.c.bf16 %v130_v14, %v129_v11  ;;  %v99_v22 = vld [vmem:[%s7679_s3 + $0x230] sm:$0xff]  ;;  %v100_v23 = vld [vmem:[%s7679_s3 + $0x238] sm:$0xff]  ;;  %v4355_v25 = vpack.c.bf16 %v148_v18, %v147_v17  ;;  %v118_v28 = vld [vmem:[%s7679_s3 + $0x2c8] sm:$0xff] }
  0x21   :  { %v131_v24 = vld [vmem:[%s7679_s3 + $0x330] sm:$0xff]  ;;  %v132_v26 = vld [vmem:[%s7679_s3 + $0x338] sm:$0xff]  ;;  %v149_v29 = vld [vmem:[%s7679_s3 + $0x3c0] sm:$0xff]  ;;  %v4325_v32 = vpack.c.bf16 %v100_v23, %v99_v22 }
  0x22   :  { %4278 = vmatpush3.bf16.msra.mxu0 %v4277_v46  ;;  %v150_v30 = vld [vmem:[%s7679_s3 + $0x3c8] sm:$0xff]  ;;  %v4357_v35 = vpack.c.bf16 %v132_v26, %v131_v24  ;;  %v101_v37 = vld [vmem:[%s7679_s3 + $0x240] sm:$0xff]  ;;  %v119_v42 = vld [vmem:[%s7679_s3 + $0x2d0] sm:$0xff] }
  0x23   :  { %4310 = vmatpush3.bf16.msra.mxu1 %v4309_v47  ;;  %4312 = vmatprep.subr.bf16.mxu0 %v4311_v48  ;;  %v22_v31 = vld [vmem:[%s7676_s0 + $0x8] sm:$0xff]  ;;  %v133_v39 = vld [vmem:[%s7679_s3 + $0x340] sm:$0xff]  ;;  %v4359_v40 = vpack.c.bf16 %v150_v30, %v149_v29  ;;  %v120_v43 = vld [vmem:[%s7679_s3 + $0x2d8] sm:$0xff] }
  0x24   :  { %4344 = vmatprep.subr.bf16.mxu1 %v4343_v52  ;;  %v566_v34 = vcombine.high %v22_v31, %v22_v31  ;;  %v102_v38 = vld [vmem:[%s7679_s3 + $0x248] sm:$0xff]  ;;  %v151_v46 = vld [vmem:[%s7679_s3 + $0x3d0] sm:$0xff]  ;;  %v152_v47 = vld [vmem:[%s7679_s3 + $0x3d8] sm:$0xff]  ;;  %v4331_v51 = vpack.c.bf16 %v120_v43, %v119_v42 }
  0x25   :  { %782 = vmatmul.mubr.f32.vlgmr.msra.gmra.mrb[0].mxu0 %v556_v27  ;;  %v117_v27 = vld [vmem:[%s7679_s3 + $0x2c0] sm:$0xff]  ;;  %v134_v41 = vld [vmem:[%s7679_s3 + $0x348] sm:$0xff]  ;;  %v4329_v48 = vpack.c.bf16 %v102_v38, %v101_v37  ;;  %v103_v52 = vld [vmem:[%s7679_s3 + $0x250] sm:$0xff]  ;;  %v4363_v55 = vpack.c.bf16 %v152_v47, %v151_v46 }
  0x26   :  { %852 = vmatmul.mubr.f32.vlgmr.msra.gmra.mrb[0].mxu1 %v563_v33  ;;  %4314 = vmatpush3.bf16.msra.mxu0 %v4313_v58  ;;  %v5422_v33 = vrot.slane %v22_v31, %v5261_v13  ;;  %v4327_v36 = vpack.c.bf16 %v118_v28, %v117_v27  ;;  %v5445_v45 = vrot.slane %v566_v34, %v5261_v13  ;;  %v104_v53 = vld [vmem:[%s7679_s3 + $0x258] sm:$0xff]  ;;  %v135_v54 = vld [vmem:[%s7679_s3 + $0x350] sm:$0xff]  ;;  %v121_v57 = vld [vmem:[%s7679_s3 + $0x2e0] sm:$0xff] }
  0x27   :  { %4346 = vmatpush3.bf16.msra.mxu1 %v4345_v59  ;;  %4316 = vmatprep.subr.bf16.mxu0 %v4315_v60  ;;  %v4361_v50 = vpack.c.bf16 %v134_v41, %v133_v39  ;;  %v136_v56 = vld [vmem:[%s7679_s3 + $0x358] sm:$0xff]  ;;  %v122_v58 = vld [vmem:[%s7679_s3 + $0x2e8] sm:$0xff]  ;;  %v153_v59 = vld [vmem:[%s7679_s3 + $0x3e0] sm:$0xff]  ;;  %v4333_v61 = vpack.c.bf16 %v104_v53, %v103_v52 }
  0x28   :  { %4348 = vmatprep.subr.bf16.mxu1 %v4347_v0  ;;  %v581_v44 = vcombine.high %v5422_v33, %v5422_v33  ;;  %v582_v49 = vcombine.high %v5445_v45, %v5445_v45  ;;  %v154_v60 = vld [vmem:[%s7679_s3 + $0x3e8] sm:$0xff]  ;;  %v4365_v62 = vpack.c.bf16 %v136_v56, %v135_v54  ;;  %v4335_v63 = vpack.c.bf16 %v122_v58, %v121_v57  ;;  %v105_v0 = vld [vmem:[%s7679_s3 + $0x260] sm:$0xff]  ;;  %v123_v5 = vld [vmem:[%s7679_s3 + $0x2f0] sm:$0xff] }
  0x29   :  { %v106_v1 = vld [vmem:[%s7679_s3 + $0x268] sm:$0xff]  ;;  %v137_v2 = vld [vmem:[%s7679_s3 + $0x360] sm:$0xff]  ;;  %v4367_v3 = vpack.c.bf16 %v154_v60, %v153_v59  ;;  %v108_v14 = vld [vmem:[%s7679_s3 + $0x278] sm:$0xff] }
  0x2a   :  { %4318 = vmatpush3.bf16.msra.mxu0 %v4317_v6  ;;  %921 = vmatprep.mubr.f32.mxu0 %v581_v44  ;;  %v138_v4 = vld [vmem:[%s7679_s3 + $0x368] sm:$0xff]  ;;  %v124_v6 = vld [vmem:[%s7679_s3 + $0x2f8] sm:$0xff]  ;;  %v4337_v9 = vpack.c.bf16 %v106_v1, %v105_v0  ;;  %v139_v15 = vld [vmem:[%s7679_s3 + $0x370] sm:$0xff] }
  0x2b   :  { %4350 = vmatpush3.bf16.msra.mxu1 %v4349_v7  ;;  %4320 = vmatprep.subr.bf16.mxu0 %v4319_v8  ;;  %v155_v7 = vld [vmem:[%s7679_s3 + $0x3f0] sm:$0xff]  ;;  %v156_v8 = vld [vmem:[%s7679_s3 + $0x3f8] sm:$0xff]  ;;  %v4369_v10 = vpack.c.bf16 %v138_v4, %v137_v2  ;;  %v4339_v11 = vpack.c.bf16 %v124_v6, %v123_v5  ;;  %v173_v18 = vld [vmem:[%s7679_s3 + $0x480] sm:$0xff] }
  0x2c   :  { %4352 = vmatprep.subr.bf16.mxu1 %v4351_v12  ;;  %991 = vmatprep.mubr.f32.mxu1 %v582_v49  ;;  %v107_v12 = vld [vmem:[%s7679_s3 + $0x270] sm:$0xff]  ;;  %v4371_v16 = vpack.c.bf16 %v156_v8, %v155_v7  ;;  %v140_v17 = vld [vmem:[%s7679_s3 + $0x378] sm:$0xff]  ;;  %v157_v23 = vld [vmem:[%s7679_s3 + $0x400] sm:$0xff] }
  0x2d   :  { %v4341_v22 = vpack.c.bf16 %v108_v14, %v107_v12  ;;  %v4373_v24 = vpack.c.bf16 %v140_v17, %v139_v15  ;;  %v158_v26 = vld [vmem:[%s7679_s3 + $0x408] sm:$0xff]  ;;  %v189_v27 = vld [vmem:[%s7679_s3 + $0x500] sm:$0xff]  ;;  %v175_v30 = vld [vmem:[%s7679_s3 + $0x490] sm:$0xff] }
  0x2e   :  { %4322 = vmatpush3.bf16.msra.mxu0 %v4321_v19  ;;  %v174_v19 = vld [vmem:[%s7679_s3 + $0x488] sm:$0xff]  ;;  %v176_v31 = vld [vmem:[%s7679_s3 + $0x498] sm:$0xff]  ;;  %v23_v37 = vld [vmem:[%s7676_s0 + $0x10] sm:$0xff] }
  0x2f   :  { %4354 = vmatpush3.bf16.msra.mxu1 %v4353_v20  ;;  %4324 = vmatprep.subr.bf16.mxu0 %v4323_v21  ;;  %v205_v20 = vld [vmem:[%s7679_s3 + $0x580] sm:$0xff]  ;;  %v206_v21 = vld [vmem:[%s7679_s3 + $0x588] sm:$0xff]  ;;  %v208_v34 = vld [vmem:[%s7679_s3 + $0x598] sm:$0xff]  ;;  %v4379_v38 = vpack.c.bf16 %v176_v31, %v175_v30  ;;  %v5564_v42 = vrot.slane %v23_v37, %v5261_v13  ;;  %v583_v43 = vcombine.high %v23_v37, %v23_v37 }
  0x30   :  { %4356 = vmatprep.subr.bf16.mxu1 %v4355_v25  ;;  %v4375_v25 = vpack.c.bf16 %v174_v19, %v173_v18  ;;  %v190_v28 = vld [vmem:[%s7679_s3 + $0x508] sm:$0xff]  ;;  %v4407_v29 = vpack.c.bf16 %v206_v21, %v205_v20  ;;  %v159_v39 = vld [vmem:[%s7679_s3 + $0x410] sm:$0xff]  ;;  %v192_v46 = vld [vmem:[%s7679_s3 + $0x518] sm:$0xff] }
  0x31   :  { %v191_v41 = vld [vmem:[%s7679_s3 + $0x510] sm:$0xff]  ;;  %v177_v47 = vld [vmem:[%s7679_s3 + $0x4a0] sm:$0xff]  ;;  %v5585_v52 = vrot.slane %v583_v43, %v5261_v13  ;;  %v162_v56 = vld [vmem:[%s7679_s3 + $0x428] sm:$0xff] }
  0x32   :  { %4326 = vmatpush3.bf16.msra.mxu0 %v4325_v32  ;;  %v207_v32 = vld [vmem:[%s7679_s3 + $0x590] sm:$0xff]  ;;  %v209_v49 = vld [vmem:[%s7679_s3 + $0x5a0] sm:$0xff]  ;;  %v194_v59 = vld [vmem:[%s7679_s3 + $0x528] sm:$0xff] }
  0x33   :  { %4358 = vmatpush3.bf16.msra.mxu1 %v4357_v35  ;;  %4328 = vmatprep.subr.bf16.mxu0 %v4327_v36  ;;  %v4377_v35 = vpack.c.bf16 %v158_v26, %v157_v23  ;;  %v4409_v36 = vpack.c.bf16 %v190_v28, %v189_v27  ;;  %v4411_v44 = vpack.c.bf16 %v208_v34, %v207_v32  ;;  %v193_v57 = vld [vmem:[%s7679_s3 + $0x520] sm:$0xff]  ;;  %v179_v60 = vld [vmem:[%s7679_s3 + $0x4b0] sm:$0xff]  ;;  %v164_v4 = vld [vmem:[%s7679_s3 + $0x438] sm:$0xff] }
  0x34   :  { %4360 = vmatprep.subr.bf16.mxu1 %v4359_v40  ;;  %v160_v40 = vld [vmem:[%s7679_s3 + $0x418] sm:$0xff]  ;;  %v4417_v1 = vpack.c.bf16 %v194_v59, %v193_v57  ;;  %v195_v5 = vld [vmem:[%s7679_s3 + $0x530] sm:$0xff]  ;;  %v181_v8 = vld [vmem:[%s7679_s3 + $0x4c0] sm:$0xff] }
  0x35   :  { %v4381_v53 = vpack.c.bf16 %v160_v40, %v159_v39  ;;  %v196_v7 = vld [vmem:[%s7679_s3 + $0x538] sm:$0xff]  ;;  %v166_v17 = vld [vmem:[%s7679_s3 + $0x448] sm:$0xff]  ;;  %v197_v18 = vld [vmem:[%s7679_s3 + $0x540] sm:$0xff] }
  0x36   :  { %4330 = vmatpush3.bf16.msra.mxu0 %v4329_v48  ;;  %v178_v48 = vld [vmem:[%s7679_s3 + $0x4a8] sm:$0xff]  ;;  %v4421_v14 = vpack.c.bf16 %v196_v7, %v195_v5  ;;  %v183_v21 = vld [vmem:[%s7679_s3 + $0x4d0] sm:$0xff]  ;;  %v200_v32 = vld [vmem:[%s7679_s3 + $0x558] sm:$0xff] }
  0x37   :  { %4362 = vmatpush3.bf16.msra.mxu1 %v4361_v50  ;;  %4332 = vmatprep.subr.bf16.mxu0 %v4331_v51  ;;  %v210_v50 = vld [vmem:[%s7679_s3 + $0x5a8] sm:$0xff]  ;;  %v598_v51 = vcombine.high %v5564_v42, %v5564_v42  ;;  %v4383_v54 = vpack.c.bf16 %v178_v48, %v177_v47  ;;  %v215_v23 = vld [vmem:[%s7679_s3 + $0x5d0] sm:$0xff]  ;;  %v185_v34 = vld [vmem:[%s7679_s3 + $0x4e0] sm:$0xff] }
  0x38   :  { %4364 = vmatprep.subr.bf16.mxu1 %v4363_v55  ;;  %v161_v55 = vld [vmem:[%s7679_s3 + $0x420] sm:$0xff]  ;;  %v4415_v58 = vpack.c.bf16 %v210_v50, %v209_v49  ;;  %v198_v20 = vld [vmem:[%s7679_s3 + $0x548] sm:$0xff]  ;;  %v167_v28 = vld [vmem:[%s7679_s3 + $0x450] sm:$0xff] }
  0x39   :  { %v4385_v0 = vpack.c.bf16 %v162_v56, %v161_v55  ;;  %v4425_v26 = vpack.c.bf16 %v198_v20, %v197_v18  ;;  %v199_v30 = vld [vmem:[%s7679_s3 + $0x550] sm:$0xff]  ;;  %v218_v37 = vld [vmem:[%s7679_s3 + $0x5e8] sm:$0xff]  ;;  %v188_v49 = vld [vmem:[%s7679_s3 + $0x4f8] sm:$0xff] }
  0x3a   :  { %4334 = vmatpush3.bf16.msra.mxu0 %v4333_v61  ;;  %v180_v61 = vld [vmem:[%s7679_s3 + $0x4b8] sm:$0xff]  ;;  %v4429_v39 = vpack.c.bf16 %v200_v32, %v199_v30  ;;  %v170_v43 = vld [vmem:[%s7679_s3 + $0x468] sm:$0xff]  ;;  %v187_v48 = vld [vmem:[%s7679_s3 + $0x4f0] sm:$0xff] }
  0x3b   :  { %4366 = vmatpush3.bf16.msra.mxu1 %v4365_v62  ;;  %4336 = vmatprep.subr.bf16.mxu0 %v4335_v63  ;;  %v211_v62 = vld [vmem:[%s7679_s3 + $0x5b0] sm:$0xff]  ;;  %v212_v63 = vld [vmem:[%s7679_s3 + $0x5b8] sm:$0xff]  ;;  %v4387_v2 = vpack.c.bf16 %v180_v61, %v179_v60  ;;  %v202_v47 = vld [vmem:[%s7679_s3 + $0x568] sm:$0xff]  ;;  %v4403_v55 = vpack.c.bf16 %v188_v49, %v187_v48 }
  0x3c   :  { %4368 = vmatprep.subr.bf16.mxu1 %v4367_v3  ;;  %v163_v3 = vld [vmem:[%s7679_s3 + $0x430] sm:$0xff]  ;;  %v4419_v6 = vpack.c.bf16 %v212_v63, %v211_v62  ;;  %v172_v57 = vld [vmem:[%s7679_s3 + $0x478] sm:$0xff]  ;;  %v237_v60 = vld [vmem:[%s7679_s3 + $0x680] sm:$0xff] }
  0x3d   :  { %v4389_v12 = vpack.c.bf16 %v164_v4, %v163_v3  ;;  %v219_v50 = vld [vmem:[%s7679_s3 + $0x5f0] sm:$0xff]  ;;  %v204_v59 = vld [vmem:[%s7679_s3 + $0x578] sm:$0xff]  ;;  %v238_v61 = vld [vmem:[%s7679_s3 + $0x688] sm:$0xff] }
  0x3e   :  { %4338 = vmatpush3.bf16.msra.mxu0 %v4337_v9  ;;  %v182_v9 = vld [vmem:[%s7679_s3 + $0x4c8] sm:$0xff]  ;;  %v171_v56 = vld [vmem:[%s7679_s3 + $0x470] sm:$0xff]  ;;  %v269_v62 = vld [vmem:[%s7679_s3 + $0x780] sm:$0xff]  ;;  %v4439_v3 = vpack.c.bf16 %v238_v61, %v237_v60 }
  0x3f   :  { %4370 = vmatpush3.bf16.msra.mxu1 %v4369_v10  ;;  %4340 = vmatprep.subr.bf16.mxu0 %v4339_v11  ;;  %v213_v10 = vld [vmem:[%s7679_s3 + $0x5c0] sm:$0xff]  ;;  %v214_v11 = vld [vmem:[%s7679_s3 + $0x5c8] sm:$0xff]  ;;  %v4391_v15 = vpack.c.bf16 %v182_v9, %v181_v8  ;;  %v239_v9 = vld [vmem:[%s7679_s3 + $0x690] sm:$0xff] }
  0x40   :  { %4372 = vmatprep.subr.bf16.mxu1 %v4371_v16  ;;  %v165_v16 = vld [vmem:[%s7679_s3 + $0x440] sm:$0xff]  ;;  %v4423_v19 = vpack.c.bf16 %v214_v11, %v213_v10  ;;  %v270_v63 = vld [vmem:[%s7679_s3 + $0x788] sm:$0xff]  ;;  %v240_v10 = vld [vmem:[%s7679_s3 + $0x698] sm:$0xff] }
  0x41   :  { %v221_v4 = vld [vmem:[%s7679_s3 + $0x600] sm:$0xff]  ;;  %v222_v5 = vld [vmem:[%s7679_s3 + $0x608] sm:$0xff]  ;;  %v4471_v7 = vpack.c.bf16 %v270_v63, %v269_v62  ;;  %v4443_v18 = vpack.c.bf16 %v240_v10, %v239_v9  ;;  %v224_v20 = vld [vmem:[%s7679_s3 + $0x618] sm:$0xff] }
  0x42   :  { %4342 = vmatpush3.bf16.msra.mxu0 %v4341_v22  ;;  %v184_v22 = vld [vmem:[%s7679_s3 + $0x4d8] sm:$0xff]  ;;  %v254_v8 = vld [vmem:[%s7679_s3 + $0x708] sm:$0xff]  ;;  %v259_v48 = vld [vmem:[%s7679_s3 + $0x730] sm:$0xff] }
  0x43   :  { %4374 = vmatpush3.bf16.msra.mxu1 %v4373_v24  ;;  %4376 = vmatprep.subr.bf16.mxu0 %v4375_v25  ;;  %v216_v24 = vld [vmem:[%s7679_s3 + $0x5d8] sm:$0xff]  ;;  %v4393_v25 = vpack.c.bf16 %v166_v17, %v165_v16  ;;  %v4395_v27 = vpack.c.bf16 %v184_v22, %v183_v21  ;;  %v4441_v16 = vpack.c.bf16 %v222_v5, %v221_v4  ;;  %v255_v21 = vld [vmem:[%s7679_s3 + $0x710] sm:$0xff]  ;;  %v262_v61 = vld [vmem:[%s7679_s3 + $0x748] sm:$0xff] }
  0x44   :  { %4408 = vmatprep.subr.bf16.mxu1 %v4407_v29  ;;  %v168_v29 = vld [vmem:[%s7679_s3 + $0x458] sm:$0xff]  ;;  %v4427_v31 = vpack.c.bf16 %v216_v24, %v215_v23  ;;  %v241_v24 = vld [vmem:[%s7679_s3 + $0x6a0] sm:$0xff]  ;;  %v247_v62 = vld [vmem:[%s7679_s3 + $0x6d0] sm:$0xff] }
  0x45   :  { %922 = vmatmul.mubr.f32.vlgmr.msra.gmra.mrb[2].mxu0 %v5422_v33  ;;  %v4413_v33 = vpack.c.bf16 %v192_v46, %v191_v41  ;;  %v169_v41 = vld [vmem:[%s7679_s3 + $0x460] sm:$0xff]  ;;  %v256_v23 = vld [vmem:[%s7679_s3 + $0x718] sm:$0xff]  ;;  %v231_v5 = vld [vmem:[%s7679_s3 + $0x650] sm:$0xff] }
  0x46   :  { %4378 = vmatpush3.bf16.msra.mxu0 %v4377_v35  ;;  %992 = vmatmul.mubr.f32.vlgmr.msra.gmra.mrb[2].mxu1 %v5445_v45  ;;  %v599_v45 = vcombine.high %v5585_v52, %v5585_v52  ;;  %v186_v35 = vld [vmem:[%s7679_s3 + $0x4e8] sm:$0xff]  ;;  %v248_v63 = vld [vmem:[%s7679_s3 + $0x6d8] sm:$0xff]  ;;  %v249_v10 = vld [vmem:[%s7679_s3 + $0x6e0] sm:$0xff] }
  0x47   :  { %4410 = vmatpush3.bf16.msra.mxu1 %v4409_v36  ;;  %4380 = vmatprep.subr.bf16.mxu0 %v4379_v38  ;;  %v217_v36 = vld [vmem:[%s7679_s3 + $0x5e0] sm:$0xff]  ;;  %v4397_v38 = vpack.c.bf16 %v168_v29, %v167_v28  ;;  %v4399_v40 = vpack.c.bf16 %v186_v35, %v185_v34  ;;  %v274_v28 = vld [vmem:[%s7679_s3 + $0x7a8] sm:$0xff]  ;;  %v4459_v4 = vpack.c.bf16 %v248_v63, %v247_v62  ;;  %v264_v9 = vld [vmem:[%s7679_s3 + $0x758] sm:$0xff] }
  0x48   :  { %4412 = vmatprep.subr.bf16.mxu1 %v4411_v44  ;;  %1061 = vmatprep.mubr.f32.mxu0 %v598_v51  ;;  %v201_v44 = vld [vmem:[%s7679_s3 + $0x560] sm:$0xff]  ;;  %v4431_v46 = vpack.c.bf16 %v218_v37, %v217_v36  ;;  %v220_v51 = vld [vmem:[%s7679_s3 + $0x5f8] sm:$0xff]  ;;  %v226_v34 = vld [vmem:[%s7679_s3 + $0x628] sm:$0xff] }
  0x49   :  { %1131 = vmatprep.mubr.f32.mxu1 %v599_v45  ;;  %v203_v45 = vld [vmem:[%s7679_s3 + $0x570] sm:$0xff]  ;;  %v257_v35 = vld [vmem:[%s7679_s3 + $0x720] sm:$0xff] }
  0x4a   :  { %4382 = vmatpush3.bf16.msra.mxu0 %v4381_v53  ;;  %v4401_v53 = vpack.c.bf16 %v170_v43, %v169_v41  ;;  %v243_v37 = vld [vmem:[%s7679_s3 + $0x6b0] sm:$0xff] }
  0x4b   :  { %4414 = vmatpush3.bf16.msra.mxu1 %v4413_v33  ;;  %4384 = vmatprep.subr.bf16.mxu0 %v4383_v54  ;;  %v24_v33 = vld [vmem:[%s7676_s0 + $0x18] sm:$0xff]  ;;  %v4433_v54 = vpack.c.bf16 %v202_v47, %v201_v44  ;;  %v319_v62 = vld [vmem:[%s7679_s3 + $0x910] sm:$0xff] }
  0x4c   :  { %4416 = vmatprep.subr.bf16.mxu1 %v4415_v58  ;;  %v4435_v58 = vpack.c.bf16 %v220_v51, %v219_v50  ;;  %v5756_v11 = vrot.slane %v24_v33, %v5261_v13  ;;  %v228_v47 = vld [vmem:[%s7679_s3 + $0x638] sm:$0xff]  ;;  %v245_v51 = vld [vmem:[%s7679_s3 + $0x6c0] sm:$0xff] }
  0x4d   :  { %v260_v50 = vld [vmem:[%s7679_s3 + $0x738] sm:$0xff] }
  0x4e   :  { %4386 = vmatpush3.bf16.msra.mxu0 %v4385_v0  ;;  %v600_v0 = vcombine.high %v24_v33, %v24_v33  ;;  %v277_v33 = vld [vmem:[%s7679_s3 + $0x7c0] sm:$0xff] }
  0x4f   :  { %4418 = vmatpush3.bf16.msra.mxu1 %v4417_v1  ;;  %4388 = vmatprep.subr.bf16.mxu0 %v4387_v2  ;;  %v4405_v1 = vpack.c.bf16 %v172_v57, %v171_v56  ;;  %v4437_v2 = vpack.c.bf16 %v204_v59, %v203_v45  ;;  %v4485_v56 = vpack.c.bf16 %v260_v50, %v259_v48  ;;  %v229_v45 = vld [vmem:[%s7679_s3 + $0x640] sm:$0xff]  ;;  %v286_v48 = vld [vmem:[%s7679_s3 + $0x808] sm:$0xff] }
  0x50   :  { %4420 = vmatprep.subr.bf16.mxu1 %v4419_v6  ;;  %v253_v6 = vld [vmem:[%s7679_s3 + $0x700] sm:$0xff] }
  0x51   :  { %v4473_v17 = vpack.c.bf16 %v254_v8, %v253_v6  ;;  %v261_v59 = vld [vmem:[%s7679_s3 + $0x740] sm:$0xff]  ;;  %v232_v6 = vld [vmem:[%s7679_s3 + $0x658] sm:$0xff] }
  0x52   :  { %4390 = vmatpush3.bf16.msra.mxu0 %v4389_v12  ;;  %v271_v12 = vld [vmem:[%s7679_s3 + $0x790] sm:$0xff] }
  0x53   :  { %4422 = vmatpush3.bf16.msra.mxu1 %v4421_v14  ;;  %4392 = vmatprep.subr.bf16.mxu0 %v4391_v15  ;;  %v272_v14 = vld [vmem:[%s7679_s3 + $0x798] sm:$0xff]  ;;  %v5765_v15 = vrot.slane %v600_v0, %v5261_v13  ;;  %v279_v0 = vld [vmem:[%s7679_s3 + $0x7d0] sm:$0xff] }
  0x54   :  { %4424 = vmatprep.subr.bf16.mxu1 %v4423_v19  ;;  %v223_v19 = vld [vmem:[%s7679_s3 + $0x610] sm:$0xff]  ;;  %v4475_v22 = vpack.c.bf16 %v272_v14, %v271_v12  ;;  %v250_v12 = vld [vmem:[%s7679_s3 + $0x6e8] sm:$0xff]  ;;  %v281_v14 = vld [vmem:[%s7679_s3 + $0x7e0] sm:$0xff] }
  0x55   :  { %v616_v29 = vcombine.high %v5765_v15, %v5765_v15  ;;  %v4445_v30 = vpack.c.bf16 %v224_v20, %v223_v19  ;;  %v4463_v19 = vpack.c.bf16 %v250_v12, %v249_v10  ;;  %v233_v20 = vld [vmem:[%s7679_s3 + $0x660] sm:$0xff]  ;;  %v290_v10 = vld [vmem:[%s7679_s3 + $0x828] sm:$0xff] }
  0x56   :  { %4394 = vmatpush3.bf16.msra.mxu0 %v4393_v25  ;;  %v242_v25 = vld [vmem:[%s7679_s3 + $0x6a8] sm:$0xff]  ;;  %v321_v12 = vld [vmem:[%s7679_s3 + $0x920] sm:$0xff] }
  0x57   :  { %4426 = vmatpush3.bf16.msra.mxu1 %v4425_v26  ;;  %4396 = vmatprep.subr.bf16.mxu0 %v4395_v27  ;;  %v615_v26 = vcombine.high %v5756_v11, %v5756_v11  ;;  %v273_v27 = vld [vmem:[%s7679_s3 + $0x7a0] sm:$0xff]  ;;  %v4447_v32 = vpack.c.bf16 %v242_v25, %v241_v24  ;;  %v266_v24 = vld [vmem:[%s7679_s3 + $0x768] sm:$0xff]  ;;  %v251_v25 = vld [vmem:[%s7679_s3 + $0x6f0] sm:$0xff] }
  0x58   :  { %4428 = vmatprep.subr.bf16.mxu1 %v4427_v31  ;;  %v4477_v31 = vpack.c.bf16 %v256_v23, %v255_v21  ;;  %v4479_v36 = vpack.c.bf16 %v274_v28, %v273_v27  ;;  %v234_v21 = vld [vmem:[%s7679_s3 + $0x668] sm:$0xff]  ;;  %v283_v27 = vld [vmem:[%s7679_s3 + $0x7f0] sm:$0xff]  ;;  %v284_v28 = vld [vmem:[%s7679_s3 + $0x7f8] sm:$0xff] }
  0x5a   :  { %4398 = vmatpush3.bf16.msra.mxu0 %v4397_v38  ;;  %v244_v38 = vld [vmem:[%s7679_s3 + $0x6b8] sm:$0xff] }
  0x5b   :  { %4430 = vmatpush3.bf16.msra.mxu1 %v4429_v39  ;;  %4400 = vmatprep.subr.bf16.mxu0 %v4399_v40  ;;  %v275_v39 = vld [vmem:[%s7679_s3 + $0x7b0] sm:$0xff]  ;;  %v276_v40 = vld [vmem:[%s7679_s3 + $0x7b8] sm:$0xff]  ;;  %v4451_v44 = vpack.c.bf16 %v244_v38, %v243_v37  ;;  %v301_v37 = vld [vmem:[%s7679_s3 + $0x880] sm:$0xff] }
  0x5c   :  { %4432 = vmatprep.subr.bf16.mxu1 %v4431_v46  ;;  %v227_v46 = vld [vmem:[%s7679_s3 + $0x630] sm:$0xff]  ;;  %v4483_v49 = vpack.c.bf16 %v276_v40, %v275_v39  ;;  %v302_v38 = vld [vmem:[%s7679_s3 + $0x888] sm:$0xff]  ;;  %v333_v39 = vld [vmem:[%s7679_s3 + $0x980] sm:$0xff] }
  0x5d   :  { %v334_v40 = vld [vmem:[%s7679_s3 + $0x988] sm:$0xff] }
  0x5e   :  { %4402 = vmatpush3.bf16.msra.mxu0 %v4401_v53  ;;  %v246_v53 = vld [vmem:[%s7679_s3 + $0x6c8] sm:$0xff]  ;;  %v4535_v50 = vpack.c.bf16 %v334_v40, %v333_v39  ;;  %v311_v39 = vld [vmem:[%s7679_s3 + $0x8d0] sm:$0xff]  ;;  %v312_v40 = vld [vmem:[%s7679_s3 + $0x8d8] sm:$0xff] }
  0x5f   :  { %4434 = vmatpush3.bf16.msra.mxu1 %v4433_v54  ;;  %4404 = vmatprep.subr.bf16.mxu0 %v4403_v55  ;;  %v278_v54 = vld [vmem:[%s7679_s3 + $0x7c8] sm:$0xff]  ;;  %v4453_v55 = vpack.c.bf16 %v228_v47, %v227_v46  ;;  %v4455_v57 = vpack.c.bf16 %v246_v53, %v245_v51  ;;  %v4503_v46 = vpack.c.bf16 %v302_v38, %v301_v37  ;;  %v285_v47 = vld [vmem:[%s7679_s3 + $0x800] sm:$0xff]  ;;  %v303_v53 = vld [vmem:[%s7679_s3 + $0x890] sm:$0xff] }
  0x60   :  { %4436 = vmatprep.subr.bf16.mxu1 %v4435_v58  ;;  %v230_v58 = vld [vmem:[%s7679_s3 + $0x648] sm:$0xff]  ;;  %v4487_v60 = vpack.c.bf16 %v278_v54, %v277_v33  ;;  %v304_v33 = vld [vmem:[%s7679_s3 + $0x898] sm:$0xff] }
  0x61   :  { %v318_v51 = vld [vmem:[%s7679_s3 + $0x908] sm:$0xff] }
  0x62   :  { %4406 = vmatpush3.bf16.msra.mxu0 %v4405_v1  ;;  %v280_v1 = vld [vmem:[%s7679_s3 + $0x7d8] sm:$0xff]  ;;  %v326_v38 = vld [vmem:[%s7679_s3 + $0x948] sm:$0xff] }
  0x63   :  { %4438 = vmatpush3.bf16.msra.mxu1 %v4437_v2  ;;  %4440 = vmatprep.subr.bf16.mxu0 %v4439_v3  ;;  %v4457_v2 = vpack.c.bf16 %v230_v58, %v229_v45  ;;  %v4489_v3 = vpack.c.bf16 %v262_v61, %v261_v59  ;;  %v4491_v8 = vpack.c.bf16 %v280_v1, %v279_v0  ;;  %v288_v61 = vld [vmem:[%s7679_s3 + $0x818] sm:$0xff]  ;;  %v305_v1 = vld [vmem:[%s7679_s3 + $0x8a0] sm:$0xff] }
  0x64   :  { %4472 = vmatprep.subr.bf16.mxu1 %v4471_v7  ;;  %v263_v7 = vld [vmem:[%s7679_s3 + $0x750] sm:$0xff]  ;;  %v4505_v45 = vpack.c.bf16 %v286_v48, %v285_v47  ;;  %v4507_v59 = vpack.c.bf16 %v304_v33, %v303_v53  ;;  %v320_v0 = vld [vmem:[%s7679_s3 + $0x918] sm:$0xff]  ;;  %v4523_v47 = vpack.c.bf16 %v312_v40, %v311_v39  ;;  %v313_v33 = vld [vmem:[%s7679_s3 + $0x8e0] sm:$0xff] }
  0x65   :  { %1062 = vmatmul.mubr.f32.vlgmr.msra.gmra.mrb[4].mxu0 %v5564_v42  ;;  %v225_v42 = vld [vmem:[%s7679_s3 + $0x620] sm:$0xff]  ;;  %v295_v48 = vld [vmem:[%s7679_s3 + $0x850] sm:$0xff]  ;;  %v328_v53 = vld [vmem:[%s7679_s3 + $0x958] sm:$0xff] }
  0x66   :  { %4442 = vmatpush3.bf16.msra.mxu0 %v4441_v16  ;;  %1132 = vmatmul.mubr.f32.vlgmr.msra.gmra.mrb[4].mxu1 %v5585_v52  ;;  %v258_v52 = vld [vmem:[%s7679_s3 + $0x728] sm:$0xff]  ;;  %v4449_v41 = vpack.c.bf16 %v226_v34, %v225_v42  ;;  %v235_v42 = vld [vmem:[%s7679_s3 + $0x670] sm:$0xff]  ;;  %v236_v34 = vld [vmem:[%s7679_s3 + $0x678] sm:$0xff] }
  0x67   :  { %4474 = vmatpush3.bf16.msra.mxu1 %v4473_v17  ;;  %4444 = vmatprep.subr.bf16.mxu0 %v4443_v18  ;;  %v4481_v43 = vpack.c.bf16 %v258_v52, %v257_v35  ;;  %v282_v16 = vld [vmem:[%s7679_s3 + $0x7e8] sm:$0xff]  ;;  %v4461_v17 = vpack.c.bf16 %v232_v6, %v231_v5  ;;  %v4493_v18 = vpack.c.bf16 %v264_v9, %v263_v7  ;;  %v267_v35 = vld [vmem:[%s7679_s3 + $0x770] sm:$0xff]  ;;  %v268_v52 = vld [vmem:[%s7679_s3 + $0x778] sm:$0xff] }
  0x68   :  { %4476 = vmatprep.subr.bf16.mxu1 %v4475_v22  ;;  %1201 = vmatprep.mubr.f32.mxu0 %v615_v26  ;;  %v265_v22 = vld [vmem:[%s7679_s3 + $0x760] sm:$0xff]  ;;  %v4495_v23 = vpack.c.bf16 %v282_v16, %v281_v14  ;;  %v252_v26 = vld [vmem:[%s7679_s3 + $0x6f8] sm:$0xff]  ;;  %v338_v5 = vld [vmem:[%s7679_s3 + $0x9a8] sm:$0xff] }
  0x69   :  { %1271 = vmatprep.mubr.f32.mxu1 %v616_v29  ;;  %v4465_v29 = vpack.c.bf16 %v234_v21, %v233_v20  ;;  %v307_v16 = vld [vmem:[%s7679_s3 + $0x8b0] sm:$0xff] }
  0x6a   :  { %4446 = vmatpush3.bf16.msra.mxu0 %v4445_v30  ;;  %v25_v30 = vld [vmem:[%s7676_s0 + $0x20] sm:$0xff]  ;;  %v383_v39 = vld [vmem:[%s7679_s3 + $0xb10] sm:$0xff] }
  0x6b   :  { %4478 = vmatpush3.bf16.msra.mxu1 %v4477_v31  ;;  %4448 = vmatprep.subr.bf16.mxu0 %v4447_v32  ;;  %v4497_v31 = vpack.c.bf16 %v266_v24, %v265_v22  ;;  %v4467_v32 = vpack.c.bf16 %v252_v26, %v251_v25  ;;  %v5963_v54 = vrot.slane %v25_v30, %v5261_v13  ;;  %v292_v24 = vld [vmem:[%s7679_s3 + $0x838] sm:$0xff]  ;;  %v323_v25 = vld [vmem:[%s7679_s3 + $0x930] sm:$0xff] }
  0x6c   :  { %4480 = vmatprep.subr.bf16.mxu1 %v4479_v36  ;;  %v4499_v36 = vpack.c.bf16 %v284_v28, %v283_v27  ;;  %v324_v27 = vld [vmem:[%s7679_s3 + $0x938] sm:$0xff]  ;;  %v309_v28 = vld [vmem:[%s7679_s3 + $0x8c0] sm:$0xff] }
  0x6e   :  { %4450 = vmatpush3.bf16.msra.mxu0 %v4449_v41  ;;  %v617_v41 = vcombine.high %v25_v30, %v25_v30  ;;  %v341_v30 = vld [vmem:[%s7679_s3 + $0x9c0] sm:$0xff] }
  0x6f   :  { %4482 = vmatpush3.bf16.msra.mxu1 %v4481_v43  ;;  %4452 = vmatprep.subr.bf16.mxu0 %v4451_v44  ;;  %v4469_v43 = vpack.c.bf16 %v236_v34, %v235_v42  ;;  %v4501_v44 = vpack.c.bf16 %v268_v52, %v267_v35  ;;  %v4549_v42 = vpack.c.bf16 %v324_v27, %v323_v25  ;;  %v293_v35 = vld [vmem:[%s7679_s3 + $0x840] sm:$0xff]  ;;  %v350_v25 = vld [vmem:[%s7679_s3 + $0xa08] sm:$0xff] }
  0x70   :  { %4484 = vmatprep.subr.bf16.mxu1 %v4483_v49  ;;  %v317_v49 = vld [vmem:[%s7679_s3 + $0x900] sm:$0xff] }
  0x71   :  { %v4537_v58 = vpack.c.bf16 %v318_v51, %v317_v49  ;;  %v325_v52 = vld [vmem:[%s7679_s3 + $0x940] sm:$0xff]  ;;  %v296_v49 = vld [vmem:[%s7679_s3 + $0x858] sm:$0xff] }
  0x72   :  { %4454 = vmatpush3.bf16.msra.mxu0 %v4453_v55  ;;  %v335_v55 = vld [vmem:[%s7679_s3 + $0x990] sm:$0xff] }
  0x73   :  { %4486 = vmatpush3.bf16.msra.mxu1 %v4485_v56  ;;  %4456 = vmatprep.subr.bf16.mxu0 %v4455_v57  ;;  %v336_v56 = vld [vmem:[%s7679_s3 + $0x998] sm:$0xff]  ;;  %v5972_v57 = vrot.slane %v617_v41, %v5261_v13  ;;  %v343_v41 = vld [vmem:[%s7679_s3 + $0x9d0] sm:$0xff] }
  0x74   :  { %4488 = vmatprep.subr.bf16.mxu1 %v4487_v60  ;;  %v287_v60 = vld [vmem:[%s7679_s3 + $0x810] sm:$0xff]  ;;  %v4539_v63 = vpack.c.bf16 %v336_v56, %v335_v55  ;;  %v314_v55 = vld [vmem:[%s7679_s3 + $0x8e8] sm:$0xff]  ;;  %v345_v56 = vld [vmem:[%s7679_s3 + $0x9e0] sm:$0xff] }
  0x75   :  { %v633_v6 = vcombine.high %v5972_v57, %v5972_v57  ;;  %v4509_v7 = vpack.c.bf16 %v288_v61, %v287_v60  ;;  %v4527_v60 = vpack.c.bf16 %v314_v55, %v313_v33  ;;  %v297_v61 = vld [vmem:[%s7679_s3 + $0x860] sm:$0xff]  ;;  %v354_v33 = vld [vmem:[%s7679_s3 + $0xa28] sm:$0xff] }
  0x76   :  { %4458 = vmatpush3.bf16.msra.mxu0 %v4457_v2  ;;  %v306_v2 = vld [vmem:[%s7679_s3 + $0x8a8] sm:$0xff]  ;;  %v385_v55 = vld [vmem:[%s7679_s3 + $0xb20] sm:$0xff] }
  0x77   :  { %4490 = vmatpush3.bf16.msra.mxu1 %v4489_v3  ;;  %4460 = vmatprep.subr.bf16.mxu0 %v4459_v4  ;;  %v632_v3 = vcombine.high %v5963_v54, %v5963_v54  ;;  %v337_v4 = vld [vmem:[%s7679_s3 + $0x9a0] sm:$0xff]  ;;  %v4511_v9 = vpack.c.bf16 %v306_v2, %v305_v1  ;;  %v330_v1 = vld [vmem:[%s7679_s3 + $0x968] sm:$0xff]  ;;  %v315_v2 = vld [vmem:[%s7679_s3 + $0x8f0] sm:$0xff] }
  0x78   :  { %4492 = vmatprep.subr.bf16.mxu1 %v4491_v8  ;;  %v4541_v8 = vpack.c.bf16 %v320_v0, %v319_v62  ;;  %v4543_v14 = vpack.c.bf16 %v338_v5, %v337_v4  ;;  %v298_v62 = vld [vmem:[%s7679_s3 + $0x868] sm:$0xff]  ;;  %v347_v4 = vld [vmem:[%s7679_s3 + $0x9f0] sm:$0xff]  ;;  %v348_v5 = vld [vmem:[%s7679_s3 + $0x9f8] sm:$0xff] }
  0x7a   :  { %4462 = vmatpush3.bf16.msra.mxu0 %v4461_v17  ;;  %v308_v17 = vld [vmem:[%s7679_s3 + $0x8b8] sm:$0xff] }
  0x7b   :  { %4494 = vmatpush3.bf16.msra.mxu1 %v4493_v18  ;;  %4464 = vmatprep.subr.bf16.mxu0 %v4463_v19  ;;  %v339_v18 = vld [vmem:[%s7679_s3 + $0x9b0] sm:$0xff]  ;;  %v340_v19 = vld [vmem:[%s7679_s3 + $0x9b8] sm:$0xff]  ;;  %v4515_v22 = vpack.c.bf16 %v308_v17, %v307_v16  ;;  %v365_v16 = vld [vmem:[%s7679_s3 + $0xa80] sm:$0xff] }
  0x7c   :  { %4496 = vmatprep.subr.bf16.mxu1 %v4495_v23  ;;  %v291_v23 = vld [vmem:[%s7679_s3 + $0x830] sm:$0xff]  ;;  %v4547_v26 = vpack.c.bf16 %v340_v19, %v339_v18  ;;  %v366_v17 = vld [vmem:[%s7679_s3 + $0xa88] sm:$0xff]  ;;  %v397_v18 = vld [vmem:[%s7679_s3 + $0xb80] sm:$0xff] }
  0x7d   :  { %v398_v19 = vld [vmem:[%s7679_s3 + $0xb88] sm:$0xff] }
  0x7e   :  { %4466 = vmatpush3.bf16.msra.mxu0 %v4465_v29  ;;  %v310_v29 = vld [vmem:[%s7679_s3 + $0x8c8] sm:$0xff]  ;;  %v4599_v27 = vpack.c.bf16 %v398_v19, %v397_v18 }
  0x7f   :  { %4498 = vmatpush3.bf16.msra.mxu1 %v4497_v31  ;;  %4468 = vmatprep.subr.bf16.mxu0 %v4467_v32  ;;  %v342_v31 = vld [vmem:[%s7679_s3 + $0x9c8] sm:$0xff]  ;;  %v4517_v32 = vpack.c.bf16 %v292_v24, %v291_v23  ;;  %v4519_v34 = vpack.c.bf16 %v310_v29, %v309_v28  ;;  %v4567_v23 = vpack.c.bf16 %v366_v17, %v365_v16  ;;  %v349_v24 = vld [vmem:[%s7679_s3 + $0xa00] sm:$0xff]  ;;  %v367_v29 = vld [vmem:[%s7679_s3 + $0xa90] sm:$0xff] }
  0x80   :  { %4500 = vmatprep.subr.bf16.mxu1 %v4499_v36  ;;  %v294_v36 = vld [vmem:[%s7679_s3 + $0x848] sm:$0xff]  ;;  %v4551_v37 = vpack.c.bf16 %v342_v31, %v341_v30  ;;  %v368_v30 = vld [vmem:[%s7679_s3 + $0xa98] sm:$0xff] }
  0x81   :  { %v382_v28 = vld [vmem:[%s7679_s3 + $0xb08] sm:$0xff] }
  0x82   :  { %4470 = vmatpush3.bf16.msra.mxu0 %v4469_v43  ;;  %v344_v43 = vld [vmem:[%s7679_s3 + $0x9d8] sm:$0xff] }
  0x83   :  { %4502 = vmatpush3.bf16.msra.mxu1 %v4501_v44  ;;  %4504 = vmatprep.subr.bf16.mxu0 %v4503_v46  ;;  %v4521_v44 = vpack.c.bf16 %v294_v36, %v293_v35  ;;  %v4553_v46 = vpack.c.bf16 %v326_v38, %v325_v52  ;;  %v4555_v51 = vpack.c.bf16 %v344_v43, %v343_v41  ;;  %v352_v38 = vld [vmem:[%s7679_s3 + $0xa18] sm:$0xff]  ;;  %v369_v43 = vld [vmem:[%s7679_s3 + $0xaa0] sm:$0xff] }
  0x84   :  { %4536 = vmatprep.subr.bf16.mxu1 %v4535_v50  ;;  %v327_v50 = vld [vmem:[%s7679_s3 + $0x950] sm:$0xff]  ;;  %v4569_v35 = vpack.c.bf16 %v350_v25, %v349_v24  ;;  %v4571_v52 = vpack.c.bf16 %v368_v30, %v367_v29  ;;  %v384_v41 = vld [vmem:[%s7679_s3 + $0xb18] sm:$0xff] }
  0x85   :  { %1202 = vmatmul.mubr.f32.vlgmr.msra.gmra.mrb[6].mxu0 %v5756_v11  ;;  %v289_v11 = vld [vmem:[%s7679_s3 + $0x820] sm:$0xff] }
  0x86   :  { %4506 = vmatpush3.bf16.msra.mxu0 %v4505_v45  ;;  %1272 = vmatmul.mubr.f32.vlgmr.msra.gmra.mrb[6].mxu1 %v5765_v15  ;;  %v322_v15 = vld [vmem:[%s7679_s3 + $0x928] sm:$0xff]  ;;  %v4513_v20 = vpack.c.bf16 %v290_v10, %v289_v11  ;;  %v299_v11 = vld [vmem:[%s7679_s3 + $0x870] sm:$0xff]  ;;  %v300_v10 = vld [vmem:[%s7679_s3 + $0x878] sm:$0xff] }
  0x87   :  { %4538 = vmatpush3.bf16.msra.mxu1 %v4537_v58  ;;  %4508 = vmatprep.subr.bf16.mxu0 %v4507_v59  ;;  %v4545_v21 = vpack.c.bf16 %v322_v15, %v321_v12  ;;  %v346_v45 = vld [vmem:[%s7679_s3 + $0x9e8] sm:$0xff]  ;;  %v4525_v58 = vpack.c.bf16 %v296_v49, %v295_v48  ;;  %v4557_v59 = vpack.c.bf16 %v328_v53, %v327_v50  ;;  %v331_v12 = vld [vmem:[%s7679_s3 + $0x970] sm:$0xff]  ;;  %v332_v15 = vld [vmem:[%s7679_s3 + $0x978] sm:$0xff] }
  0x88   :  { %4540 = vmatprep.subr.bf16.mxu1 %v4539_v63  ;;  %1341 = vmatprep.mubr.f32.mxu0 %v632_v3  ;;  %v329_v63 = vld [vmem:[%s7679_s3 + $0x960] sm:$0xff]  ;;  %v4559_v0 = vpack.c.bf16 %v346_v45, %v345_v56  ;;  %v316_v3 = vld [vmem:[%s7679_s3 + $0x8f8] sm:$0xff]  ;;  %v402_v48 = vld [vmem:[%s7679_s3 + $0xba8] sm:$0xff] }
  0x89   :  { %1411 = vmatprep.mubr.f32.mxu1 %v633_v6  ;;  %v4529_v6 = vpack.c.bf16 %v298_v62, %v297_v61  ;;  %v371_v45 = vld [vmem:[%s7679_s3 + $0xab0] sm:$0xff] }
  0x8a   :  { %4510 = vmatpush3.bf16.msra.mxu0 %v4509_v7  ;;  %v26_v7 = vld [vmem:[%s7676_s0 + $0x28] sm:$0xff] }
  0x8b   :  { %4542 = vmatpush3.bf16.msra.mxu1 %v4541_v8  ;;  %4512 = vmatprep.subr.bf16.mxu0 %v4511_v9  ;;  %v4561_v8 = vpack.c.bf16 %v330_v1, %v329_v63  ;;  %v4531_v9 = vpack.c.bf16 %v316_v3, %v315_v2  ;;  %v6170_v31 = vrot.slane %v26_v7, %v5261_v13  ;;  %v356_v1 = vld [vmem:[%s7679_s3 + $0xa38] sm:$0xff]  ;;  %v387_v2 = vld [vmem:[%s7679_s3 + $0xb30] sm:$0xff] }
  0x8c   :  { %4544 = vmatprep.subr.bf16.mxu1 %v4543_v14  ;;  %v4563_v14 = vpack.c.bf16 %v348_v5, %v347_v4  ;;  %v388_v4 = vld [vmem:[%s7679_s3 + $0xb38] sm:$0xff]  ;;  %v373_v5 = vld [vmem:[%s7679_s3 + $0xac0] sm:$0xff] }
  0x8e   :  { %4514 = vmatpush3.bf16.msra.mxu0 %v4513_v20  ;;  %v634_v20 = vcombine.high %v26_v7, %v26_v7  ;;  %v405_v7 = vld [vmem:[%s7679_s3 + $0xbc0] sm:$0xff] }
  0x8f   :  { %4546 = vmatpush3.bf16.msra.mxu1 %v4545_v21  ;;  %4516 = vmatprep.subr.bf16.mxu0 %v4515_v22  ;;  %v4533_v21 = vpack.c.bf16 %v300_v10, %v299_v11  ;;  %v4565_v22 = vpack.c.bf16 %v332_v15, %v331_v12  ;;  %v357_v11 = vld [vmem:[%s7679_s3 + $0xa40] sm:$0xff]  ;;  %v4613_v10 = vpack.c.bf16 %v388_v4, %v387_v2 }
  0x90   :  { %4548 = vmatprep.subr.bf16.mxu1 %v4547_v26  ;;  %v381_v26 = vld [vmem:[%s7679_s3 + $0xb00] sm:$0xff] }
  0x91   :  { %v4601_v36 = vpack.c.bf16 %v382_v28, %v381_v26  ;;  %v389_v15 = vld [vmem:[%s7679_s3 + $0xb40] sm:$0xff] }
  0x92   :  { %4518 = vmatpush3.bf16.msra.mxu0 %v4517_v32  ;;  %v399_v32 = vld [vmem:[%s7679_s3 + $0xb90] sm:$0xff] }
  0x93   :  { %4550 = vmatpush3.bf16.msra.mxu1 %v4549_v42  ;;  %4520 = vmatprep.subr.bf16.mxu0 %v4519_v34  ;;  %v400_v42 = vld [vmem:[%s7679_s3 + $0xb98] sm:$0xff]  ;;  %v6179_v34 = vrot.slane %v634_v20, %v5261_v13 }
  0x94   :  { %4552 = vmatprep.subr.bf16.mxu1 %v4551_v37  ;;  %v351_v37 = vld [vmem:[%s7679_s3 + $0xa10] sm:$0xff]  ;;  %v4603_v40 = vpack.c.bf16 %v400_v42, %v399_v32 }
  0x95   :  { %v650_v49 = vcombine.high %v6179_v34, %v6179_v34  ;;  %v4573_v50 = vpack.c.bf16 %v352_v38, %v351_v37 }
  0x96   :  { %4522 = vmatpush3.bf16.msra.mxu0 %v4521_v44  ;;  %v370_v44 = vld [vmem:[%s7679_s3 + $0xaa8] sm:$0xff] }
  0x97   :  { %4554 = vmatpush3.bf16.msra.mxu1 %v4553_v46  ;;  %4524 = vmatprep.subr.bf16.mxu0 %v4523_v47  ;;  %v649_v46 = vcombine.high %v6170_v31, %v6170_v31  ;;  %v401_v47 = vld [vmem:[%s7679_s3 + $0xba0] sm:$0xff]  ;;  %v4575_v53 = vpack.c.bf16 %v370_v44, %v369_v43 }
  0x98   :  { %4556 = vmatprep.subr.bf16.mxu1 %v4555_v51  ;;  %v4605_v51 = vpack.c.bf16 %v384_v41, %v383_v39  ;;  %v4607_v56 = vpack.c.bf16 %v402_v48, %v401_v47 }
  0x9a   :  { %4526 = vmatpush3.bf16.msra.mxu0 %v4525_v58  ;;  %v372_v58 = vld [vmem:[%s7679_s3 + $0xab8] sm:$0xff] }
  0x9b   :  { %4558 = vmatpush3.bf16.msra.mxu1 %v4557_v59  ;;  %4528 = vmatprep.subr.bf16.mxu0 %v4527_v60  ;;  %v403_v59 = vld [vmem:[%s7679_s3 + $0xbb0] sm:$0xff]  ;;  %v404_v60 = vld [vmem:[%s7679_s3 + $0xbb8] sm:$0xff]  ;;  %v4579_v63 = vpack.c.bf16 %v372_v58, %v371_v45 }
  0x9c   :  { %4560 = vmatprep.subr.bf16.mxu1 %v4559_v0  ;;  %v355_v0 = vld [vmem:[%s7679_s3 + $0xa30] sm:$0xff]  ;;  %v4611_v3 = vpack.c.bf16 %v404_v60, %v403_v59 }
  0x9e   :  { %4530 = vmatpush3.bf16.msra.mxu0 %v4529_v6  ;;  %v374_v6 = vld [vmem:[%s7679_s3 + $0xac8] sm:$0xff] }
  0x9f   :  { %4562 = vmatpush3.bf16.msra.mxu1 %v4561_v8  ;;  %4532 = vmatprep.subr.bf16.mxu0 %v4531_v9  ;;  %v406_v8 = vld [vmem:[%s7679_s3 + $0xbc8] sm:$0xff]  ;;  %v4581_v9 = vpack.c.bf16 %v356_v1, %v355_v0  ;;  %v4583_v12 = vpack.c.bf16 %v374_v6, %v373_v5 }
  0xa0   :  { %4564 = vmatprep.subr.bf16.mxu1 %v4563_v14  ;;  %v358_v14 = vld [vmem:[%s7679_s3 + $0xa48] sm:$0xff] }
  0xa2   :  { %4534 = vmatpush3.bf16.msra.mxu0 %v4533_v21 }
  0xa3   :  { %4566 = vmatpush3.bf16.msra.mxu1 %v4565_v22  ;;  %4568 = vmatprep.subr.bf16.mxu0 %v4567_v23 }
  0xa4   :  { %4600 = vmatprep.subr.bf16.mxu1 %v4599_v27 }
  0xa5   :  { %1342 = vmatmul.mubr.f32.vlgmr.msra.gmra.mrb[8].mxu0 %v5963_v54  ;;  %v353_v54 = vld [vmem:[%s7679_s3 + $0xa20] sm:$0xff] }
  0xa6   :  { %4570 = vmatpush3.bf16.msra.mxu0 %v4569_v35  ;;  %1412 = vmatmul.mubr.f32.vlgmr.msra.gmra.mrb[8].mxu1 %v5972_v57  ;;  %v386_v57 = vld [vmem:[%s7679_s3 + $0xb28] sm:$0xff]  ;;  %v4577_v61 = vpack.c.bf16 %v354_v33, %v353_v54 }
  0xa7   :  { %4602 = vmatpush3.bf16.msra.mxu1 %v4601_v36  ;;  %4572 = vmatprep.subr.bf16.mxu0 %v4571_v52  ;;  %v4609_v62 = vpack.c.bf16 %v386_v57, %v385_v55 }
  0xa8   :  { %4604 = vmatprep.subr.bf16.mxu1 %v4603_v40  ;;  %1481 = vmatprep.mubr.f32.mxu0 %v649_v46 }
  0xa9   :  { %1551 = vmatprep.mubr.f32.mxu1 %v650_v49 }
  0xaa   :  { %4574 = vmatpush3.bf16.msra.mxu0 %v4573_v50 }
  0xab   :  { %4606 = vmatpush3.bf16.msra.mxu1 %v4605_v51  ;;  %4576 = vmatprep.subr.bf16.mxu0 %v4575_v53 }
  0xac   :  { %4608 = vmatprep.subr.bf16.mxu1 %v4607_v56 }
  0xae   :  { %4578 = vmatpush3.bf16.msra.mxu0 %v4577_v61 }
  0xaf   :  { %4610 = vmatpush3.bf16.msra.mxu1 %v4609_v62  ;;  %4580 = vmatprep.subr.bf16.mxu0 %v4579_v63 }
  0xb0   :  { %10 = vsyncpa [#allocation3], 0  ;;  %4612 = vmatprep.subr.bf16.mxu1 %v4611_v3  ;;  %v4615_v16 = vpack.c.bf16 %v406_v8, %v405_v7  ;;  %v390_v17 = vld [vmem:[%s7679_s3 + $0xb48] sm:$0xff]  ;;  %v375_v18 = vld [vmem:[%s7679_s3 + $0xad0] sm:$0xff]  ;;  %v4585_v22 = vpack.c.bf16 %v358_v14, %v357_v11  ;;  %vm1839_vm0 = vcmask 523264   ;;  %vm5078_vm1 = vmmov 0  }
  0xb1   :  { %v376_v19 = vld [vmem:[%s7679_s3 + $0xad8] sm:$0xff]  ;;  %v407_v20 = vld [vmem:[%s7679_s3 + $0xbd0] sm:$0xff]  ;;  %v4617_v23 = vpack.c.bf16 %v390_v17, %v389_v15  ;;  %v377_v30 = vld [vmem:[%s7679_s3 + $0xae0] sm:$0xff]  ;;  %vm1925_vm2 = vcmask 31744   ;;  %s5080_s17 = smov [#allocation2]  }
  0xb2   :  { %v408_v21 = vld [vmem:[%s7679_s3 + $0xbd8] sm:$0xff]  ;;  %4582 = vmatpush3.bf16.msra.mxu0 %v4581_v9  ;;  %v4587_v24 = vpack.c.bf16 %v376_v19, %v375_v18  ;;  %v359_v25 = vld [vmem:[%s7679_s3 + $0xa50] sm:$0xff]  ;;  %v378_v32 = vld [vmem:[%s7679_s3 + $0xae8] sm:$0xff]  ;;  %s3617_s18 = sshll.u32 %s5080_s17, 4  ;;  %s3618_s18 = int_to_ptr.vmem [resolvable:$true] %s3617_s18 }
  0xb3   :  { %4614 = vmatpush3.bf16.msra.mxu1 %v4613_v10  ;;  %4584 = vmatprep.subr.bf16.mxu0 %v4583_v12  ;;  %v360_v26 = vld [vmem:[%s7679_s3 + $0xa58] sm:$0xff]  ;;  %v391_v27 = vld [vmem:[%s7679_s3 + $0xb50] sm:$0xff]  ;;  %v4619_v28 = vpack.c.bf16 %v408_v21, %v407_v20  ;;  %v409_v42 = vld [vmem:[%s7679_s3 + $0xbe0] sm:$0xff]  ;;  %v4591_v37 = vpack.c.bf16 %v378_v32, %v377_v30  ;;  %s5052_s21 = scalar_lea.vmem %s3618_s18, 1024  ;;  %p5057_p1 = scmp.lt.s32.totalorder %s3618_s18, %s3618_s18 }
  0xb4   :  { %4616 = vmatprep.subr.bf16.mxu1 %v4615_v16  ;;  %v392_v29 = vld [vmem:[%s7679_s3 + $0xb58] sm:$0xff]  ;;  %v410_v35 = vld [vmem:[%s7679_s3 + $0xbe8] sm:$0xff]  ;;  %v4589_v36 = vpack.c.bf16 %v360_v26, %v359_v25  ;;  %v361_v38 = vld [vmem:[%s7679_s3 + $0xa60] sm:$0xff]  ;;  %p5053_p0 = scmp.ne.s32.totalorder %s3618_s18, %s5052_s21  ;;  %p5058_p2 = scmp.lt.s32.totalorder %s5052_s21, %s5052_s21 }
  0xb5   :  { %v4621_v52 = vpack.c.bf16 %v392_v29, %v391_v27  ;;  %v362_v39 = vld [vmem:[%s7679_s3 + $0xa68] sm:$0xff]  ;;  %v393_v40 = vld [vmem:[%s7679_s3 + $0xb60] sm:$0xff]  ;;  %v4623_v41 = vpack.c.bf16 %v410_v35, %v409_v42  ;;  %v379_v44 = vld [vmem:[%s7679_s3 + $0xaf0] sm:$0xff] }
  0xb6   :  { %4586 = vmatpush3.bf16.msra.mxu0 %v4585_v22  ;;  %v394_v43 = vld [vmem:[%s7679_s3 + $0xb68] sm:$0xff]  ;;  %v380_v46 = vld [vmem:[%s7679_s3 + $0xaf8] sm:$0xff]  ;;  %v411_v47 = vld [vmem:[%s7679_s3 + $0xbf0] sm:$0xff]  ;;  %v4593_v49 = vpack.c.bf16 %v362_v39, %v361_v38  ;;  %p5059_p3 = por %p5058_p2, %p5057_p1 }
  0xb7   :  { %4618 = vmatpush3.bf16.msra.mxu1 %v4617_v23  ;;  %4588 = vmatprep.subr.bf16.mxu0 %v4587_v24  ;;  %v412_v48 = vld [vmem:[%s7679_s3 + $0xbf8] sm:$0xff]  ;;  %v27_v50 = vld [vmem:[%s7676_s0 + $0x30] sm:$0xff]  ;;  %v4625_v51 = vpack.c.bf16 %v394_v43, %v393_v40  ;;  %v4595_v53 = vpack.c.bf16 %v380_v46, %v379_v44  ;;  %v429_v45 = vld [vmem:[%s7679_s3 + $0xc80] sm:$0xff] }
  0xb8   :  { %4620 = vmatprep.subr.bf16.mxu1 %v4619_v28  ;;  %v363_v54 = vld [vmem:[%s7679_s3 + $0xa70] sm:$0xff]  ;;  %v364_v33 = vld [vmem:[%s7679_s3 + $0xa78] sm:$0xff]  ;;  %v4627_v56 = vpack.c.bf16 %v412_v48, %v411_v47  ;;  %v430_v58 = vld [vmem:[%s7679_s3 + $0xc88] sm:$0xff]  ;;  %v651_v61 = vcombine.high %v27_v50, %v27_v50  ;;  %v6377_v8 = vrot.slane %v27_v50, %v5261_v13  ;;  %p5060_p4 = pnand %p5059_p3, %p5053_p0 }
  0xb9   :  { %v395_v55 = vld [vmem:[%s7679_s3 + $0xb70] sm:$0xff]  ;;  %v396_v57 = vld [vmem:[%s7679_s3 + $0xb78] sm:$0xff]  ;;  %v461_v59 = vld [vmem:[%s7679_s3 + $0xd80] sm:$0xff]  ;;  %v4597_v62 = vpack.c.bf16 %v364_v33, %v363_v54  ;;  %v4631_v0 = vpack.c.bf16 %v430_v58, %v429_v45 }
  0xba   :  { %4590 = vmatpush3.bf16.msra.mxu0 %v4589_v36  ;;  %v462_v60 = vld [vmem:[%s7679_s3 + $0xd88] sm:$0xff]  ;;  %v4629_v63 = vpack.c.bf16 %v396_v57, %v395_v55  ;;  %v413_v1 = vld [vmem:[%s7679_s3 + $0xc00] sm:$0xff]  ;;  %v431_v6 = vld [vmem:[%s7679_s3 + $0xc90] sm:$0xff]  ;;  %v6386_v10 = vrot.slane %v651_v61, %v5261_v13  ;;  %v666_v23 = vcombine.high %v6377_v8, %v6377_v8 }
  0xbb   :  { %4622 = vmatpush3.bf16.msra.mxu1 %v4621_v52  ;;  %4592 = vmatprep.subr.bf16.mxu0 %v4591_v37  ;;  %v414_v2 = vld [vmem:[%s7679_s3 + $0xc08] sm:$0xff]  ;;  %v445_v3 = vld [vmem:[%s7679_s3 + $0xd00] sm:$0xff]  ;;  %v4663_v4 = vpack.c.bf16 %v462_v60, %v461_v59  ;;  %v432_v7 = vld [vmem:[%s7679_s3 + $0xc98] sm:$0xff] }
  0xbc   :  { %4624 = vmatprep.subr.bf16.mxu1 %v4623_v41  ;;  %v446_v5 = vld [vmem:[%s7679_s3 + $0xd08] sm:$0xff]  ;;  %v463_v9 = vld [vmem:[%s7679_s3 + $0xd90] sm:$0xff]  ;;  %v464_v11 = vld [vmem:[%s7679_s3 + $0xd98] sm:$0xff]  ;;  %v4633_v12 = vpack.c.bf16 %v414_v2, %v413_v1  ;;  %v4635_v15 = vpack.c.bf16 %v432_v7, %v431_v6  ;;  %v667_v26 = vcombine.high %v6386_v10, %v6386_v10 }
  0xbd   :  { %v4665_v14 = vpack.c.bf16 %v446_v5, %v445_v3  ;;  %v415_v16 = vld [vmem:[%s7679_s3 + $0xc10] sm:$0xff]  ;;  %v416_v17 = vld [vmem:[%s7679_s3 + $0xc18] sm:$0xff]  ;;  %v4667_v19 = vpack.c.bf16 %v464_v11, %v463_v9  ;;  %v433_v21 = vld [vmem:[%s7679_s3 + $0xca0] sm:$0xff] }
  0xbe   :  { %4594 = vmatpush3.bf16.msra.mxu0 %v4593_v49  ;;  %v447_v18 = vld [vmem:[%s7679_s3 + $0xd10] sm:$0xff]  ;;  %v448_v20 = vld [vmem:[%s7679_s3 + $0xd18] sm:$0xff]  ;;  %v434_v22 = vld [vmem:[%s7679_s3 + $0xca8] sm:$0xff]  ;;  %v4637_v27 = vpack.c.bf16 %v416_v17, %v415_v16 }
  0xbf   :  { %4626 = vmatpush3.bf16.msra.mxu1 %v4625_v51  ;;  %4596 = vmatprep.subr.bf16.mxu0 %v4595_v53  ;;  %v465_v24 = vld [vmem:[%s7679_s3 + $0xda0] sm:$0xff]  ;;  %v466_v25 = vld [vmem:[%s7679_s3 + $0xda8] sm:$0xff]  ;;  %v4669_v28 = vpack.c.bf16 %v448_v20, %v447_v18  ;;  %v4639_v29 = vpack.c.bf16 %v434_v22, %v433_v21  ;;  %v435_v35 = vld [vmem:[%s7679_s3 + $0xcb0] sm:$0xff] }
  0xc0   :  { %4628 = vmatprep.subr.bf16.mxu1 %v4627_v56  ;;  %v418_v30 = vld [vmem:[%s7679_s3 + $0xc28] sm:$0xff]  ;;  %v449_v32 = vld [vmem:[%s7679_s3 + $0xd20] sm:$0xff]  ;;  %v4671_v42 = vpack.c.bf16 %v466_v25, %v465_v24  ;;  %v436_v36 = vld [vmem:[%s7679_s3 + $0xcb8] sm:$0xff] }
  0xc1   :  { %v467_v52 = vld [vmem:[%s7679_s3 + $0xdb0] sm:$0xff]  ;;  %v468_v37 = vld [vmem:[%s7679_s3 + $0xdb8] sm:$0xff]  ;;  %v4643_v40 = vpack.c.bf16 %v436_v36, %v435_v35  ;;  %v437_v48 = vld [vmem:[%s7679_s3 + $0xcc0] sm:$0xff] }
  0xc2   :  { %4598 = vmatpush3.bf16.msra.mxu0 %v4597_v62  ;;  %v419_v41 = vld [vmem:[%s7679_s3 + $0xc30] sm:$0xff]  ;;  %v420_v43 = vld [vmem:[%s7679_s3 + $0xc38] sm:$0xff]  ;;  %v4675_v46 = vpack.c.bf16 %v468_v37, %v467_v52  ;;  %v438_v49 = vld [vmem:[%s7679_s3 + $0xcc8] sm:$0xff] }
  0xc3   :  { %4630 = vmatpush3.bf16.msra.mxu1 %v4629_v63  ;;  %4632 = vmatprep.subr.bf16.mxu0 %v4631_v0  ;;  %v451_v44 = vld [vmem:[%s7679_s3 + $0xd30] sm:$0xff]  ;;  %v452_v47 = vld [vmem:[%s7679_s3 + $0xd38] sm:$0xff]  ;;  %v469_v50 = vld [vmem:[%s7679_s3 + $0xdc0] sm:$0xff]  ;;  %v4645_v53 = vpack.c.bf16 %v420_v43, %v419_v41  ;;  %v4647_v33 = vpack.c.bf16 %v438_v49, %v437_v48 }
  0xc4   :  { %4664 = vmatprep.subr.bf16.mxu1 %v4663_v4  ;;  %v470_v51 = vld [vmem:[%s7679_s3 + $0xdc8] sm:$0xff]  ;;  %v4677_v54 = vpack.c.bf16 %v452_v47, %v451_v44  ;;  %v421_v55 = vld [vmem:[%s7679_s3 + $0xc40] sm:$0xff]  ;;  %v439_v59 = vld [vmem:[%s7679_s3 + $0xcd0] sm:$0xff] }
  0xc5   :  { %1482 = vmatmul.mubr.f32.vlgmr.msra.gmra.mrb[10].mxu0 %v6170_v31  ;;  %v417_v31 = vld [vmem:[%s7679_s3 + $0xc20] sm:$0xff]  ;;  %v422_v56 = vld [vmem:[%s7679_s3 + $0xc48] sm:$0xff]  ;;  %v4679_v45 = vpack.c.bf16 %v470_v51, %v469_v50  ;;  %v440_v60 = vld [vmem:[%s7679_s3 + $0xcd8] sm:$0xff] }
  0xc6   :  { %4634 = vmatpush3.bf16.msra.mxu0 %v4633_v12  ;;  %1552 = vmatmul.mubr.f32.vlgmr.msra.gmra.mrb[10].mxu1 %v6179_v34  ;;  %v450_v34 = vld [vmem:[%s7679_s3 + $0xd28] sm:$0xff]  ;;  %v4641_v38 = vpack.c.bf16 %v418_v30, %v417_v31  ;;  %v453_v57 = vld [vmem:[%s7679_s3 + $0xd40] sm:$0xff]  ;;  %v471_v61 = vld [vmem:[%s7679_s3 + $0xdd0] sm:$0xff]  ;;  %v4649_v63 = vpack.c.bf16 %v422_v56, %v421_v55  ;;  %v4651_v1 = vpack.c.bf16 %v440_v60, %v439_v59 }
  0xc7   :  { %4666 = vmatpush3.bf16.msra.mxu1 %v4665_v14  ;;  %4636 = vmatprep.subr.bf16.mxu0 %v4635_v15  ;;  %v4673_v39 = vpack.c.bf16 %v450_v34, %v449_v32  ;;  %v454_v58 = vld [vmem:[%s7679_s3 + $0xd48] sm:$0xff]  ;;  %v472_v62 = vld [vmem:[%s7679_s3 + $0xdd8] sm:$0xff]  ;;  %v423_v2 = vld [vmem:[%s7679_s3 + $0xc50] sm:$0xff] }
  0xc8   :  { %4668 = vmatprep.subr.bf16.mxu1 %v4667_v19  ;;  %1621 = vmatprep.mubr.f32.mxu0 %v666_v23  ;;  %v4681_v0 = vpack.c.bf16 %v454_v58, %v453_v57  ;;  %v424_v3 = vld [vmem:[%s7679_s3 + $0xc58] sm:$0xff]  ;;  %v455_v4 = vld [vmem:[%s7679_s3 + $0xd50] sm:$0xff]  ;;  %v4683_v5 = vpack.c.bf16 %v472_v62, %v471_v61  ;;  %v441_v7 = vld [vmem:[%s7679_s3 + $0xce0] sm:$0xff] }
  0xc9   :  { %1691 = vmatprep.mubr.f32.mxu1 %v667_v26  ;;  %v456_v6 = vld [vmem:[%s7679_s3 + $0xd58] sm:$0xff]  ;;  %v442_v9 = vld [vmem:[%s7679_s3 + $0xce8] sm:$0xff]  ;;  %v473_v11 = vld [vmem:[%s7679_s3 + $0xde0] sm:$0xff]  ;;  %v4653_v14 = vpack.c.bf16 %v424_v3, %v423_v2 }
  0xca   :  { %4638 = vmatpush3.bf16.msra.mxu0 %v4637_v27  ;;  %v474_v12 = vld [vmem:[%s7679_s3 + $0xde8] sm:$0xff]  ;;  %v4685_v15 = vpack.c.bf16 %v456_v6, %v455_v4  ;;  %v4655_v16 = vpack.c.bf16 %v442_v9, %v441_v7  ;;  %v425_v17 = vld [vmem:[%s7679_s3 + $0xc60] sm:$0xff]  ;;  %v443_v22 = vld [vmem:[%s7679_s3 + $0xcf0] sm:$0xff] }
  0xcb   :  { %4670 = vmatpush3.bf16.msra.mxu1 %v4669_v28  ;;  %4640 = vmatprep.subr.bf16.mxu0 %v4639_v29  ;;  %v426_v18 = vld [vmem:[%s7679_s3 + $0xc68] sm:$0xff]  ;;  %v457_v19 = vld [vmem:[%s7679_s3 + $0xd60] sm:$0xff]  ;;  %v4687_v20 = vpack.c.bf16 %v474_v12, %v473_v11  ;;  %v444_v23 = vld [vmem:[%s7679_s3 + $0xcf8] sm:$0xff] }
  0xcc   :  { %4672 = vmatprep.subr.bf16.mxu1 %v4671_v42  ;;  %v458_v21 = vld [vmem:[%s7679_s3 + $0xd68] sm:$0xff]  ;;  %v475_v24 = vld [vmem:[%s7679_s3 + $0xdf0] sm:$0xff]  ;;  %v476_v25 = vld [vmem:[%s7679_s3 + $0xdf8] sm:$0xff]  ;;  %v4657_v26 = vpack.c.bf16 %v426_v18, %v425_v17  ;;  %v4659_v29 = vpack.c.bf16 %v444_v23, %v443_v22 }
  0xcd   :  { %v28_v27 = vld [vmem:[%s7676_s0 + $0x38] sm:$0xff]  ;;  %v4689_v28 = vpack.c.bf16 %v458_v21, %v457_v19  ;;  %v427_v31 = vld [vmem:[%s7679_s3 + $0xc70] sm:$0xff]  ;;  %v4691_v42 = vpack.c.bf16 %v476_v25, %v475_v24  ;;  %v493_v35 = vld [vmem:[%s7679_s3 + $0xe80] sm:$0xff] }
  0xce   :  { %4642 = vmatpush3.bf16.msra.mxu0 %v4641_v38  ;;  %v428_v30 = vld [vmem:[%s7679_s3 + $0xc78] sm:$0xff]  ;;  %v459_v32 = vld [vmem:[%s7679_s3 + $0xd70] sm:$0xff]  ;;  %v494_v36 = vld [vmem:[%s7679_s3 + $0xe88] sm:$0xff]  ;;  %v668_v38 = vcombine.high %v28_v27, %v28_v27  ;;  %v6584_v51 = vrot.slane %v28_v27, %v5261_v13 }
  0xcf   :  { %4674 = vmatpush3.bf16.msra.mxu1 %v4673_v39  ;;  %4644 = vmatprep.subr.bf16.mxu0 %v4643_v40  ;;  %v460_v34 = vld [vmem:[%s7679_s3 + $0xd78] sm:$0xff]  ;;  %v525_v52 = vld [vmem:[%s7679_s3 + $0xf80] sm:$0xff]  ;;  %v526_v37 = vld [vmem:[%s7679_s3 + $0xf88] sm:$0xff]  ;;  %v4661_v39 = vpack.c.bf16 %v428_v30, %v427_v31  ;;  %v4695_v41 = vpack.c.bf16 %v494_v36, %v493_v35 }
  0xd0   :  { %4676 = vmatprep.subr.bf16.mxu1 %v4675_v46  ;;  %v4693_v40 = vpack.c.bf16 %v460_v34, %v459_v32  ;;  %v477_v43 = vld [vmem:[%s7679_s3 + $0xe00] sm:$0xff]  ;;  %v478_v44 = vld [vmem:[%s7679_s3 + $0xe08] sm:$0xff]  ;;  %v4727_v47 = vpack.c.bf16 %v526_v37, %v525_v52  ;;  %v495_v49 = vld [vmem:[%s7679_s3 + $0xe90] sm:$0xff] }
  0xd1   :  { %v509_v46 = vld [vmem:[%s7679_s3 + $0xf00] sm:$0xff]  ;;  %v510_v48 = vld [vmem:[%s7679_s3 + $0xf08] sm:$0xff]  ;;  %v496_v50 = vld [vmem:[%s7679_s3 + $0xe98] sm:$0xff]  ;;  %v4697_v55 = vpack.c.bf16 %v478_v44, %v477_v43 }
  0xd2   :  { %4646 = vmatpush3.bf16.msra.mxu0 %v4645_v53  ;;  %v527_v53 = vld [vmem:[%s7679_s3 + $0xf90] sm:$0xff]  ;;  %v4729_v56 = vpack.c.bf16 %v510_v48, %v509_v46  ;;  %v4699_v57 = vpack.c.bf16 %v496_v50, %v495_v49  ;;  %v480_v58 = vld [vmem:[%s7679_s3 + $0xe18] sm:$0xff]  ;;  %v497_v62 = vld [vmem:[%s7679_s3 + $0xea0] sm:$0xff] }
  0xd3   :  { %4678 = vmatpush3.bf16.msra.mxu1 %v4677_v54  ;;  %4648 = vmatprep.subr.bf16.mxu0 %v4647_v33  ;;  %v528_v54 = vld [vmem:[%s7679_s3 + $0xf98] sm:$0xff]  ;;  %v6593_v33 = vrot.slane %v668_v38, %v5261_v13  ;;  %v511_v59 = vld [vmem:[%s7679_s3 + $0xf10] sm:$0xff]  ;;  %v530_v2 = vld [vmem:[%s7679_s3 + $0xfa8] sm:$0xff] }
  0xd4   :  { %4680 = vmatprep.subr.bf16.mxu1 %v4679_v45  ;;  %v479_v45 = vld [vmem:[%s7679_s3 + $0xe10] sm:$0xff]  ;;  %v4731_v60 = vpack.c.bf16 %v528_v54, %v527_v53  ;;  %v512_v61 = vld [vmem:[%s7679_s3 + $0xf18] sm:$0xff]  ;;  %v482_v7 = vld [vmem:[%s7679_s3 + $0xe28] sm:$0xff] }
  0xd5   :  { %v684_v3 = vcombine.high %v6593_v33, %v6593_v33  ;;  %v4701_v4 = vpack.c.bf16 %v480_v58, %v479_v45  ;;  %v513_v9 = vld [vmem:[%s7679_s3 + $0xf20] sm:$0xff]  ;;  %v499_v12 = vld [vmem:[%s7679_s3 + $0xeb0] sm:$0xff]  ;;  %v484_v21 = vld [vmem:[%s7679_s3 + $0xe38] sm:$0xff] }
  0xd6   :  { %4650 = vmatpush3.bf16.msra.mxu0 %v4649_v63  ;;  %v498_v63 = vld [vmem:[%s7679_s3 + $0xea8] sm:$0xff]  ;;  %v515_v22 = vld [vmem:[%s7679_s3 + $0xf30] sm:$0xff]  ;;  %v516_v24 = vld [vmem:[%s7679_s3 + $0xf38] sm:$0xff] }
  0xd7   :  { %4682 = vmatpush3.bf16.msra.mxu1 %v4681_v0  ;;  %4652 = vmatprep.subr.bf16.mxu0 %v4651_v1  ;;  %v683_v0 = vcombine.high %v6584_v51, %v6584_v51  ;;  %v529_v1 = vld [vmem:[%s7679_s3 + $0xfa0] sm:$0xff]  ;;  %v4703_v6 = vpack.c.bf16 %v498_v63, %v497_v62  ;;  %v4741_v31 = vpack.c.bf16 %v516_v24, %v515_v22  ;;  %v518_v36 = vld [vmem:[%s7679_s3 + $0xf48] sm:$0xff]  ;;  %v503_v52 = vld [vmem:[%s7679_s3 + $0xed0] sm:$0xff] }
  0xd8   :  { %4684 = vmatprep.subr.bf16.mxu1 %v4683_v5  ;;  %v4733_v5 = vpack.c.bf16 %v512_v61, %v511_v59  ;;  %v4735_v11 = vpack.c.bf16 %v530_v2, %v529_v1  ;;  %v501_v25 = vld [vmem:[%s7679_s3 + $0xec0] sm:$0xff]  ;;  %v504_v37 = vld [vmem:[%s7679_s3 + $0xed8] sm:$0xff]  ;;  %v535_v38 = vld [vmem:[%s7679_s3 + $0xfd0] sm:$0xff] }
  0xd9   :  { %v533_v27 = vld [vmem:[%s7679_s3 + $0xfc0] sm:$0xff]  ;;  %v4715_v43 = vpack.c.bf16 %v504_v37, %v503_v52  ;;  %v487_v44 = vld [vmem:[%s7679_s3 + $0xe50] sm:$0xff]  ;;  %v488_v46 = vld [vmem:[%s7679_s3 + $0xe58] sm:$0xff] }
  0xda   :  { %4654 = vmatpush3.bf16.msra.mxu0 %v4653_v14  ;;  %v500_v14 = vld [vmem:[%s7679_s3 + $0xeb8] sm:$0xff]  ;;  %v485_v32 = vld [vmem:[%s7679_s3 + $0xe40] sm:$0xff]  ;;  %v506_v53 = vld [vmem:[%s7679_s3 + $0xee8] sm:$0xff] }
  0xdb   :  { %4686 = vmatpush3.bf16.msra.mxu1 %v4685_v15  ;;  %4656 = vmatprep.subr.bf16.mxu0 %v4655_v16  ;;  %v531_v15 = vld [vmem:[%s7679_s3 + $0xfb0] sm:$0xff]  ;;  %v532_v16 = vld [vmem:[%s7679_s3 + $0xfb8] sm:$0xff]  ;;  %v4707_v19 = vpack.c.bf16 %v500_v14, %v499_v12  ;;  %v517_v34 = vld [vmem:[%s7679_s3 + $0xf40] sm:$0xff] }
  0xdc   :  { %4688 = vmatprep.subr.bf16.mxu1 %v4687_v20  ;;  %v483_v20 = vld [vmem:[%s7679_s3 + $0xe30] sm:$0xff]  ;;  %v4739_v23 = vpack.c.bf16 %v532_v16, %v531_v15  ;;  %v520_v49 = vld [vmem:[%s7679_s3 + $0xf58] sm:$0xff]  ;;  %v505_v50 = vld [vmem:[%s7679_s3 + $0xee0] sm:$0xff] }
  0xdd   :  { %v537_v54 = vld [vmem:[%s7679_s3 + $0xfe0] sm:$0xff]  ;;  %v4719_v45 = vpack.c.bf16 %v506_v53, %v505_v50  ;;  %v490_v59 = vld [vmem:[%s7679_s3 + $0xe68] sm:$0xff]  ;;  %v508_v1 = vld [vmem:[%s7679_s3 + $0xef8] sm:$0xff] }
  0xde   :  { %4658 = vmatpush3.bf16.msra.mxu0 %v4657_v26  ;;  %v502_v26 = vld [vmem:[%s7679_s3 + $0xec8] sm:$0xff]  ;;  %v489_v58 = vld [vmem:[%s7679_s3 + $0xe60] sm:$0xff]  ;;  %v491_v12 = vld [vmem:[%s7679_s3 + $0xe70] sm:$0xff] }
  0xdf   :  { %4690 = vmatpush3.bf16.msra.mxu1 %v4689_v28  ;;  %4660 = vmatprep.subr.bf16.mxu0 %v4659_v29  ;;  %v534_v28 = vld [vmem:[%s7679_s3 + $0xfc8] sm:$0xff]  ;;  %v4709_v29 = vpack.c.bf16 %v484_v21, %v483_v20  ;;  %v4711_v30 = vpack.c.bf16 %v502_v26, %v501_v25  ;;  %v492_v14 = vld [vmem:[%s7679_s3 + $0xe78] sm:$0xff]  ;;  %v523_v16 = vld [vmem:[%s7679_s3 + $0xf70] sm:$0xff] }
  0xe0   :  { %4692 = vmatprep.subr.bf16.mxu1 %v4691_v42  ;;  %v486_v42 = vld [vmem:[%s7679_s3 + $0xe48] sm:$0xff]  ;;  %v4743_v35 = vpack.c.bf16 %v534_v28, %v533_v27  ;;  %vm6774_vm3 = vmpackc.low %vm1925_vm2, %vm1925_vm2  ;;  %v1919_v53 = vld [vmem:[%s7678_s2 + $0x10] sm:$0xff] }
  0xe1   :  { %v522_v63 = vld [vmem:[%s7679_s3 + $0xf68] sm:$0xff]  ;;  %v2184_v50 = vld [vmem:[%s7680_s4 + $0x500] sm:$0xff] }
  0xe2   :  { %4662 = vmatpush3.bf16.msra.mxu0 %v4661_v39  ;;  %v536_v39 = vld [vmem:[%s7679_s3 + $0xfd8] sm:$0xff] }
  0xe3   :  { %4694 = vmatpush3.bf16.msra.mxu1 %v4693_v40  ;;  %4696 = vmatprep.subr.bf16.mxu0 %v4695_v41  ;;  %v4713_v40 = vpack.c.bf16 %v486_v42, %v485_v32  ;;  %v4745_v41 = vpack.c.bf16 %v518_v36, %v517_v34  ;;  %v4747_v48 = vpack.c.bf16 %v536_v39, %v535_v38 }
  0xe4   :  { %4728 = vmatprep.subr.bf16.mxu1 %v4727_v47  ;;  %v519_v47 = vld [vmem:[%s7679_s3 + $0xf50] sm:$0xff] }
  0xe5   :  { %1622 = vmatmul.mubr.f32.vlgmr.msra.gmra.mrb[12].mxu0 %v6377_v8  ;;  %v481_v8 = vld [vmem:[%s7679_s3 + $0xe20] sm:$0xff] }
  0xe6   :  { %4698 = vmatpush3.bf16.msra.mxu0 %v4697_v55  ;;  %1692 = vmatmul.mubr.f32.vlgmr.msra.gmra.mrb[12].mxu1 %v6386_v10  ;;  %v514_v10 = vld [vmem:[%s7679_s3 + $0xf28] sm:$0xff]  ;;  %v4705_v17 = vpack.c.bf16 %v482_v7, %v481_v8  ;;  %v4721_v7 = vpack.c.bf16 %v490_v59, %v489_v58  ;;  %v1923_v58 = vld [vmem:[%s7678_s2 + $0x30] sm:$0xff]  ;;  %v1924_v59 = vld [vmem:[%s7678_s2 + $0x38] sm:$0xff] }
  0xe7   :  { %4730 = vmatpush3.bf16.msra.mxu1 %v4729_v56  ;;  %4700 = vmatprep.subr.bf16.mxu0 %v4699_v57  ;;  %v4737_v18 = vpack.c.bf16 %v514_v10, %v513_v9  ;;  %v538_v55 = vld [vmem:[%s7679_s3 + $0xfe8] sm:$0xff]  ;;  %v4717_v56 = vpack.c.bf16 %v488_v46, %v487_v44  ;;  %v4749_v57 = vpack.c.bf16 %v520_v49, %v519_v47  ;;  %v1838_v44 = vld [vmem:[%s7677_s1] sm:$0xf] }
  0xe8   :  { %4732 = vmatprep.subr.bf16.mxu1 %v4731_v60  ;;  %1761 = vmatprep.mubr.f32.mxu0 %v683_v0  ;;  %v521_v60 = vld [vmem:[%s7679_s3 + $0xf60] sm:$0xff]  ;;  %v4751_v62 = vpack.c.bf16 %v538_v55, %v537_v54  ;;  %v507_v0 = vld [vmem:[%s7679_s3 + $0xef0] sm:$0xff]  ;;  %v1918_v47 = vld [vmem:[%s7678_s2 + $0x8] sm:$0xff] }
  0xe9   :  { %1831 = vmatprep.mubr.f32.mxu1 %v684_v3  ;;  %v4723_v10 = vpack.c.bf16 %v508_v1, %v507_v0  ;;  %v1917_v46 = vld [vmem:[%s7678_s2] sm:$0xff]  ;;  %v1920_v54 = vld [vmem:[%s7678_s2 + $0x18] sm:$0xff] }
  0xea   :  { %4702 = vmatpush3.bf16.msra.mxu0 %v4701_v4  ;;  %v539_v4 = vld [vmem:[%s7679_s3 + $0xff0] sm:$0xff]  ;;  %v4760_v49 = vpack.c.bf16 %v1918_v47, %v1917_v46  ;;  %v4764_v55 = vpack.c.bf16 %v1920_v54, %v1919_v53  ;;  %v2153_v46 = vld [vmem:[%s7680_s4 + $0x408] sm:$0xff] }
  0xeb   :  { %4734 = vmatpush3.bf16.msra.mxu1 %v4733_v5  ;;  %4704 = vmatprep.subr.bf16.mxu0 %v4703_v6  ;;  %v540_v5 = vld [vmem:[%s7679_s3 + $0xff8] sm:$0xff]  ;;  %v2185_v47 = vld [vmem:[%s7680_s4 + $0x508] sm:$0xff] }
  0xec   :  { %4736 = vmatprep.subr.bf16.mxu1 %v4735_v11  ;;  %v4753_v11 = vpack.c.bf16 %v522_v63, %v521_v60  ;;  %v4755_v15 = vpack.c.bf16 %v540_v5, %v539_v4  ;;  %v4772_v63 = vpack.c.bf16 %v1924_v59, %v1923_v58  ;;  %v2217_v54 = vld [vmem:[%s7680_s4 + $0x608] sm:$0xff]  ;;  %v2028_v59 = vld [vmem:[%s7680_s4 + $0x20] sm:$0xff] }
  0xee   :  { %4706 = vmatpush3.bf16.msra.mxu0 %v4705_v17  ;;  %v524_v17 = vld [vmem:[%s7679_s3 + $0xf78] sm:$0xff] }
  0xef   :  { %4738 = vmatpush3.bf16.msra.mxu1 %v4737_v18  ;;  %4708 = vmatprep.subr.bf16.mxu0 %v4707_v19  ;;  %v4725_v19 = vpack.c.bf16 %v492_v14, %v491_v12  ;;  %v4757_v20 = vpack.c.bf16 %v524_v17, %v523_v16 }
  0xf0   :  { %4740 = vmatprep.subr.bf16.mxu1 %v4739_v23 }
  0xf2   :  { %4710 = vmatpush3.bf16.msra.mxu0 %v4709_v29 }
  0xf3   :  { %4742 = vmatpush3.bf16.msra.mxu1 %v4741_v31  ;;  %4712 = vmatprep.subr.bf16.mxu0 %v4711_v30 }
  0xf4   :  { %4744 = vmatprep.subr.bf16.mxu1 %v4743_v35 }
  0xf6   :  { %4714 = vmatpush3.bf16.msra.mxu0 %v4713_v40 }
  0xf7   :  { %4746 = vmatpush3.bf16.msra.mxu1 %v4745_v41  ;;  %4716 = vmatprep.subr.bf16.mxu0 %v4715_v43  ;;  %v5077_v43 = vmov 0.0  }
  0xf8   :  { %v3684_v61 = vpop.f32.mrb[0].mxu0  ;;  %4748 = vmatprep.subr.bf16.mxu1 %v4747_v48  ;;  %v5079_v48 = vmov 0.0|0.0  }
  0xf9   :  { %v3719_v2 = vpop.f32.mrb[0].mxu1  ;;  %v3685_v3 = vpop.f32.mrb[1].mxu0 }
  0xfa   :  { %v3686_v6 = vadd.f32 %v3685_v3, %v3684_v61  ;;  %v3720_v8 = vpop.f32.mrb[1].mxu1  ;;  %4718 = vmatpush3.bf16.msra.mxu0 %v4717_v56  ;;  %v1921_v56 = vld [vmem:[%s7678_s2 + $0x20] sm:$0xff] }
  0xfb   :  { %v3721_v9 = vadd.f32 %v3720_v8, %v3719_v2  ;;  %4750 = vmatpush3.bf16.msra.mxu1 %v4749_v57  ;;  %4720 = vmatprep.subr.bf16.mxu0 %v4719_v45  ;;  %v1922_v57 = vld [vmem:[%s7678_s2 + $0x28] sm:$0xff] }
  0xfc   :  { %4752 = vmatprep.subr.bf16.mxu1 %v4751_v62  ;;  %v4768_v45 = vpack.c.bf16 %v1922_v57, %v1921_v56  ;;  %v2216_v57 = vld [vmem:[%s7680_s4 + $0x600] sm:$0xff] }
  0xfd   :  { %v854_v18 = vadd.f32 %v3721_v9, %v3686_v6 }
  0xfe   :  { %4722 = vmatpush3.bf16.msra.mxu0 %v4721_v7 }
  0xff   :  { %4754 = vmatpush3.bf16.msra.mxu1 %v4753_v11  ;;  %4724 = vmatprep.subr.bf16.mxu0 %v4723_v10 }
 0x100   :  { %4756 = vmatprep.subr.bf16.mxu1 %v4755_v15 }
 0x102   :  { %4726 = vmatpush3.bf16.msra.mxu0 %v4725_v19 }
 0x103   :  { %4758 = vmatpush3.bf16.msra.mxu1 %v4757_v20  ;;  %4223 = vmatprep.subr.mxu0 %v5077_v43 }
 0x104   :  { %4759 = vmatprep.subr.bf16.mxu1 %v5079_v48 }
 0x105   :  { %1762 = vmatmul.mubr.f32.vlgmr.msra.gmra.mrb[14].mxu0 %v6584_v51 }
 0x106   :  { %1832 = vmatmul.mubr.f32.vlgmr.msra.gmra.mrb[14].mxu1 %v6593_v33  ;;  %4225 = vmatprep.mubr.msk.f32.mxu0 %vm5078_vm1, %v5077_v43 }
 0x107   :  { %4244 = vmatprep.mubr.msk.f32.mxu1 %vm5078_vm1, %v5077_v43 }
 0x10b   :  { %4224 = vmatpush3.xpose.msk.msra.mxu0 %vm1839_vm0, %v1838_v44 }
 0x10c   :  { %4762 = vmatpush3.bf16.xpose.msk.msra.mxu1 %vm6774_vm3, %v4760_v49  ;;  %v2152_v49 = vld [vmem:[%s7680_s4 + $0x400] sm:$0xff] }
 0x10d   :  { %4763 = vmatprep.subr.bf16.mxu1 %v5079_v48  ;;  %v4785_v53 = vpack.c.bf16 %v2184_v50, %v2152_v49 }
 0x114   :  { %4766 = vmatpush3.bf16.xpose.msk.msra.mxu1 %vm6774_vm3, %v4764_v55  ;;  %v2249_v55 = vld [vmem:[%s7680_s4 + $0x708] sm:$0xff] }
 0x115   :  { %4767 = vmatprep.subr.bf16.mxu1 %v5079_v48  ;;  %v4787_v56 = vpack.c.bf16 %v2249_v55, %v2217_v54  ;;  %v2186_v54 = vld [vmem:[%s7680_s4 + $0x510] sm:$0xff] }
 0x118   :  { %v3754_v21 = vpop.f32.mrb[2].mxu0 }
 0x119   :  { %v3755_v22 = vpop.f32.mrb[3].mxu0  ;;  %v3789_v23 = vpop.f32.mrb[2].mxu1 }
 0x11a   :  { %v3756_v24 = vadd.f32 %v3755_v22, %v3754_v21  ;;  %v3790_v25 = vpop.f32.mrb[3].mxu1 }
 0x11b   :  { %v3791_v26 = vadd.f32 %v3790_v25, %v3789_v23 }
 0x11c   :  { %v924_v27 = vadd.f32 %v3756_v24, %v854_v18  ;;  %4770 = vmatpush3.bf16.xpose.msk.msra.mxu1 %vm6774_vm3, %v4768_v45  ;;  %v2248_v45 = vld [vmem:[%s7680_s4 + $0x700] sm:$0xff] }
 0x11d   :  { %4771 = vmatprep.subr.bf16.mxu1 %v5079_v48  ;;  %v4783_v48 = vpack.c.bf16 %v2185_v47, %v2153_v46  ;;  %v4789_v58 = vpack.c.bf16 %v2248_v45, %v2216_v57  ;;  %v2187_v46 = vld [vmem:[%s7680_s4 + $0x518] sm:$0xff]  ;;  %v2161_v47 = vld [vmem:[%s7680_s4 + $0x448] sm:$0xff]  ;;  %v2160_v57 = vld [vmem:[%s7680_s4 + $0x440] sm:$0xff] }
 0x11e   :  { %v994_v28 = vadd.f32 %v3791_v26, %v924_v27  ;;  %v2192_v45 = vld [vmem:[%s7680_s4 + $0x540] sm:$0xff] }
 0x124   :  { %4774 = vmatpush3.bf16.xpose.msk.msra.mxu1 %vm6774_vm3, %v4772_v63 }
 0x138   :  { %v3824_v29 = vpop.f32.mrb[4].mxu0 }
 0x139   :  { %v3825_v31 = vpop.f32.mrb[5].mxu0  ;;  %v3859_v30 = vpop.f32.mrb[4].mxu1 }
 0x13a   :  { %v3826_v32 = vadd.f32 %v3825_v31, %v3824_v29  ;;  %v3860_v42 = vpop.f32.mrb[5].mxu1 }
 0x13b   :  { %v3861_v34 = vadd.f32 %v3860_v42, %v3859_v30  ;;  %v2025_v30 = vld [vmem:[%s7680_s4 + $0x8] sm:$0xff] }
 0x13c   :  { %v1064_v35 = vadd.f32 %v3826_v32, %v994_v28  ;;  %v2057_v32 = vld [vmem:[%s7680_s4 + $0x108] sm:$0xff] }
 0x13d   :  { %v2029_v42 = vld [vmem:[%s7680_s4 + $0x28] sm:$0xff] }
 0x13e   :  { %v1134_v36 = vadd.f32 %v3861_v34, %v1064_v35  ;;  %v4775_v34 = vpack.c.bf16 %v2057_v32, %v2025_v30  ;;  %v2061_v35 = vld [vmem:[%s7680_s4 + $0x128] sm:$0xff]  ;;  %v2123_v30 = vld [vmem:[%s7680_s4 + $0x318] sm:$0xff] }
 0x13f   :  { %v2097_v32 = vld [vmem:[%s7680_s4 + $0x248] sm:$0xff] }
 0x140   :  { %4776 = vmatprep.subr.bf16.mxu0 %v4775_v34 }
 0x158   :  { %v3894_v52 = vpop.f32.mrb[6].mxu0 }
 0x159   :  { %v3895_v51 = vpop.f32.mrb[7].mxu0  ;;  %v3929_v37 = vpop.f32.mrb[6].mxu1 }
 0x15a   :  { %v3896_v33 = vadd.f32 %v3895_v51, %v3894_v52  ;;  %v3930_v38 = vpop.f32.mrb[7].mxu1  ;;  %v2056_v52 = vld [vmem:[%s7680_s4 + $0x100] sm:$0xff]  ;;  %v4807_v51 = vpack.c.bf16 %v2061_v35, %v2029_v42  ;;  %v2129_v42 = vld [vmem:[%s7680_s4 + $0x348] sm:$0xff] }
 0x15b   :  { %v3931_v39 = vadd.f32 %v3930_v38, %v3929_v37  ;;  %v2121_v38 = vld [vmem:[%s7680_s4 + $0x308] sm:$0xff] }
 0x15c   :  { %v1204_v40 = vadd.f32 %v3896_v33, %v1134_v36  ;;  %v2024_v36 = vld [vmem:[%s7680_s4] sm:$0xff]  ;;  %v2089_v33 = vld [vmem:[%s7680_s4 + $0x208] sm:$0xff]  ;;  %4808 = vmatprep.subr.bf16.mxu1 %v4807_v51  ;;  %v2122_v51 = vld [vmem:[%s7680_s4 + $0x310] sm:$0xff] }
 0x15d   :  { %v4777_v37 = vpack.c.bf16 %v2056_v52, %v2024_v36  ;;  %v2090_v52 = vld [vmem:[%s7680_s4 + $0x210] sm:$0xff] }
 0x15e   :  { %v1274_v41 = vadd.f32 %v3931_v39, %v1204_v40  ;;  %v4779_v39 = vpack.c.bf16 %v2121_v38, %v2089_v33  ;;  %v2088_v40 = vld [vmem:[%s7680_s4 + $0x200] sm:$0xff]  ;;  %v4797_v49 = vpack.c.bf16 %v2122_v51, %v2090_v52  ;;  %v2158_v52 = vld [vmem:[%s7680_s4 + $0x430] sm:$0xff] }
 0x15f   :  { %v2190_v51 = vld [vmem:[%s7680_s4 + $0x530] sm:$0xff] }
 0x178   :  { %v3964_v60 = vpop.f32.mrb[8].mxu0 }
 0x179   :  { %v3965_v61 = vpop.f32.mrb[9].mxu0  ;;  %v3999_v62 = vpop.f32.mrb[8].mxu1 }
 0x17a   :  { %v3966_v0 = vadd.f32 %v3965_v61, %v3964_v60  ;;  %v4000_v1 = vpop.f32.mrb[9].mxu1  ;;  %v2060_v60 = vld [vmem:[%s7680_s4 + $0x120] sm:$0xff]  ;;  %v2093_v61 = vld [vmem:[%s7680_s4 + $0x228] sm:$0xff] }
 0x17b   :  { %v4001_v2 = vadd.f32 %v4000_v1, %v3999_v62  ;;  %v2125_v62 = vld [vmem:[%s7680_s4 + $0x328] sm:$0xff] }
 0x17c   :  { %v1344_v3 = vadd.f32 %v3966_v0, %v1274_v41  ;;  %v2120_v41 = vld [vmem:[%s7680_s4 + $0x300] sm:$0xff]  ;;  %v4809_v0 = vpack.c.bf16 %v2060_v60, %v2028_v59  ;;  %v2251_v59 = vld [vmem:[%s7680_s4 + $0x718] sm:$0xff]  ;;  %v2225_v60 = vld [vmem:[%s7680_s4 + $0x648] sm:$0xff] }
 0x17d   :  { %v4781_v44 = vpack.c.bf16 %v2120_v41, %v2088_v40  ;;  %v2096_v40 = vld [vmem:[%s7680_s4 + $0x240] sm:$0xff] }
 0x17e   :  { %v1414_v4 = vadd.f32 %v4001_v2, %v1344_v3  ;;  %v4811_v3 = vpack.c.bf16 %v2125_v62, %v2093_v61  ;;  %v2128_v41 = vld [vmem:[%s7680_s4 + $0x340] sm:$0xff]  ;;  %v2257_v61 = vld [vmem:[%s7680_s4 + $0x748] sm:$0xff] }
 0x17f   :  { %v4845_v50 = vpack.c.bf16 %v2128_v41, %v2096_v40  ;;  %v2196_v40 = vld [vmem:[%s7680_s4 + $0x560] sm:$0xff]  ;;  %v2223_v41 = vld [vmem:[%s7680_s4 + $0x638] sm:$0xff] }
 0x198   :  { %v4034_v5 = vpop.f32.mrb[10].mxu0 }
 0x199   :  { %v4035_v6 = vpop.f32.mrb[11].mxu0  ;;  %v4069_v8 = vpop.f32.mrb[10].mxu1 }
 0x19a   :  { %v4036_v7 = vadd.f32 %v4035_v6, %v4034_v5  ;;  %v4070_v9 = vpop.f32.mrb[11].mxu1  ;;  %v2124_v5 = vld [vmem:[%s7680_s4 + $0x320] sm:$0xff]  ;;  %v2157_v6 = vld [vmem:[%s7680_s4 + $0x428] sm:$0xff] }
 0x19b   :  { %v4071_v11 = vadd.f32 %v4070_v9, %v4069_v8  ;;  %v2189_v8 = vld [vmem:[%s7680_s4 + $0x528] sm:$0xff] }
 0x19c   :  { %v1484_v10 = vadd.f32 %v4036_v7, %v1414_v4  ;;  %v2092_v4 = vld [vmem:[%s7680_s4 + $0x220] sm:$0xff]  ;;  %v4815_v9 = vpack.c.bf16 %v2189_v8, %v2157_v6  ;;  %v2031_v6 = vld [vmem:[%s7680_s4 + $0x38] sm:$0xff] }
 0x19d   :  { %v4813_v7 = vpack.c.bf16 %v2124_v5, %v2092_v4  ;;  %v2224_v4 = vld [vmem:[%s7680_s4 + $0x640] sm:$0xff]  ;;  %v2063_v8 = vld [vmem:[%s7680_s4 + $0x138] sm:$0xff] }
 0x19e   :  { %v1554_v12 = vadd.f32 %v4071_v11, %v1484_v10  ;;  %v2156_v11 = vld [vmem:[%s7680_s4 + $0x420] sm:$0xff] }
 0x19f   :  { %v2188_v10 = vld [vmem:[%s7680_s4 + $0x520] sm:$0xff] }
 0x1a0   :  { %v2256_v5 = vld [vmem:[%s7680_s4 + $0x740] sm:$0xff] }
 0x1b8   :  { %v4104_v14 = vpop.f32.mrb[12].mxu0 }
 0x1b9   :  { %v4105_v15 = vpop.f32.mrb[13].mxu0  ;;  %v4139_v16 = vpop.f32.mrb[12].mxu1 }
 0x1ba   :  { %v4106_v17 = vadd.f32 %v4105_v15, %v4104_v14  ;;  %v4140_v18 = vpop.f32.mrb[13].mxu1  ;;  %v2253_v14 = vld [vmem:[%s7680_s4 + $0x728] sm:$0xff]  ;;  %v4817_v15 = vpack.c.bf16 %v2188_v10, %v2156_v11  ;;  %v4853_v10 = vpack.c.bf16 %v2256_v5, %v2224_v4  ;;  %v2072_v4 = vld [vmem:[%s7680_s4 + $0x180] sm:$0xff]  ;;  %v2099_v5 = vld [vmem:[%s7680_s4 + $0x258] sm:$0xff] }
 0x1bb   :  { %v4141_v19 = vadd.f32 %v4140_v18, %v4139_v16  ;;  %v2252_v18 = vld [vmem:[%s7680_s4 + $0x720] sm:$0xff] }
 0x1bc   :  { %v1624_v20 = vadd.f32 %v4106_v17, %v1554_v12  ;;  %v2221_v12 = vld [vmem:[%s7680_s4 + $0x628] sm:$0xff]  ;;  %v2220_v17 = vld [vmem:[%s7680_s4 + $0x620] sm:$0xff] }
 0x1bd   :  { %v4819_v16 = vpack.c.bf16 %v2253_v14, %v2221_v12  ;;  %v2030_v12 = vld [vmem:[%s7680_s4 + $0x30] sm:$0xff] }
 0x1be   :  { %v1694_v21 = vadd.f32 %v4141_v19, %v1624_v20  ;;  %v4821_v19 = vpack.c.bf16 %v2252_v18, %v2220_v17  ;;  %v2027_v20 = vld [vmem:[%s7680_s4 + $0x18] sm:$0xff]  ;;  %v2062_v14 = vld [vmem:[%s7680_s4 + $0x130] sm:$0xff]  ;;  %v2036_v17 = vld [vmem:[%s7680_s4 + $0x60] sm:$0xff] }
 0x1bf   :  { %v2068_v18 = vld [vmem:[%s7680_s4 + $0x160] sm:$0xff] }
 0x1d8   :  { %v4174_v22 = vpop.f32.mrb[14].mxu0 }
 0x1d9   :  { %v4175_v23 = vpop.f32.mrb[15].mxu0  ;;  %v4209_v24 = vpop.f32.mrb[14].mxu1 }
 0x1da   :  { %v4176_v25 = vadd.f32 %v4175_v23, %v4174_v22  ;;  %v4210_v26 = vpop.f32.mrb[15].mxu1  ;;  %v2033_v22 = vld [vmem:[%s7680_s4 + $0x48] sm:$0xff] }
 0x1db   :  { %v4211_v27 = vadd.f32 %v4210_v26, %v4209_v24  ;;  %v2065_v24 = vld [vmem:[%s7680_s4 + $0x148] sm:$0xff]  ;;  %v2026_v26 = vld [vmem:[%s7680_s4 + $0x10] sm:$0xff] }
 0x1dc   :  { %v1764_v28 = vadd.f32 %v4176_v25, %v1694_v21  ;;  %v2059_v21 = vld [vmem:[%s7680_s4 + $0x118] sm:$0xff]  ;;  %v4839_v25 = vpack.c.bf16 %v2065_v24, %v2033_v22  ;;  %v2133_v22 = vld [vmem:[%s7680_s4 + $0x368] sm:$0xff]  ;;  %v4873_v24 = vpack.c.bf16 %v2068_v18, %v2036_v17  ;;  %v2136_v17 = vld [vmem:[%s7680_s4 + $0x380] sm:$0xff] }
 0x1dd   :  { %v4791_v23 = vpack.c.bf16 %v2059_v21, %v2027_v20  ;;  %v2127_v20 = vld [vmem:[%s7680_s4 + $0x338] sm:$0xff]  ;;  %v2101_v21 = vld [vmem:[%s7680_s4 + $0x268] sm:$0xff] }
 0x1de   :  { %v1834_v29 = vadd.f32 %v4211_v27, %v1764_v28  ;;  %v2058_v27 = vld [vmem:[%s7680_s4 + $0x110] sm:$0xff]  ;;  %v2032_v28 = vld [vmem:[%s7680_s4 + $0x40] sm:$0xff]  ;;  %v2163_v18 = vld [vmem:[%s7680_s4 + $0x458] sm:$0xff] }
 0x1df   :  { %v4793_v35 = vpack.c.bf16 %v2058_v27, %v2026_v26  ;;  %v2126_v26 = vld [vmem:[%s7680_s4 + $0x330] sm:$0xff] }
 0x1e0   :  { %v1837_v31 = vmul.f32 0.015625, %v1834_v29  ;;  %v2064_v29 = vld [vmem:[%s7680_s4 + $0x140] sm:$0xff] }
 0x1e1   :  { %v4841_v36 = vpack.c.bf16 %v2064_v29, %v2032_v28  ;;  %v4875_v28 = vpack.c.bf16 %v2133_v22, %v2101_v21  ;;  %v2100_v29 = vld [vmem:[%s7680_s4 + $0x260] sm:$0xff]  ;;  %v2201_v21 = vld [vmem:[%s7680_s4 + $0x588] sm:$0xff] }
 0x1e2   :  { %4226 = vmatmul.mubr.msk.f32.vlgmr.msra.gmra.mrb[16].mxu0 %vm1839_vm0, %v1837_v31  ;;  %v2091_v31 = vld [vmem:[%s7680_s4 + $0x218] sm:$0xff] }
 0x1e3   :  { %2347 = vmatprep.mubr.f32.mxu0 %v5077_v43  ;;  %4778 = vmatpush1.bf16.msra.mxu0 %v4777_v37  ;;  %v4795_v38 = vpack.c.bf16 %v2123_v30, %v2091_v31  ;;  %v2132_v31 = vld [vmem:[%s7680_s4 + $0x360] sm:$0xff]  ;;  %v2159_v30 = vld [vmem:[%s7680_s4 + $0x438] sm:$0xff] }
 0x1e4   :  { %4780 = vmatprep.subr.bf16.mxu0 %v4779_v39  ;;  %v4843_v39 = vpack.c.bf16 %v2129_v42, %v2097_v32  ;;  %v2191_v32 = vld [vmem:[%s7680_s4 + $0x538] sm:$0xff]  ;;  %v2165_v42 = vld [vmem:[%s7680_s4 + $0x468] sm:$0xff] }
 0x1e7   :  { %4782 = vmatpush1.bf16.msra.mxu0 %v4781_v44  ;;  %v2155_v44 = vld [vmem:[%s7680_s4 + $0x418] sm:$0xff] }
 0x1e8   :  { %4784 = vmatprep.subr.bf16.mxu0 %v4783_v48  ;;  %v2193_v48 = vld [vmem:[%s7680_s4 + $0x548] sm:$0xff]  ;;  %v4799_v55 = vpack.c.bf16 %v2187_v46, %v2155_v44  ;;  %v2255_v44 = vld [vmem:[%s7680_s4 + $0x738] sm:$0xff] }
 0x1e9   :  { %v2229_v46 = vld [vmem:[%s7680_s4 + $0x668] sm:$0xff] }
 0x1eb   :  { %4786 = vmatpush1.bf16.msra.mxu0 %v4785_v53  ;;  %v2154_v53 = vld [vmem:[%s7680_s4 + $0x410] sm:$0xff] }
 0x1ec   :  { %4788 = vmatprep.subr.bf16.mxu0 %v4787_v56  ;;  %v4847_v56 = vpack.c.bf16 %v2193_v48, %v2161_v47  ;;  %v4801_v62 = vpack.c.bf16 %v2186_v54, %v2154_v53  ;;  %v2261_v47 = vld [vmem:[%s7680_s4 + $0x768] sm:$0xff]  ;;  %v4833_v48 = vpack.c.bf16 %v2190_v51, %v2158_v52  ;;  %v2254_v53 = vld [vmem:[%s7680_s4 + $0x730] sm:$0xff]  ;;  %v4835_v54 = vpack.c.bf16 %v2255_v44, %v2223_v41  ;;  %v2071_v41 = vld [vmem:[%s7680_s4 + $0x178] sm:$0xff] }
 0x1ed   :  { %v2258_v52 = vld [vmem:[%s7680_s4 + $0x750] sm:$0xff]  ;;  %v2045_v44 = vld [vmem:[%s7680_s4 + $0xa8] sm:$0xff] }
 0x1ef   :  { %4790 = vmatpush1.bf16.msra.mxu0 %v4789_v58  ;;  %v2219_v58 = vld [vmem:[%s7680_s4 + $0x618] sm:$0xff] }
 0x1f0   :  { %4792 = vmatprep.subr.bf16.mxu0 %v4791_v23  ;;  %v4825_v23 = vpack.c.bf16 %v2062_v14, %v2030_v12  ;;  %v2130_v12 = vld [vmem:[%s7680_s4 + $0x350] sm:$0xff] }
 0x2b5   :  { %v1912_v63 = vpop.f32.mrb[16].mxu0 }
 0x2b6   :  { %v1916_v1 = vmax.f32 %v1912_v63, 0.0  ;;  %v4227_v2 = vpop.f32.mrb[17].mxu0  ;;  %v4849_v63 = vpack.c.bf16 %v2192_v45, %v2160_v57  ;;  %v2260_v57 = vld [vmem:[%s7680_s4 + $0x760] sm:$0xff]  ;;  %v2035_v45 = vld [vmem:[%s7680_s4 + $0x58] sm:$0xff] }
 0x2b7   :  { %v4803_v2 = vpack.c.bf16 %v2251_v59, %v2219_v58  ;;  %v2067_v58 = vld [vmem:[%s7680_s4 + $0x158] sm:$0xff]  ;;  %v2041_v59 = vld [vmem:[%s7680_s4 + $0x88] sm:$0xff] }
 0x2b8   :  { %4245 = vmatmul.mubr.msk.f32.vlgmr.msra.gmra.mrb[16].mxu1 %vm1925_vm2, %v1916_v1  ;;  %v2250_v1 = vld [vmem:[%s7680_s4 + $0x710] sm:$0xff] }
 0x2b9   :  { %4810 = vmatpush1.bf16.msra.mxu1 %v4809_v0  ;;  %2489 = vmatprep.mubr.f32.mxu1 %v5077_v43  ;;  %v2218_v0 = vld [vmem:[%s7680_s4 + $0x610] sm:$0xff] }
 0x2ba   :  { %4812 = vmatprep.subr.bf16.mxu1 %v4811_v3  ;;  %v4851_v3 = vpack.c.bf16 %v2257_v61, %v2225_v60  ;;  %v4805_v11 = vpack.c.bf16 %v2250_v1, %v2218_v0  ;;  %v2073_v60 = vld [vmem:[%s7680_s4 + $0x188] sm:$0xff]  ;;  %v2066_v0 = vld [vmem:[%s7680_s4 + $0x150] sm:$0xff]  ;;  %v4855_v1 = vpack.c.bf16 %v2067_v58, %v2035_v45  ;;  %v2135_v45 = vld [vmem:[%s7680_s4 + $0x378] sm:$0xff] }
 0x2bb   :  { %v2109_v58 = vld [vmem:[%s7680_s4 + $0x2a8] sm:$0xff] }
 0x2bd   :  { %4814 = vmatpush1.bf16.msra.mxu1 %v4813_v7  ;;  %v2037_v7 = vld [vmem:[%s7680_s4 + $0x68] sm:$0xff] }
 0x2be   :  { %4816 = vmatprep.subr.bf16.mxu1 %v4815_v9  ;;  %v2069_v9 = vld [vmem:[%s7680_s4 + $0x168] sm:$0xff] }
 0x2c1   :  { %4818 = vmatpush1.bf16.msra.mxu1 %v4817_v15  ;;  %v4823_v15 = vpack.c.bf16 %v2063_v8, %v2031_v6  ;;  %v2131_v6 = vld [vmem:[%s7680_s4 + $0x358] sm:$0xff]  ;;  %v2105_v8 = vld [vmem:[%s7680_s4 + $0x288] sm:$0xff] }
 0x2c2   :  { %4820 = vmatprep.subr.bf16.mxu1 %v4819_v16  ;;  %v4871_v16 = vpack.c.bf16 %v2069_v9, %v2037_v7  ;;  %v2137_v7 = vld [vmem:[%s7680_s4 + $0x388] sm:$0xff]  ;;  %v4859_v14 = vpack.c.bf16 %v2131_v6, %v2099_v5  ;;  %v2199_v5 = vld [vmem:[%s7680_s4 + $0x578] sm:$0xff] }
 0x2c3   :  { %v2173_v6 = vld [vmem:[%s7680_s4 + $0x4a8] sm:$0xff] }
 0x2c5   :  { %4822 = vmatpush1.bf16.msra.mxu1 %v4821_v19  ;;  %v2095_v19 = vld [vmem:[%s7680_s4 + $0x238] sm:$0xff] }
 0x2c6   :  { %4840 = vmatprep.subr.bf16.mxu1 %v4839_v25  ;;  %v2094_v25 = vld [vmem:[%s7680_s4 + $0x230] sm:$0xff]  ;;  %v4827_v27 = vpack.c.bf16 %v2127_v20, %v2095_v19  ;;  %v2195_v19 = vld [vmem:[%s7680_s4 + $0x558] sm:$0xff]  ;;  %v2169_v20 = vld [vmem:[%s7680_s4 + $0x488] sm:$0xff] }
 0x38b   :  { %v2019_v34 = vpop.f32.mrb[16].mxu1 }
 0x38c   :  { %v6946_v37 = vmax.f32 %v2019_v34, 0.0  ;;  %v4246_v33 = vpop.f32.mrb[17].mxu1  ;;  %v2197_v34 = vld [vmem:[%s7680_s4 + $0x568] sm:$0xff] }
 0x38d   :  { %v4831_v33 = vpack.c.bf16 %v2191_v32, %v2159_v30  ;;  %v2259_v30 = vld [vmem:[%s7680_s4 + $0x758] sm:$0xff]  ;;  %v2233_v32 = vld [vmem:[%s7680_s4 + $0x688] sm:$0xff] }
 0x38e   :  { %3636 = vmatmul.mubr.msk.f32.vlgmr.msra.gmra.mrb[18].mxu0 %vm1839_vm0, %v6946_v37  ;;  %3638 = vmatmul.mubr.msk.f32.vlgmr.msra.gmra.mrb[18].mxu1 %vm1839_vm0, %v6946_v37 }
 0x38f   :  { %4794 = vmatpush1.bf16.msra.mxu0 %v4793_v35  ;;  %4842 = vmatpush1.bf16.msra.mxu1 %v4841_v36  ;;  %v4829_v35 = vpack.c.bf16 %v2126_v26, %v2094_v25  ;;  %v4877_v36 = vpack.c.bf16 %v2132_v31, %v2100_v29  ;;  %v2194_v25 = vld [vmem:[%s7680_s4 + $0x550] sm:$0xff]  ;;  %v4863_v26 = vpack.c.bf16 %v2195_v19, %v2163_v18  ;;  %v2200_v29 = vld [vmem:[%s7680_s4 + $0x580] sm:$0xff]  ;;  %v2227_v31 = vld [vmem:[%s7680_s4 + $0x658] sm:$0xff] }
 0x390   :  { %4796 = vmatprep.subr.bf16.mxu0 %v4795_v38  ;;  %4844 = vmatprep.subr.bf16.mxu1 %v4843_v39  ;;  %v4879_v38 = vpack.c.bf16 %v2197_v34, %v2165_v42  ;;  %v2164_v39 = vld [vmem:[%s7680_s4 + $0x460] sm:$0xff]  ;;  %v2265_v42 = vld [vmem:[%s7680_s4 + $0x788] sm:$0xff]  ;;  %v4867_v51 = vpack.c.bf16 %v2259_v30, %v2227_v31  ;;  %v2263_v18 = vld [vmem:[%s7680_s4 + $0x778] sm:$0xff] }
 0x391   :  { %2418 = vmatprep.mubr.f32.mxu0 %v5077_v43  ;;  %2631 = vmatprep.mubr.f32.mxu1 %v5077_v43  ;;  %v2237_v19 = vld [vmem:[%s7680_s4 + $0x6a8] sm:$0xff]  ;;  %v2075_v31 = vld [vmem:[%s7680_s4 + $0x198] sm:$0xff] }
 0x392   :  { %v2049_v30 = vld [vmem:[%s7680_s4 + $0xc8] sm:$0xff] }
 0x393   :  { %4798 = vmatpush1.bf16.msra.mxu0 %v4797_v49  ;;  %4846 = vmatpush1.bf16.msra.mxu1 %v4845_v50  ;;  %v4881_v49 = vpack.c.bf16 %v2196_v40, %v2164_v39  ;;  %v2222_v50 = vld [vmem:[%s7680_s4 + $0x630] sm:$0xff]  ;;  %v2264_v39 = vld [vmem:[%s7680_s4 + $0x780] sm:$0xff]  ;;  %v2039_v40 = vld [vmem:[%s7680_s4 + $0x78] sm:$0xff] }
 0x394   :  { %4800 = vmatprep.subr.bf16.mxu0 %v4799_v55  ;;  %4848 = vmatprep.subr.bf16.mxu1 %v4847_v56  ;;  %v4883_v55 = vpack.c.bf16 %v2261_v47, %v2229_v46  ;;  %v2228_v56 = vld [vmem:[%s7680_s4 + $0x660] sm:$0xff]  ;;  %v4837_v61 = vpack.c.bf16 %v2254_v53, %v2222_v50  ;;  %v2077_v46 = vld [vmem:[%s7680_s4 + $0x1a8] sm:$0xff]  ;;  %v2070_v50 = vld [vmem:[%s7680_s4 + $0x170] sm:$0xff]  ;;  %v4887_v53 = vpack.c.bf16 %v2071_v41, %v2039_v40 }
 0x395   :  { %v2139_v40 = vld [vmem:[%s7680_s4 + $0x398] sm:$0xff]  ;;  %v2113_v41 = vld [vmem:[%s7680_s4 + $0x2c8] sm:$0xff] }
 0x397   :  { %4802 = vmatpush1.bf16.msra.mxu0 %v4801_v62  ;;  %4850 = vmatpush1.bf16.msra.mxu1 %v4849_v63  ;;  %v4885_v62 = vpack.c.bf16 %v2260_v57, %v2228_v56  ;;  %v2034_v63 = vld [vmem:[%s7680_s4 + $0x50] sm:$0xff]  ;;  %v2076_v56 = vld [vmem:[%s7680_s4 + $0x1a0] sm:$0xff]  ;;  %v2103_v57 = vld [vmem:[%s7680_s4 + $0x278] sm:$0xff] }
 0x398   :  { %4804 = vmatprep.subr.bf16.mxu0 %v4803_v2  ;;  %4852 = vmatprep.subr.bf16.mxu1 %v4851_v3  ;;  %v4903_v2 = vpack.c.bf16 %v2073_v60, %v2041_v59  ;;  %v2040_v3 = vld [vmem:[%s7680_s4 + $0x80] sm:$0xff]  ;;  %v4857_v9 = vpack.c.bf16 %v2066_v0, %v2034_v63  ;;  %v2141_v59 = vld [vmem:[%s7680_s4 + $0x3a8] sm:$0xff]  ;;  %v2134_v63 = vld [vmem:[%s7680_s4 + $0x370] sm:$0xff]  ;;  %v4891_v0 = vpack.c.bf16 %v2135_v45, %v2103_v57 }
 0x399   :  { %v2203_v57 = vld [vmem:[%s7680_s4 + $0x598] sm:$0xff]  ;;  %v2177_v45 = vld [vmem:[%s7680_s4 + $0x4c8] sm:$0xff] }
 0x39b   :  { %4806 = vmatpush1.bf16.msra.mxu0 %v4805_v11  ;;  %4854 = vmatpush1.bf16.msra.mxu1 %v4853_v10  ;;  %v4905_v11 = vpack.c.bf16 %v2072_v4, %v2040_v3  ;;  %v2098_v10 = vld [vmem:[%s7680_s4 + $0x250] sm:$0xff]  ;;  %v2140_v3 = vld [vmem:[%s7680_s4 + $0x3a0] sm:$0xff]  ;;  %v2167_v4 = vld [vmem:[%s7680_s4 + $0x478] sm:$0xff] }
 0x39c   :  { %4824 = vmatprep.subr.bf16.mxu0 %v4823_v15  ;;  %4872 = vmatprep.subr.bf16.mxu1 %v4871_v16  ;;  %v4907_v15 = vpack.c.bf16 %v2137_v7, %v2105_v8  ;;  %v2104_v16 = vld [vmem:[%s7680_s4 + $0x280] sm:$0xff]  ;;  %v4861_v22 = vpack.c.bf16 %v2130_v12, %v2098_v10  ;;  %v2205_v8 = vld [vmem:[%s7680_s4 + $0x5a8] sm:$0xff]  ;;  %v2198_v10 = vld [vmem:[%s7680_s4 + $0x570] sm:$0xff]  ;;  %v4895_v12 = vpack.c.bf16 %v2199_v5, %v2167_v4 }
 0x39d   :  { %v2267_v4 = vld [vmem:[%s7680_s4 + $0x798] sm:$0xff]  ;;  %v2241_v5 = vld [vmem:[%s7680_s4 + $0x6c8] sm:$0xff] }
 0x39e   :  { %3637 = vmatmul.mubr.msk.f32.vlgmr.msra.gmra.mrb[20].mxu0 %vm1839_vm0, %v6946_v37  ;;  %3640 = vmatmul.mubr.msk.f32.vlgmr.msra.gmra.mrb[20].mxu1 %vm1839_vm0, %v6946_v37 }
 0x39f   :  { %4826 = vmatpush1.bf16.msra.mxu0 %v4825_v23  ;;  %4874 = vmatpush1.bf16.msra.mxu1 %v4873_v24  ;;  %v4909_v23 = vpack.c.bf16 %v2136_v17, %v2104_v16  ;;  %v2162_v24 = vld [vmem:[%s7680_s4 + $0x450] sm:$0xff]  ;;  %v2204_v16 = vld [vmem:[%s7680_s4 + $0x5a0] sm:$0xff]  ;;  %v2231_v17 = vld [vmem:[%s7680_s4 + $0x678] sm:$0xff] }
 0x3a0   :  { %4828 = vmatprep.subr.bf16.mxu0 %v4827_v27  ;;  %4876 = vmatprep.subr.bf16.mxu1 %v4875_v28  ;;  %v4911_v27 = vpack.c.bf16 %v2201_v21, %v2169_v20  ;;  %v2168_v28 = vld [vmem:[%s7680_s4 + $0x480] sm:$0xff]  ;;  %v4865_v34 = vpack.c.bf16 %v2194_v25, %v2162_v24  ;;  %v2269_v20 = vld [vmem:[%s7680_s4 + $0x7a8] sm:$0xff]  ;;  %v2262_v24 = vld [vmem:[%s7680_s4 + $0x770] sm:$0xff]  ;;  %v4899_v25 = vpack.c.bf16 %v2263_v18, %v2231_v17 }
 0x3a1   :  { %2560 = vmatprep.mubr.f32.mxu0 %v5077_v43  ;;  %2773 = vmatprep.mubr.f32.mxu1 %v5077_v43  ;;  %v2079_v17 = vld [vmem:[%s7680_s4 + $0x1b8] sm:$0xff]  ;;  %v2053_v18 = vld [vmem:[%s7680_s4 + $0xe8] sm:$0xff] }
 0x3a3   :  { %4830 = vmatpush1.bf16.msra.mxu0 %v4829_v35  ;;  %4878 = vmatpush1.bf16.msra.mxu1 %v4877_v36  ;;  %v4913_v35 = vpack.c.bf16 %v2200_v29, %v2168_v28  ;;  %v2226_v36 = vld [vmem:[%s7680_s4 + $0x650] sm:$0xff]  ;;  %v2268_v28 = vld [vmem:[%s7680_s4 + $0x7a0] sm:$0xff]  ;;  %v2043_v29 = vld [vmem:[%s7680_s4 + $0x98] sm:$0xff] }
 0x3a4   :  { %4832 = vmatprep.subr.bf16.mxu0 %v4831_v33  ;;  %4880 = vmatprep.subr.bf16.mxu1 %v4879_v38  ;;  %v4915_v33 = vpack.c.bf16 %v2265_v42, %v2233_v32  ;;  %v2232_v38 = vld [vmem:[%s7680_s4 + $0x680] sm:$0xff]  ;;  %v4869_v47 = vpack.c.bf16 %v2258_v52, %v2226_v36  ;;  %v2081_v32 = vld [vmem:[%s7680_s4 + $0x1c8] sm:$0xff]  ;;  %v2074_v36 = vld [vmem:[%s7680_s4 + $0x190] sm:$0xff]  ;;  %v4919_v52 = vpack.c.bf16 %v2075_v31, %v2043_v29 }
 0x3a5   :  { %v2143_v29 = vld [vmem:[%s7680_s4 + $0x3b8] sm:$0xff]  ;;  %v2117_v31 = vld [vmem:[%s7680_s4 + $0x2e8] sm:$0xff] }
 0x3a7   :  { %4834 = vmatpush1.bf16.msra.mxu0 %v4833_v48  ;;  %4882 = vmatpush1.bf16.msra.mxu1 %v4881_v49  ;;  %v4917_v48 = vpack.c.bf16 %v2264_v39, %v2232_v38  ;;  %v2038_v49 = vld [vmem:[%s7680_s4 + $0x70] sm:$0xff]  ;;  %v2080_v38 = vld [vmem:[%s7680_s4 + $0x1c0] sm:$0xff]  ;;  %v2107_v39 = vld [vmem:[%s7680_s4 + $0x298] sm:$0xff] }
 0x3a8   :  { %4836 = vmatprep.subr.bf16.mxu0 %v4835_v54  ;;  %4884 = vmatprep.subr.bf16.mxu1 %v4883_v55  ;;  %v4935_v54 = vpack.c.bf16 %v2077_v46, %v2045_v44  ;;  %v2044_v55 = vld [vmem:[%s7680_s4 + $0xa0] sm:$0xff]  ;;  %v4889_v60 = vpack.c.bf16 %v2070_v50, %v2038_v49  ;;  %v2145_v44 = vld [vmem:[%s7680_s4 + $0x3c8] sm:$0xff]  ;;  %v2138_v49 = vld [vmem:[%s7680_s4 + $0x390] sm:$0xff]  ;;  %v4923_v50 = vpack.c.bf16 %v2139_v40, %v2107_v39 }
 0x3a9   :  { %v2207_v39 = vld [vmem:[%s7680_s4 + $0x5b8] sm:$0xff]  ;;  %v2181_v40 = vld [vmem:[%s7680_s4 + $0x4e8] sm:$0xff] }
 0x3ab   :  { %4838 = vmatpush1.bf16.msra.mxu0 %v4837_v61  ;;  %4886 = vmatpush1.bf16.msra.mxu1 %v4885_v62  ;;  %v4937_v61 = vpack.c.bf16 %v2076_v56, %v2044_v55  ;;  %v2102_v62 = vld [vmem:[%s7680_s4 + $0x270] sm:$0xff]  ;;  %v2144_v55 = vld [vmem:[%s7680_s4 + $0x3c0] sm:$0xff]  ;;  %v2171_v56 = vld [vmem:[%s7680_s4 + $0x498] sm:$0xff] }
 0x3ac   :  { %4856 = vmatprep.subr.bf16.mxu0 %v4855_v1  ;;  %4904 = vmatprep.subr.bf16.mxu1 %v4903_v2  ;;  %v4939_v1 = vpack.c.bf16 %v2141_v59, %v2109_v58  ;;  %v2108_v2 = vld [vmem:[%s7680_s4 + $0x2a0] sm:$0xff]  ;;  %v4893_v7 = vpack.c.bf16 %v2134_v63, %v2102_v62  ;;  %v2209_v58 = vld [vmem:[%s7680_s4 + $0x5c8] sm:$0xff]  ;;  %v2202_v62 = vld [vmem:[%s7680_s4 + $0x590] sm:$0xff]  ;;  %v4927_v63 = vpack.c.bf16 %v2203_v57, %v2171_v56 }
 0x3ad   :  { %v2271_v56 = vld [vmem:[%s7680_s4 + $0x7b8] sm:$0xff]  ;;  %v2245_v57 = vld [vmem:[%s7680_s4 + $0x6e8] sm:$0xff] }
 0x3ae   :  { %3639 = vmatmul.mubr.msk.f32.vlgmr.msra.gmra.mrb[22].mxu0 %vm1839_vm0, %v6946_v37  ;;  %3642 = vmatmul.mubr.msk.f32.vlgmr.msra.gmra.mrb[22].mxu1 %vm1839_vm0, %v6946_v37 }
 0x3af   :  { %4858 = vmatpush1.bf16.msra.mxu0 %v4857_v9  ;;  %4906 = vmatpush1.bf16.msra.mxu1 %v4905_v11  ;;  %v4941_v9 = vpack.c.bf16 %v2140_v3, %v2108_v2  ;;  %v2166_v11 = vld [vmem:[%s7680_s4 + $0x470] sm:$0xff]  ;;  %v2208_v2 = vld [vmem:[%s7680_s4 + $0x5c0] sm:$0xff]  ;;  %v2235_v3 = vld [vmem:[%s7680_s4 + $0x698] sm:$0xff] }
 0x3b0   :  { %4860 = vmatprep.subr.bf16.mxu0 %v4859_v14  ;;  %4908 = vmatprep.subr.bf16.mxu1 %v4907_v15  ;;  %v4943_v14 = vpack.c.bf16 %v2205_v8, %v2173_v6  ;;  %v2172_v15 = vld [vmem:[%s7680_s4 + $0x4a0] sm:$0xff]  ;;  %v4897_v21 = vpack.c.bf16 %v2198_v10, %v2166_v11  ;;  %v2273_v6 = vld [vmem:[%s7680_s4 + $0x7c8] sm:$0xff]  ;;  %v2266_v11 = vld [vmem:[%s7680_s4 + $0x790] sm:$0xff]  ;;  %v4931_v10 = vpack.c.bf16 %v2267_v4, %v2235_v3 }
 0x3b1   :  { %2702 = vmatprep.mubr.f32.mxu0 %v5077_v43  ;;  %2915 = vmatprep.mubr.f32.mxu1 %v5077_v43  ;;  %v2083_v3 = vld [vmem:[%s7680_s4 + $0x1d8] sm:$0xff] }
 0x3b3   :  { %4862 = vmatpush1.bf16.msra.mxu0 %v4861_v22  ;;  %4910 = vmatpush1.bf16.msra.mxu1 %v4909_v23  ;;  %v4945_v22 = vpack.c.bf16 %v2204_v16, %v2172_v15  ;;  %v2230_v23 = vld [vmem:[%s7680_s4 + $0x670] sm:$0xff]  ;;  %v2272_v15 = vld [vmem:[%s7680_s4 + $0x7c0] sm:$0xff]  ;;  %v2047_v16 = vld [vmem:[%s7680_s4 + $0xb8] sm:$0xff] }
 0x3b4   :  { %4864 = vmatprep.subr.bf16.mxu0 %v4863_v26  ;;  %4912 = vmatprep.subr.bf16.mxu1 %v4911_v27  ;;  %v4947_v26 = vpack.c.bf16 %v2269_v20, %v2237_v19  ;;  %v2236_v27 = vld [vmem:[%s7680_s4 + $0x6a0] sm:$0xff]  ;;  %v4901_v42 = vpack.c.bf16 %v2262_v24, %v2230_v23  ;;  %v2085_v19 = vld [vmem:[%s7680_s4 + $0x1e8] sm:$0xff]  ;;  %v2078_v23 = vld [vmem:[%s7680_s4 + $0x1b0] sm:$0xff]  ;;  %v4951_v24 = vpack.c.bf16 %v2079_v17, %v2047_v16 }
 0x3b5   :  { %v2179_v16 = vld [vmem:[%s7680_s4 + $0x4d8] sm:$0xff] }
 0x3b6   :  { %v2211_v17 = vld [vmem:[%s7680_s4 + $0x5d8] sm:$0xff] }
 0x3b7   :  { %4866 = vmatpush1.bf16.msra.mxu0 %v4865_v34  ;;  %4914 = vmatpush1.bf16.msra.mxu1 %v4913_v35  ;;  %v4949_v34 = vpack.c.bf16 %v2268_v28, %v2236_v27  ;;  %v2042_v35 = vld [vmem:[%s7680_s4 + $0x90] sm:$0xff]  ;;  %v2084_v27 = vld [vmem:[%s7680_s4 + $0x1e0] sm:$0xff]  ;;  %v2111_v28 = vld [vmem:[%s7680_s4 + $0x2b8] sm:$0xff] }
 0x3b8   :  { %4868 = vmatprep.subr.bf16.mxu0 %v4867_v51  ;;  %4916 = vmatprep.subr.bf16.mxu1 %v4915_v33  ;;  %v4967_v51 = vpack.c.bf16 %v2081_v32, %v2049_v30  ;;  %v2048_v33 = vld [vmem:[%s7680_s4 + $0xc0] sm:$0xff]  ;;  %v4921_v46 = vpack.c.bf16 %v2074_v36, %v2042_v35  ;;  %v2149_v30 = vld [vmem:[%s7680_s4 + $0x3e8] sm:$0xff]  ;;  %v2142_v35 = vld [vmem:[%s7680_s4 + $0x3b0] sm:$0xff]  ;;  %v4955_v36 = vpack.c.bf16 %v2143_v29, %v2111_v28 }
 0x3b9   :  { %v2055_v28 = vld [vmem:[%s7680_s4 + $0xf8] sm:$0xff] }
 0x3ba   :  { %v2087_v29 = vld [vmem:[%s7680_s4 + $0x1f8] sm:$0xff] }
 0x3bb   :  { %4870 = vmatpush1.bf16.msra.mxu0 %v4869_v47  ;;  %4918 = vmatpush1.bf16.msra.mxu1 %v4917_v48  ;;  %v4969_v47 = vpack.c.bf16 %v2080_v38, %v2048_v33  ;;  %v2106_v48 = vld [vmem:[%s7680_s4 + $0x290] sm:$0xff]  ;;  %v2148_v33 = vld [vmem:[%s7680_s4 + $0x3e0] sm:$0xff]  ;;  %v2175_v38 = vld [vmem:[%s7680_s4 + $0x4b8] sm:$0xff] }
 0x3bc   :  { %4888 = vmatprep.subr.bf16.mxu0 %v4887_v53  ;;  %4936 = vmatprep.subr.bf16.mxu1 %v4935_v54  ;;  %v4971_v53 = vpack.c.bf16 %v2145_v44, %v2113_v41  ;;  %v2112_v54 = vld [vmem:[%s7680_s4 + $0x2c0] sm:$0xff]  ;;  %v4925_v59 = vpack.c.bf16 %v2138_v49, %v2106_v48  ;;  %v2213_v41 = vld [vmem:[%s7680_s4 + $0x5e8] sm:$0xff]  ;;  %v2206_v48 = vld [vmem:[%s7680_s4 + $0x5b0] sm:$0xff]  ;;  %v4959_v49 = vpack.c.bf16 %v2207_v39, %v2175_v38 }
 0x3bd   :  { %v2183_v38 = vld [vmem:[%s7680_s4 + $0x4f8] sm:$0xff] }
 0x3be   :  { %3641 = vmatmul.mubr.msk.f32.vlgmr.msra.gmra.mrb[24].mxu0 %vm1839_vm0, %v6946_v37  ;;  %3644 = vmatmul.mubr.msk.f32.vlgmr.msra.gmra.mrb[24].mxu1 %vm1839_vm0, %v6946_v37  ;;  %v2215_v39 = vld [vmem:[%s7680_s4 + $0x5f8] sm:$0xff] }
 0x3bf   :  { %4890 = vmatpush1.bf16.msra.mxu0 %v4889_v60  ;;  %4938 = vmatpush1.bf16.msra.mxu1 %v4937_v61  ;;  %v4973_v60 = vpack.c.bf16 %v2144_v55, %v2112_v54  ;;  %v2170_v61 = vld [vmem:[%s7680_s4 + $0x490] sm:$0xff]  ;;  %v2212_v54 = vld [vmem:[%s7680_s4 + $0x5e0] sm:$0xff]  ;;  %v2239_v55 = vld [vmem:[%s7680_s4 + $0x6b8] sm:$0xff] }
 0x3c0   :  { %4892 = vmatprep.subr.bf16.mxu0 %v4891_v0  ;;  %4940 = vmatprep.subr.bf16.mxu1 %v4939_v1  ;;  %v4975_v0 = vpack.c.bf16 %v2209_v58, %v2177_v45  ;;  %v2176_v1 = vld [vmem:[%s7680_s4 + $0x4c0] sm:$0xff]  ;;  %v4929_v8 = vpack.c.bf16 %v2202_v62, %v2170_v61  ;;  %v2277_v45 = vld [vmem:[%s7680_s4 + $0x7e8] sm:$0xff]  ;;  %v4963_v61 = vpack.c.bf16 %v2271_v56, %v2239_v55 }
 0x3c1   :  { %2844 = vmatprep.mubr.f32.mxu0 %v5077_v43  ;;  %3057 = vmatprep.mubr.f32.mxu1 %v5077_v43  ;;  %v5011_v62 = vpack.c.bf16 %v2277_v45, %v2245_v57 }
 0x3c3   :  { %4894 = vmatpush1.bf16.msra.mxu0 %v4893_v7  ;;  %4942 = vmatpush1.bf16.msra.mxu1 %v4941_v9  ;;  %v4977_v7 = vpack.c.bf16 %v2208_v2, %v2176_v1  ;;  %v2234_v9 = vld [vmem:[%s7680_s4 + $0x690] sm:$0xff]  ;;  %v2276_v1 = vld [vmem:[%s7680_s4 + $0x7e0] sm:$0xff]  ;;  %v2051_v2 = vld [vmem:[%s7680_s4 + $0xd8] sm:$0xff] }
 0x3c4   :  { %4896 = vmatprep.subr.bf16.mxu0 %v4895_v12  ;;  %4944 = vmatprep.subr.bf16.mxu1 %v4943_v14  ;;  %v4979_v12 = vpack.c.bf16 %v2273_v6, %v2241_v5  ;;  %v2240_v14 = vld [vmem:[%s7680_s4 + $0x6c0] sm:$0xff]  ;;  %v4933_v20 = vpack.c.bf16 %v2266_v11, %v2234_v9  ;;  %v4983_v6 = vpack.c.bf16 %v2083_v3, %v2051_v2  ;;  %v2115_v9 = vld [vmem:[%s7680_s4 + $0x2d8] sm:$0xff] }
 0x3c5   :  { %v2147_v11 = vld [vmem:[%s7680_s4 + $0x3d8] sm:$0xff] }
 0x3c7   :  { %4898 = vmatpush1.bf16.msra.mxu0 %v4897_v21  ;;  %4946 = vmatpush1.bf16.msra.mxu1 %v4945_v22  ;;  %v4981_v21 = vpack.c.bf16 %v2272_v15, %v2240_v14  ;;  %v2046_v22 = vld [vmem:[%s7680_s4 + $0xb0] sm:$0xff] }
 0x3c8   :  { %4900 = vmatprep.subr.bf16.mxu0 %v4899_v25  ;;  %4948 = vmatprep.subr.bf16.mxu1 %v4947_v26  ;;  %v4999_v25 = vpack.c.bf16 %v2085_v19, %v2053_v18  ;;  %v2052_v26 = vld [vmem:[%s7680_s4 + $0xe0] sm:$0xff]  ;;  %v4953_v32 = vpack.c.bf16 %v2078_v23, %v2046_v22  ;;  %v2114_v14 = vld [vmem:[%s7680_s4 + $0x2d0] sm:$0xff]  ;;  %v4991_v19 = vpack.c.bf16 %v2211_v17, %v2179_v16  ;;  %v2243_v22 = vld [vmem:[%s7680_s4 + $0x6d8] sm:$0xff] }
 0x3c9   :  { %v2146_v15 = vld [vmem:[%s7680_s4 + $0x3d0] sm:$0xff]  ;;  %v2275_v23 = vld [vmem:[%s7680_s4 + $0x7d8] sm:$0xff]  ;;  %v5045_v16 = vld [vmem:[%s7676_s0 + $0x8] sm:$0xff] }
 0x3ca   :  { %v4989_v18 = vpack.c.bf16 %v2146_v15, %v2114_v14 }
 0x3cb   :  { %4902 = vmatpush1.bf16.msra.mxu0 %v4901_v42  ;;  %4950 = vmatpush1.bf16.msra.mxu1 %v4949_v34  ;;  %v5001_v42 = vpack.c.bf16 %v2084_v27, %v2052_v26  ;;  %v2110_v34 = vld [vmem:[%s7680_s4 + $0x2b0] sm:$0xff] }
 0x3cc   :  { %4920 = vmatprep.subr.bf16.mxu0 %v4919_v52  ;;  %4968 = vmatprep.subr.bf16.mxu1 %v4967_v51  ;;  %v5003_v52 = vpack.c.bf16 %v2149_v30, %v2117_v31  ;;  %v2116_v51 = vld [vmem:[%s7680_s4 + $0x2e0] sm:$0xff]  ;;  %v4957_v44 = vpack.c.bf16 %v2142_v35, %v2110_v34  ;;  %v2242_v26 = vld [vmem:[%s7680_s4 + $0x6d0] sm:$0xff]  ;;  %v5015_v30 = vpack.c.bf16 %v2087_v29, %v2055_v28  ;;  %v2119_v34 = vld [vmem:[%s7680_s4 + $0x2f8] sm:$0xff] }
 0x3cd   :  { %v2274_v27 = vld [vmem:[%s7680_s4 + $0x7d0] sm:$0xff]  ;;  %v2151_v35 = vld [vmem:[%s7680_s4 + $0x3f8] sm:$0xff] }
 0x3ce   :  { %3643 = vmatmul.mubr.msk.f32.vlgmr.msra.gmra.mrb[26].mxu0 %vm1839_vm0, %v6946_v37  ;;  %3646 = vmatmul.mubr.msk.f32.vlgmr.msra.gmra.mrb[26].mxu1 %vm1839_vm0, %v6946_v37  ;;  %v4997_v31 = vpack.c.bf16 %v2274_v27, %v2242_v26  ;;  %v5046_v27 = vld [vmem:[%s7676_s0 + $0x10] sm:$0xff] }
 0x3cf   :  { %4922 = vmatpush1.bf16.msra.mxu0 %v4921_v46  ;;  %4970 = vmatpush1.bf16.msra.mxu1 %v4969_v47  ;;  %v5005_v46 = vpack.c.bf16 %v2148_v33, %v2116_v51  ;;  %v2174_v47 = vld [vmem:[%s7680_s4 + $0x4b0] sm:$0xff] }
 0x3d0   :  { %4924 = vmatprep.subr.bf16.mxu0 %v4923_v50  ;;  %4972 = vmatprep.subr.bf16.mxu1 %v4971_v53  ;;  %v5007_v50 = vpack.c.bf16 %v2213_v41, %v2181_v40  ;;  %v2180_v53 = vld [vmem:[%s7680_s4 + $0x4e0] sm:$0xff]  ;;  %v4961_v58 = vpack.c.bf16 %v2206_v48, %v2174_v47  ;;  %v2118_v51 = vld [vmem:[%s7680_s4 + $0x2f0] sm:$0xff]  ;;  %v5023_v41 = vpack.c.bf16 %v2215_v39, %v2183_v38  ;;  %v2247_v47 = vld [vmem:[%s7680_s4 + $0x6f8] sm:$0xff] }
 0x3d1   :  { %2986 = vmatprep.mubr.f32.mxu0 %v5077_v43  ;;  %3199 = vmatprep.mubr.f32.mxu1 %v5077_v43  ;;  %v2150_v33 = vld [vmem:[%s7680_s4 + $0x3f0] sm:$0xff]  ;;  %v2279_v48 = vld [vmem:[%s7680_s4 + $0x7f8] sm:$0xff] }
 0x3d2   :  { %v5021_v40 = vpack.c.bf16 %v2150_v33, %v2118_v51  ;;  %v5047_v51 = vld [vmem:[%s7676_s0 + $0x18] sm:$0xff] }
 0x3d3   :  { %4926 = vmatpush1.bf16.msra.mxu0 %v4925_v59  ;;  %4974 = vmatpush1.bf16.msra.mxu1 %v4973_v60  ;;  %v5009_v59 = vpack.c.bf16 %v2212_v54, %v2180_v53  ;;  %v2238_v60 = vld [vmem:[%s7680_s4 + $0x6b0] sm:$0xff] }
 0x3d4   :  { %4928 = vmatprep.subr.bf16.mxu0 %v4927_v63  ;;  %4976 = vmatprep.subr.bf16.mxu1 %v4975_v0  ;;  %v2270_v63 = vld [vmem:[%s7680_s4 + $0x7b0] sm:$0xff]  ;;  %v2244_v0 = vld [vmem:[%s7680_s4 + $0x6e0] sm:$0xff] }
 0x3d5   :  { %v4965_v4 = vpack.c.bf16 %v2270_v63, %v2238_v60  ;;  %v5013_v5 = vpack.c.bf16 %v2276_v1, %v2244_v0  ;;  %v2278_v53 = vld [vmem:[%s7680_s4 + $0x7f0] sm:$0xff] }
 0x3d7   :  { %4930 = vmatpush1.bf16.msra.mxu0 %v4929_v8  ;;  %4978 = vmatpush1.bf16.msra.mxu1 %v4977_v7  ;;  %v2050_v8 = vld [vmem:[%s7680_s4 + $0xd0] sm:$0xff] }
 0x3d8   :  { %4932 = vmatprep.subr.bf16.mxu0 %v4931_v10  ;;  %4980 = vmatprep.subr.bf16.mxu1 %v4979_v12  ;;  %v2082_v7 = vld [vmem:[%s7680_s4 + $0x1d0] sm:$0xff]  ;;  %v4987_v12 = vpack.c.bf16 %v2147_v11, %v2115_v9 }
 0x3d9   :  { %v4985_v10 = vpack.c.bf16 %v2082_v7, %v2050_v8 }
 0x3db   :  { %4934 = vmatpush1.bf16.msra.mxu0 %v4933_v20  ;;  %4982 = vmatpush1.bf16.msra.mxu1 %v4981_v21  ;;  %v2178_v20 = vld [vmem:[%s7680_s4 + $0x4d0] sm:$0xff] }
 0x3dc   :  { %4952 = vmatprep.subr.bf16.mxu0 %v4951_v24  ;;  %5000 = vmatprep.subr.bf16.mxu1 %v4999_v25  ;;  %v2210_v21 = vld [vmem:[%s7680_s4 + $0x5d0] sm:$0xff]  ;;  %v4995_v25 = vpack.c.bf16 %v2275_v23, %v2243_v22 }
 0x3dd   :  { %v4993_v24 = vpack.c.bf16 %v2210_v21, %v2178_v20 }
 0x3de   :  { %3645 = vmatmul.mubr.msk.f32.vlgmr.msra.gmra.mrb[28].mxu0 %vm1839_vm0, %v6946_v37  ;;  %3648 = vmatmul.mubr.msk.f32.vlgmr.msra.gmra.mrb[28].mxu1 %vm1839_vm0, %v6946_v37 }
 0x3df   :  { %4954 = vmatpush1.bf16.msra.mxu0 %v4953_v32  ;;  %5002 = vmatpush1.bf16.msra.mxu1 %v5001_v42  ;;  %v2054_v32 = vld [vmem:[%s7680_s4 + $0xf0] sm:$0xff] }
 0x3e0   :  { %4956 = vmatprep.subr.bf16.mxu0 %v4955_v36  ;;  %5004 = vmatprep.subr.bf16.mxu1 %v5003_v52  ;;  %v2086_v42 = vld [vmem:[%s7680_s4 + $0x1f0] sm:$0xff]  ;;  %v5019_v52 = vpack.c.bf16 %v2151_v35, %v2119_v34 }
 0x3e1   :  { %3128 = vmatprep.mubr.f32.mxu0 %v5077_v43  ;;  %3341 = vmatprep.mubr.f32.mxu1 %v5077_v43  ;;  %v5017_v36 = vpack.c.bf16 %v2086_v42, %v2054_v32 }
 0x3e3   :  { %4958 = vmatpush1.bf16.msra.mxu0 %v4957_v44  ;;  %5006 = vmatpush1.bf16.msra.mxu1 %v5005_v46  ;;  %v2182_v44 = vld [vmem:[%s7680_s4 + $0x4f0] sm:$0xff] }
 0x3e4   :  { %4960 = vmatprep.subr.bf16.mxu0 %v4959_v49  ;;  %5008 = vmatprep.subr.bf16.mxu1 %v5007_v50  ;;  %v2214_v46 = vld [vmem:[%s7680_s4 + $0x5f0] sm:$0xff]  ;;  %v5027_v49 = vpack.c.bf16 %v2279_v48, %v2247_v47 }
 0x3e5   :  { %v2246_v50 = vld [vmem:[%s7680_s4 + $0x6f0] sm:$0xff] }
 0x3e6   :  { %v5029_v54 = vpack.c.bf16 %v2278_v53, %v2246_v50 }
 0x3e7   :  { %4962 = vmatpush1.bf16.msra.mxu0 %v4961_v58  ;;  %5010 = vmatpush1.bf16.msra.mxu1 %v5009_v59 }
 0x3e8   :  { %4964 = vmatprep.subr.bf16.mxu0 %v4963_v61  ;;  %5012 = vmatprep.subr.bf16.mxu1 %v5011_v62 }
 0x3eb   :  { %4966 = vmatpush1.bf16.msra.mxu0 %v4965_v4  ;;  %5014 = vmatpush1.bf16.msra.mxu1 %v5013_v5 }
 0x3ec   :  { %4984 = vmatprep.subr.bf16.mxu0 %v4983_v6 }
 0x3ee   :  { %3647 = vmatmul.mubr.msk.f32.vlgmr.msra.gmra.mrb[30].mxu0 %vm1839_vm0, %v6946_v37  ;;  %3650 = vmatmul.mubr.msk.f32.vlgmr.msra.gmra.mrb[30].mxu1 %vm1839_vm0, %v6946_v37 }
 0x3ef   :  { %4986 = vmatpush1.bf16.msra.mxu0 %v4985_v10  ;;  %3270 = vmatprep.mubr.f32.mxu0 %v5077_v43 }
 0x3f0   :  { %4988 = vmatprep.subr.bf16.mxu0 %v4987_v12 }
 0x3f3   :  { %4990 = vmatpush1.bf16.msra.mxu0 %v4989_v18 }
 0x3f4   :  { %4992 = vmatprep.subr.bf16.mxu0 %v4991_v19 }
 0x3f7   :  { %4994 = vmatpush1.bf16.msra.mxu0 %v4993_v24 }
 0x3f8   :  { %4996 = vmatprep.subr.bf16.mxu0 %v4995_v25 }
 0x3fb   :  { %4998 = vmatpush1.bf16.msra.mxu0 %v4997_v31 }
 0x3fc   :  { %5016 = vmatprep.subr.bf16.mxu0 %v5015_v30 }
 0x3fe   :  { %3649 = vmatmul.mubr.msk.f32.vlgmr.msra.gmra.mrb[32].mxu0 %vm1839_vm0, %v6946_v37 }
 0x3ff   :  { %5018 = vmatpush1.bf16.msra.mxu0 %v5017_v36  ;;  %3412 = vmatprep.mubr.f32.mxu0 %v5077_v43  ;;  %v5025_v43 = vpack.c.bf16 %v2214_v46, %v2182_v44 }
 0x400   :  { %5020 = vmatprep.subr.bf16.mxu0 %v5019_v52 }
 0x403   :  { %5022 = vmatpush1.bf16.msra.mxu0 %v5021_v40 }
 0x404   :  { %5024 = vmatprep.subr.bf16.mxu0 %v5023_v41 }
 0x407   :  { %5026 = vmatpush1.bf16.msra.mxu0 %v5025_v43 }
 0x408   :  { %5028 = vmatprep.subr.bf16.mxu0 %v5027_v49  ;;  %v5048_v49 = vld [vmem:[%s7676_s0 + $0x20] sm:$0xff] }
 0x40b   :  { %5030 = vmatpush1.bf16.msra.mxu0 %v5029_v54 }
 0x40e   :  { %3651 = vmatmul.mubr.msk.f32.vlgmr.msra.gmra.mrb[34].mxu0 %vm1839_vm0, %v6946_v37  ;;  %v5044_v37 = vld [vmem:[%s7676_s0] sm:$0xff] }
 0x461   :  { %v2349_v55 = vpop.f32.mrb[18].mxu0  ;;  %v2491_v56 = vpop.f32.mrb[18].mxu1 }
 0x462   :  { %v2351_v57 = vpop.f32.mrb[19].mxu0  ;;  %v2493_v45 = vpop.f32.mrb[19].mxu1 }
 0x463   :  { %v3451_v58 = vcombine.low %v2349_v55, %v2351_v57  ;;  %v3468_v59 = vcombine.low %v2491_v56, %v2493_v45 }
 0x465   :  { %v3459_v2 = vrot.slane %v3451_v58, %v5261_v13  ;;  %v3476_v12 = vrot.slane %v3468_v59, %v5261_v13 }
 0x471   :  { %v2420_v60 = vpop.f32.mrb[20].mxu0  ;;  %v2633_v61 = vpop.f32.mrb[20].mxu1 }
 0x472   :  { %v2422_v62 = vpop.f32.mrb[21].mxu0  ;;  %v2635_v63 = vpop.f32.mrb[21].mxu1 }
 0x473   :  { %v3452_v0 = vcombine.low %v2420_v60, %v2422_v62  ;;  %v3485_v1 = vcombine.low %v2633_v61, %v2635_v63  ;;  %v5049_v61 = vld [vmem:[%s7676_s0 + $0x28] sm:$0xff] }
 0x475   :  { %v3466_v3 = vrot.slane %v3452_v0, %v5261_v13  ;;  %v3493_v24 = vrot.slane %v3485_v1, %v5261_v13 }
 0x477   :  { %v3467_v4 = vcombine.low %v3459_v2, %v3466_v3 }
 0x479   :  { %v3595_v5 = vmul.f32 %v5044_v37, %v3467_v4  ;;  %v5050_v37 = vld [vmem:[%s7676_s0 + $0x30] sm:$0xff] }
 0x47b   :  { %3603 = vst [vmem:[#allocation2] sm:$0xff] %v3595_v5 }
 0x481   :  { %v2562_v6 = vpop.f32.mrb[22].mxu0  ;;  %v2775_v8 = vpop.f32.mrb[22].mxu1 }
 0x482   :  { %v2564_v7 = vpop.f32.mrb[23].mxu0  ;;  %v2777_v9 = vpop.f32.mrb[23].mxu1 }
 0x483   :  { %v3469_v11 = vcombine.low %v2562_v6, %v2564_v7  ;;  %v3502_v10 = vcombine.low %v2775_v8, %v2777_v9 }
 0x485   :  { %v3483_v14 = vrot.slane %v3469_v11, %v5261_v13  ;;  %v3510_v35 = vrot.slane %v3502_v10, %v5261_v13 }
 0x487   :  { %v3484_v15 = vcombine.low %v3476_v12, %v3483_v14  ;;  %v5051_v12 = vld [vmem:[%s7676_s0 + $0x38] sm:$0xff] }
 0x489   :  { %v3596_v17 = vmul.f32 %v5045_v16, %v3484_v15 }
 0x48b   :  { %3604 = vst [vmem:[#allocation2 + $0x8] sm:$0xff] %v3596_v17 }
 0x491   :  { %v2704_v18 = vpop.f32.mrb[24].mxu0  ;;  %v2917_v19 = vpop.f32.mrb[24].mxu1 }
 0x492   :  { %v2706_v20 = vpop.f32.mrb[25].mxu0  ;;  %v2919_v21 = vpop.f32.mrb[25].mxu1 }
 0x493   :  { %v3486_v22 = vcombine.low %v2704_v18, %v2706_v20  ;;  %v3519_v23 = vcombine.low %v2917_v19, %v2919_v21 }
 0x495   :  { %v3500_v25 = vrot.slane %v3486_v22, %v5261_v13  ;;  %v3527_v47 = vrot.slane %v3519_v23, %v5261_v13 }
 0x497   :  { %v3501_v26 = vcombine.low %v3493_v24, %v3500_v25 }
 0x499   :  { %v3597_v28 = vmul.f32 %v5046_v27, %v3501_v26 }
 0x49b   :  { %3605 = vst [vmem:[#allocation2 + $0x10] sm:$0xff] %v3597_v28 }
 0x4a1   :  { %v2846_v29 = vpop.f32.mrb[26].mxu0  ;;  %v3059_v31 = vpop.f32.mrb[26].mxu1 }
 0x4a2   :  { %v2848_v30 = vpop.f32.mrb[27].mxu0  ;;  %v3061_v32 = vpop.f32.mrb[27].mxu1 }
 0x4a3   :  { %v3503_v42 = vcombine.low %v2846_v29, %v2848_v30  ;;  %v3536_v34 = vcombine.low %v3059_v31, %v3061_v32 }
 0x4a5   :  { %v3517_v36 = vrot.slane %v3503_v42, %v5261_v13  ;;  %v3544_v58 = vrot.slane %v3536_v34, %v5261_v13 }
 0x4a7   :  { %v3518_v52 = vcombine.low %v3510_v35, %v3517_v36 }
 0x4a9   :  { %v3598_v33 = vmul.f32 %v5047_v51, %v3518_v52 }
 0x4ab   :  { %3606 = vst [vmem:[#allocation2 + $0x18] sm:$0xff] %v3598_v33 }
 0x4b1   :  { %v2988_v38 = vpop.f32.mrb[28].mxu0  ;;  %v3201_v39 = vpop.f32.mrb[28].mxu1 }
 0x4b2   :  { %v2990_v40 = vpop.f32.mrb[29].mxu0  ;;  %v3203_v41 = vpop.f32.mrb[29].mxu1 }
 0x4b3   :  { %v3520_v44 = vcombine.low %v2988_v38, %v2990_v40  ;;  %v3553_v46 = vcombine.low %v3201_v39, %v3203_v41 }
 0x4b5   :  { %v3534_v48 = vrot.slane %v3520_v44, %v5261_v13  ;;  %v3561_v2 = vrot.slane %v3553_v46, %v5261_v13 }
 0x4b7   :  { %v3535_v43 = vcombine.low %v3527_v47, %v3534_v48 }
 0x4b9   :  { %v3599_v50 = vmul.f32 %v5048_v49, %v3535_v43 }
 0x4bb   :  { %3607 = vst [vmem:[#allocation2 + $0x20] sm:$0xff] %v3599_v50 }
 0x4c1   :  { %v3130_v53 = vpop.f32.mrb[30].mxu0  ;;  %v3343_v54 = vpop.f32.mrb[30].mxu1 }
 0x4c2   :  { %v3132_v55 = vpop.f32.mrb[31].mxu0  ;;  %v3345_v56 = vpop.f32.mrb[31].mxu1 }
 0x4c3   :  { %v3537_v57 = vcombine.low %v3130_v53, %v3132_v55  ;;  %v3570_v45 = vcombine.low %v3343_v54, %v3345_v56 }
 0x4c5   :  { %v3551_v59 = vrot.slane %v3537_v57, %v5261_v13  ;;  %v3578_v9 = vrot.slane %v3570_v45, %v5261_v13 }
 0x4c7   :  { %v3552_v60 = vcombine.low %v3544_v58, %v3551_v59 }
 0x4c9   :  { %v3600_v62 = vmul.f32 %v5049_v61, %v3552_v60 }
 0x4cb   :  { %3608 = vst [vmem:[#allocation2 + $0x28] sm:$0xff] %v3600_v62 }
 0x4d1   :  { %v3272_v63 = vpop.f32.mrb[32].mxu0 }
 0x4d2   :  { %v3274_v0 = vpop.f32.mrb[33].mxu0 }
 0x4d3   :  { %v3554_v1 = vcombine.low %v3272_v63, %v3274_v0 }
 0x4d5   :  { %v3568_v3 = vrot.slane %v3554_v1, %v5261_v13 }
 0x4d7   :  { %v3569_v4 = vcombine.low %v3561_v2, %v3568_v3 }
 0x4d9   :  { %v3601_v5 = vmul.f32 %v5050_v37, %v3569_v4 }
 0x4db   :  { %3609 = vst [vmem:[#allocation2 + $0x30] sm:$0xff] %v3601_v5 }
 0x4e1   :  { %v3414_v6 = vpop.f32.mrb[34].mxu0 }
 0x4e2   :  { %v3416_v8 = vpop.f32.mrb[35].mxu0 }
 0x4e3   :  { %v3571_v7 = vcombine.low %v3414_v6, %v3416_v8 }
 0x4e5   :  { %v3585_v11 = vrot.slane %v3571_v7, %v5261_v13 }
 0x4e7   :  { %v3586_v10 = vcombine.low %v3578_v9, %v3585_v11 }
 0x4e9   :  { %v3602_v14 = vmul.f32 %v5051_v12, %v3586_v10 }
 0x4eb   :  { %3610 = vst [vmem:[#allocation2 + $0x38] sm:$0xff] %v3602_v14 }
 0x4ec   :  { %5063 = shalt.err (!%p5060_p4)
}
 0x4ed   :  { %s5064_s2 = scalar_lea.hbm %s7681_s5, 1024 }
 0x4ee   :  { %p5065_p5 = scmp.ne.s32.totalorder %s7681_s5, %s5064_s2  ;;  %p5068_p6 = scmp.lt.u32.totalorder %s5064_s2, %s7681_s5 }
 0x4f0   :  { %p5070_p7 = pnand %p5068_p6, %p5065_p5 }
 0x4f2   :  { %5073 = shalt.err (!%p5070_p7)
}
 0x4f3   :  { %3620 = dma.vmem_to_hbm [thread:$0]  %s3618_s18, 1024, %s7681_s5, [#allocation3]  }
 0x4f4   :  { %5074 = dma.done.wait [#allocation3], 1024  }
 0x4f5   :  { %5075 = vsyncadd [#allocation3], 4294966272 }
 0x4f6   :  { %3624 = vsyncpa [#allocation3], 1 }

</bundles_post_ra>
